<compile_context>
chip_gen: v7x
topology: tpu7x:2x2x1
jax: 0.10.0
libtpu: 0.0.40
codegen_flags: <defaults>
</compile_context>

<pallas_src>
import functools
import math

import jax
import jax.numpy as jnp
from jax import lax
from jax.experimental import pallas as pl
from jax.experimental.pallas import tpu as pltpu

ALL_LABELS = ['in_silico', 'organs', 'other', 'human', 'in_vivo',
              'invertebrate', 'primary_cells', 'immortal_cell_line']


# --------------------------- generation-aware knobs ---------------------------

def _default_vmem_limit():
    cap = 128 * 1024 * 1024
    try:  # per-chip VMEM capacity (64 MiB on v7x, 128 MiB on v5e/v6e)
        cap = int(pltpu.get_tpu_info().vmem_capacity_bytes)
    except Exception:
        pass
    return min((cap * 3) // 4, 96 * 1024 * 1024)


_VMEM_LIMIT = _default_vmem_limit()
_SEQ_TM_PREF = 512                                   # rows per block (bf16 -> x16)
_FFN_TI_PREF = 1024 if _VMEM_LIMIT >= 64 * 1024 * 1024 else 512
_ATTN_T_PREF = 512                                   # q / kv tile (amortize K=hd MXU fill)


def _cparams(sem):
    return pltpu.CompilerParams(dimension_semantics=sem,
                                vmem_limit_bytes=_VMEM_LIMIT)


# --------------------------- tiling helpers ---------------------------

def _round_up(x, m):
    return ((x + m - 1) // m) * m


def _pick_tile(dim, pref, align):
    """Largest tile <= pref that spans the dim or is an `align`-multiple
    divisor of it; falls back to the whole dim (single block)."""
    if dim <= pref:
        return dim
    t = (pref // align) * align
    while t >= align:
        if dim % t == 0:
            return t
        t -= align
    return dim


def _gelu(x):
    # TODO(synk): tanh-approximate GELU; HF BERT's default is the exact erf
    # form (difference is tiny but nonzero).
    return 0.5 * x * (1.0 + jnp.tanh(0.7978845608028654 *
                                     (x + 0.044715 * x * x * x)))


# --------------------- LayerNorm (embedding output) ---------------------

def _layernorm_kernel(x_ref, g_ref, b_ref, o_ref, *, eps):
    x = x_ref[0]
    mu = jnp.mean(x, axis=-1, keepdims=True)
    xc = x - mu
    var = jnp.mean(xc * xc, axis=-1, keepdims=True)
    o_ref[0] = (xc * lax.rsqrt(var + eps) * g_ref[...] + b_ref[...]
                ).astype(o_ref.dtype)


def layernorm(x, gamma, beta, *, eps=1e-12):
    """x: (B, Sp, H) f32 -> (B, Sp, H) bf16."""
    B, Sp, H = x.shape
    tm = _pick_tile(Sp, _SEQ_TM_PREF, 16)
    return pl.pallas_call(
        functools.partial(_layernorm_kernel, eps=eps),
        out_shape=jax.ShapeDtypeStruct((B, Sp, H), jnp.bfloat16),
        grid=(B, Sp // tm),
        in_specs=[
            pl.BlockSpec((1, tm, H), lambda b, i: (b, i, 0)),
            pl.BlockSpec((1, H), lambda b, i: (0, 0)),
            pl.BlockSpec((1, H), lambda b, i: (0, 0)),
        ],
        out_specs=pl.BlockSpec((1, tm, H), lambda b, i: (b, i, 0)),
        compiler_params=_cparams(("parallel", "parallel")),
    )(x.astype(jnp.float32),
      gamma.reshape(1, H).astype(jnp.float32),
      beta.reshape(1, H).astype(jnp.float32))


# ------------------- fused Q/K/V projection (one matmul) -------------------

def _qkv_kernel(x_ref, w_ref, b_ref, q_ref, k_ref, v_ref, acc_ref,
                *, num_heads, hidden, scale):
    t = pl.program_id(1)

    @pl.when(t == 0)
    def _():
        acc_ref[...] = jnp.zeros_like(acc_ref)

    acc_ref[...] += jnp.dot(x_ref[0], w_ref[...],
                            preferred_element_type=jnp.float32)

    @pl.when(t == pl.num_programs(1) - 1)
    def _():
        y = acc_ref[...] + b_ref[...]                       # (Sp, 3H) f32
        hd = hidden // num_heads
        for h in range(num_heads):                           # epilogue-only slices
            q_ref[0, h] = (y[:, h * hd:(h + 1) * hd] * scale).astype(q_ref.dtype)
            k_ref[0, h] = y[:, hidden + h * hd:hidden + (h + 1) * hd
                            ].astype(k_ref.dtype)
            v_ref[0, h] = y[:, 2 * hidden + h * hd:2 * hidden + (h + 1) * hd
                            ].astype(v_ref.dtype)


def qkv_projection(x, w_qkv, b_qkv, num_heads, *, tk_pref=768):
    """x: (B, Sp, H) bf16 -> q (pre-scaled), k, v each (B, nH, Sp, hd) bf16."""
    B, Sp, H = x.shape
    H3 = 3 * H
    hd = H // num_heads
    tk = _pick_tile(H, tk_pref, 128)
    scale = 1.0 / math.sqrt(hd)

    q, k, v = pl.pallas_call(
        functools.partial(_qkv_kernel, num_heads=num_heads, hidden=H,
                          scale=scale),
        out_shape=tuple(jax.ShapeDtypeStruct((B, num_heads, Sp, hd),
                                             jnp.bfloat16) for _ in range(3)),
        grid=(B, H // tk),
        in_specs=[
            pl.BlockSpec((1, Sp, tk), lambda b, t: (b, 0, t)),
            pl.BlockSpec((tk, H3), lambda b, t: (t, 0)),
            pl.BlockSpec((1, H3), lambda b, t: (0, 0)),
        ],
        out_specs=tuple(
            pl.BlockSpec((1, num_heads, Sp, hd), lambda b, t: (b, 0, 0, 0))
            for _ in range(3)),
        scratch_shapes=[pltpu.VMEM((Sp, H3), jnp.float32)],
        compiler_params=_cparams(("parallel", "arbitrary")),
    )(x, w_qkv, b_qkv.reshape(1, H3).astype(jnp.float32))
    return q, k, v


# ------------------- flash attention (head-major, KV-tiled) -------------------

def _flash_attn_kernel(q_ref, k_ref, v_ref, bias_ref, o_ref,
                       m_scr, l_scr, acc_scr):
    j = pl.program_id(3)

    @pl.when(j == 0)
    def _():
        m_scr[...] = jnp.full_like(m_scr, -1e30)
        l_scr[...] = jnp.zeros_like(l_scr)
        acc_scr[...] = jnp.zeros_like(acc_scr)

    q = q_ref[0, 0]                                   # (tq, hd) bf16, pre-scaled
    kb = k_ref[0, 0]                                  # (tkv, hd) bf16
    vb = v_ref[0, 0]                                  # (tkv, hd) bf16
    bias = bias_ref[0]                                # (1, tkv) f32 additive

    s = lax.dot_general(q, kb, (((1,), (1,)), ((), ())),
                        preferred_element_type=jnp.float32)   # (tq, tkv)
    s = s + bias
    m_prev = m_scr[...]
    m_new = jnp.maximum(m_prev, jnp.max(s, axis=-1, keepdims=True))
    alpha = jnp.exp(m_prev - m_new)
    p = jnp.exp(s - m_new)
    l_scr[...] = alpha * l_scr[...] + jnp.sum(p, axis=-1, keepdims=True)
    acc_scr[...] = alpha * acc_scr[...] + jnp.dot(
        p.astype(jnp.bfloat16), vb, preferred_element_type=jnp.float32)
    m_scr[...] = m_new

    @pl.when(j == pl.num_programs(3) - 1)
    def _():
        inv = pl.reciprocal(jnp.maximum(l_scr[...], 1e-30), approx=True)
        o_ref[0, 0] = (acc_scr[...] * inv).astype(o_ref.dtype)


def flash_attention(q, k, v, bias):
    """q,k,v: (B, nH, Sp, hd) bf16 (q pre-scaled); bias: (B, 1, Sp) additive.
    Returns ctx: (B, nH, Sp, hd) bf16."""
    B, nH, Sp, hd = q.shape
    tq = _pick_tile(Sp, _ATTN_T_PREF, 16)
    tkv = _pick_tile(Sp, _ATTN_T_PREF, 128)
    return pl.pallas_call(
        _flash_attn_kernel,
        out_shape=jax.ShapeDtypeStruct((B, nH, Sp, hd), jnp.bfloat16),
        grid=(B, nH, Sp // tq, Sp // tkv),
        in_specs=[
            pl.BlockSpec((1, 1, tq, hd), lambda b, h, i, j: (b, h, i, 0)),
            pl.BlockSpec((1, 1, tkv, hd), lambda b, h, i, j: (b, h, j, 0)),
            pl.BlockSpec((1, 1, tkv, hd), lambda b, h, i, j: (b, h, j, 0)),
            pl.BlockSpec((1, 1, tkv), lambda b, h, i, j: (b, 0, j)),
        ],
        out_specs=pl.BlockSpec((1, 1, tq, hd), lambda b, h, i, j: (b, h, i, 0)),
        scratch_shapes=[
            pltpu.VMEM((tq, 1), jnp.float32),
            pltpu.VMEM((tq, 1), jnp.float32),
            pltpu.VMEM((tq, hd), jnp.float32),
        ],
        compiler_params=_cparams(
            ("parallel", "parallel", "parallel", "arbitrary")),
    )(q, k, v, bias.astype(jnp.float32))


# -------- attention out-projection + bias + residual + LayerNorm (fused) --------

def _attn_out_res_ln_kernel(ctx_ref, w_ref, b_ref, r_ref, g_ref, bt_ref,
                            o_ref, *, num_heads, eps):
    acc = jnp.dot(ctx_ref[0, 0], w_ref[0], preferred_element_type=jnp.float32)
    for h in range(1, num_heads):
        acc += jnp.dot(ctx_ref[0, h], w_ref[h],
                       preferred_element_type=jnp.float32)
    hsum = acc + b_ref[...] + r_ref[0].astype(jnp.float32)
    mu = jnp.mean(hsum, axis=-1, keepdims=True)
    hc = hsum - mu
    var = jnp.mean(hc * hc, axis=-1, keepdims=True)
    o_ref[0] = (hc * lax.rsqrt(var + eps) * g_ref[...] + bt_ref[...]
                ).astype(o_ref.dtype)


def attn_out_residual_layernorm(ctx, wo, bo, residual, gamma, beta,
                                *, eps=1e-12):
    """LayerNorm(residual + ctx @ Wo + bo). ctx is head-major (B, nH, Sp, hd);
    Wo is consumed as (nH, hd, H) panels (pure reshape of the (H,H) weight)."""
    B, nH, Sp, hd = ctx.shape
    H = nH * hd
    tm = _pick_tile(Sp, _SEQ_TM_PREF, 16)
    wo_r = wo.reshape(nH, hd, H)
    return pl.pallas_call(
        functools.partial(_attn_out_res_ln_kernel, num_heads=nH, eps=eps),
        out_shape=jax.ShapeDtypeStruct((B, Sp, H), jnp.bfloat16),
        grid=(B, Sp // tm),
        in_specs=[
            pl.BlockSpec((1, nH, tm, hd), lambda b, i: (b, 0, i, 0)),
            pl.BlockSpec((nH, hd, H), lambda b, i: (0, 0, 0)),
            pl.BlockSpec((1, H), lambda b, i: (0, 0)),
            pl.BlockSpec((1, tm, H), lambda b, i: (b, i, 0)),
            pl.BlockSpec((1, H), lambda b, i: (0, 0)),
            pl.BlockSpec((1, H), lambda b, i: (0, 0)),
        ],
        out_specs=pl.BlockSpec((1, tm, H), lambda b, i: (b, i, 0)),
        compiler_params=_cparams(("parallel", "parallel")),
    )(ctx, wo_r, bo.reshape(1, H).astype(jnp.float32), residual,
      gamma.reshape(1, H).astype(jnp.float32),
      beta.reshape(1, H).astype(jnp.float32))


# -------------- fused FFN: gelu(x@W1+b1)@W2 + b2 + residual + LN --------------

def _ffn_res_ln_kernel(x_ref, w1_ref, b1_ref, w2_ref, b2_ref, g_ref, bt_ref,
                       o_ref, acc_ref, *, eps):
    t = pl.program_id(2)

    @pl.when(t == 0)
    def _():
        acc_ref[...] = jnp.zeros_like(acc_ref)

    u = jnp.dot(x_ref[0], w1_ref[...],
                preferred_element_type=jnp.float32) + b1_ref[...]
    u = _gelu(u)
    acc_ref[...] += jnp.dot(u.astype(jnp.bfloat16), w2_ref[...],
                            preferred_element_type=jnp.float32)

    @pl.when(t == pl.num_programs(2) - 1)
    def _():
        hsum = acc_ref[...] + b2_ref[...] + x_ref[0].astype(jnp.float32)
        mu = jnp.mean(hsum, axis=-1, keepdims=True)
        hc = hsum - mu
        var = jnp.mean(hc * hc, axis=-1, keepdims=True)
        o_ref[0] = (hc * lax.rsqrt(var + eps) * g_ref[...] + bt_ref[...]
                    ).astype(o_ref.dtype)


def ffn_residual_layernorm(x, w1, b1, w2, b2, gamma, beta, *, eps=1e-12):
    """LayerNorm(x + gelu(x@W1+b1)@W2 + b2); the (M, I) intermediate never
    leaves VMEM (x block doubles as the residual)."""
    B, Sp, H = x.shape
    I = w1.shape[1]
    tm = _pick_tile(Sp, _SEQ_TM_PREF, 16)
    ti = _pick_tile(I, _FFN_TI_PREF, 128)
    return pl.pallas_call(
        functools.partial(_ffn_res_ln_kernel, eps=eps),
        out_shape=jax.ShapeDtypeStruct((B, Sp, H), jnp.bfloat16),
        grid=(B, Sp // tm, I // ti),
        in_specs=[
            pl.BlockSpec((1, tm, H), lambda b, i, t: (b, i, 0)),
            pl.BlockSpec((H, ti), lambda b, i, t: (0, t)),
            pl.BlockSpec((1, ti), lambda b, i, t: (0, t)),
            pl.BlockSpec((ti, H), lambda b, i, t: (t, 0)),
            pl.BlockSpec((1, H), lambda b, i, t: (0, 0)),
            pl.BlockSpec((1, H), lambda b, i, t: (0, 0)),
            pl.BlockSpec((1, H), lambda b, i, t: (0, 0)),
        ],
        out_specs=pl.BlockSpec((1, tm, H), lambda b, i, t: (b, i, 0)),
        scratch_shapes=[pltpu.VMEM((tm, H), jnp.float32)],
        compiler_params=_cparams(("parallel", "parallel", "arbitrary")),
    )(x, w1, b1.reshape(1, I).astype(jnp.float32), w2,
      b2.reshape(1, H).astype(jnp.float32),
      gamma.reshape(1, H).astype(jnp.float32),
      beta.reshape(1, H).astype(jnp.float32))


# ----------------- fused pooler (tanh) + packed classifier heads -----------------

def _pool_cls_kernel(x_ref, pw_ref, pb_ref, cw_ref, cb_ref, o_ref):
    pooled = jnp.tanh(jnp.dot(x_ref[...], pw_ref[...],
                              preferred_element_type=jnp.float32) + pb_ref[...])
    o_ref[...] = jnp.dot(pooled.astype(jnp.bfloat16), cw_ref[...],
                         preferred_element_type=jnp.float32) + cb_ref[...]


def pooler_classifier(cls_rows, pooler_w, pooler_b, cls_w, cls_b):
    """cls_rows: (B, H) bf16 -> logits (B, Cp) f32 (Cp lane-padded)."""
    B, H = cls_rows.shape
    Cp = cls_w.shape[1]
    Bp = _round_up(B, 8)
    x = jnp.pad(cls_rows, ((0, Bp - B), (0, 0)))
    out = pl.pallas_call(
        _pool_cls_kernel,
        out_shape=jax.ShapeDtypeStruct((Bp, Cp), jnp.float32),
        grid=(1,),
        in_specs=[
            pl.BlockSpec((Bp, H), lambda i: (0, 0)),
            pl.BlockSpec((H, H), lambda i: (0, 0)),
            pl.BlockSpec((1, H), lambda i: (0, 0)),
            pl.BlockSpec((H, Cp), lambda i: (0, 0)),
            pl.BlockSpec((1, Cp), lambda i: (0, 0)),
        ],
        out_specs=pl.BlockSpec((Bp, Cp), lambda i: (0, 0)),
        compiler_params=_cparams(("arbitrary",)),
    )(x, pooler_w, pooler_b.reshape(1, H).astype(jnp.float32),
      cls_w, cls_b.reshape(1, Cp).astype(jnp.float32))
    return out[:B]


# ------------------- parameters (deterministic, synthetic) -------------------

def init_params(key, cfg, num_labels_dict):
    H = cfg["hidden_size"]
    I = cfg["intermediate_size"]
    keys = iter(jax.random.split(key, 128))

    def wgt(shape):   # matmul weights stored bf16 (MXU inputs / half HBM bytes)
        return (0.02 * jax.random.normal(next(keys), shape,
                                         dtype=jnp.float32)).astype(jnp.bfloat16)

    def f32(shape, val=0.0):
        return jnp.full(shape, val, jnp.float32)

    def emb(shape):
        return 0.02 * jax.random.normal(next(keys), shape, dtype=jnp.float32)

    params = {
        "embeddings": {
            "word": emb((cfg["vocab_size"], H)),
            "pos": emb((cfg["max_position"], H)),
            "type": emb((cfg["type_vocab"], H)),
            "ln_g": f32((H,), 1.0), "ln_b": f32((H,)),
        },
        "layers": [],
        "pooler_w": wgt((H, H)),
        "pooler_b": f32((H,)),
    }
    for _ in range(cfg["num_layers"]):
        params["layers"].append({
            "wqkv": wgt((H, 3 * H)), "bqkv": f32((3 * H,)),   # fused Q|K|V
            "wo": wgt((H, H)), "bo": f32((H,)),
            "ln1_g": f32((H,), 1.0), "ln1_b": f32((H,)),
            "w1": wgt((H, I)), "b1": f32((I,)),
            "w2": wgt((I, H)), "b2": f32((H,)),
            "ln2_g": f32((H,), 1.0), "ln2_b": f32((H,)),
        })
    # per-label nn.Linear(H, n_classes) heads, packed along the out dim and
    # zero-padded up to a 128-lane multiple (lane-dense, unmasked stores)
    total = sum(num_labels_dict[l] for l in ALL_LABELS)
    total_pad = _round_up(total, 128)
    cls_w = 0.02 * jax.random.normal(next(keys), (H, total), dtype=jnp.float32)
    params["cls_w"] = jnp.pad(cls_w, ((0, 0), (0, total_pad - total))
                              ).astype(jnp.bfloat16)
    params["cls_b"] = f32((total_pad,))
    return params


# --------------- forward (BERT encoder + pooler + label heads) ---------------

def bert_multilabel_forward(params, input_ids, attention_mask, cfg,
                            num_labels_dict):
    B, S = input_ids.shape
    H = cfg["hidden_size"]
    nH = cfg["num_heads"]
    Sp = _round_up(S, 16)           # bf16 sublane packing; CLS row unaffected

    emb = params["embeddings"]
    # embedding gather + adds: XLA glue (token_type_ids default to zeros in
    # the reference module -> type-embedding row 0).
    x = (jnp.take(emb["word"], input_ids, axis=0)
         + emb["pos"][None, :S, :]
         + emb["type"][0][None, None, :]).astype(jnp.float32)     # (B, S, H)
    mask = attention_mask.astype(jnp.float32)
    if Sp != S:
        x = jnp.pad(x, ((0, 0), (0, Sp - S), (0, 0)))
        mask = jnp.pad(mask, ((0, 0), (0, Sp - S)))
    # additive mask bias, computed once (padded keys masked out too)
    bias = (1.0 - mask).reshape(B, 1, Sp) * (-1e9)

    x = layernorm(x, emb["ln_g"], emb["ln_b"])                    # bf16

    for layer in params["layers"]:
        q, k, v = qkv_projection(x, layer["wqkv"], layer["bqkv"], nH)
        ctx = flash_attention(q, k, v, bias)                      # (B,nH,Sp,hd)
        x = attn_out_residual_layernorm(ctx, layer["wo"], layer["bo"], x,
                                        layer["ln1_g"], layer["ln1_b"])
        x = ffn_residual_layernorm(x, layer["w1"], layer["b1"],
                                   layer["w2"], layer["b2"],
                                   layer["ln2_g"], layer["ln2_b"])

    cls = x[:, 0, :]                                              # (B, H) bf16
    # outputs[1] == pooler output: tanh(Linear(CLS)); dropout = identity.
    logits_all = pooler_classifier(cls, params["pooler_w"], params["pooler_b"],
                                   params["cls_w"], params["cls_b"])
    logits = {}
    off = 0
    for label in ALL_LABELS:
        n = num_labels_dict[label]
        logits[label] = logits_all[:, off:off + n]
        off += n
    return logits


# ------------------------------- main -------------------------------

if __name__ == "__main__":
    cfg = dict(hidden_size=32, num_heads=2, num_layers=2, intermediate_size=64,
               vocab_size=100, max_position=16, type_vocab=2)
    num_labels_dict = {label: 2 for label in ALL_LABELS}

    key = jax.random.PRNGKey(0)
    pkey, ikey = jax.random.split(key)
    params = init_params(pkey, cfg, num_labels_dict)

    B, S = 2, 8
    input_ids = jax.random.randint(ikey, (B, S), 0, cfg["vocab_size"],
                                   dtype=jnp.int32)
    attention_mask = jnp.ones((B, S), jnp.int32)

    fwd = jax.jit(lambda p, ids, m: bert_multilabel_forward(
        p, ids, m, cfg, num_labels_dict))
    logits = jax.block_until_ready(fwd(params, input_ids, attention_mask))

    # sanity: one (B, num_classes) logit tensor per label
    assert set(logits.keys()) == set(ALL_LABELS)
    for label in ALL_LABELS:
        assert logits[label].shape == (B, num_labels_dict[label])
        assert bool(jnp.all(jnp.isfinite(logits[label])))
    print("KERNEL_OK")
</pallas_src>

<mosaic_0001>
module attributes {stable_mosaic.version = 11 : i64} {
  func.func @_layernorm_kernel(%arg0: i32, %arg1: i32, %arg2: memref<1x16x32xf32, #tpu.memory_space<vmem>>, %arg3: memref<1x32xf32, #tpu.memory_space<vmem>>, %arg4: memref<1x32xf32, #tpu.memory_space<vmem>>, %arg5: memref<1x16x32xbf16, #tpu.memory_space<vmem>>) attributes {dimension_semantics = [#tpu.dimension_semantics<parallel>, #tpu.dimension_semantics<parallel>], iteration_bounds = array<i64: 2, 1>, scalar_prefetch = 0 : i64, scratch_operands = 0 : i64, tpu.core_type = #tpu.core_type<tc>, window_params = [{transform_indices = @transform_0, window_bounds = array<i64: 1, 16, 32>}, {pipeline_mode = #tpu.pipeline_mode<synchronous>, transform_indices = @transform_1, window_bounds = array<i64: 1, 32>}, {pipeline_mode = #tpu.pipeline_mode<synchronous>, transform_indices = @transform_2, window_bounds = array<i64: 1, 32>}, {transform_indices = @transform_3, window_bounds = array<i64: 1, 16, 32>}]} {
    %c0 = arith.constant 0 : index
    %c0_0 = arith.constant 0 : index
    %c0_1 = arith.constant 0 : index
    %0 = vector.load %arg2[%c0, %c0_0, %c0_1] : memref<1x16x32xf32, #tpu.memory_space<vmem>>, vector<1x16x32xf32>
    %1 = vector.shape_cast %0 : vector<1x16x32xf32> to vector<16x32xf32>
    %cst = arith.constant dense<0.000000e+00> : vector<16xf32>
    %2 = vector.multi_reduction <add>, %1, %cst [1] : vector<16x32xf32> to vector<16xf32>
    %3 = vector.shape_cast %2 : vector<16xf32> to vector<16x1xf32>
    %cst_2 = arith.constant 3.200000e+01 : f32
    %4 = vector.broadcast %cst_2 : f32 to vector<16x1xf32>
    %5 = arith.divf %3, %4 : vector<16x1xf32>
    %6 = vector.broadcast %5 : vector<16x1xf32> to vector<16x32xf32>
    %7 = arith.subf %1, %6 : vector<16x32xf32>
    %8 = arith.mulf %7, %7 : vector<16x32xf32>
    %cst_3 = arith.constant dense<0.000000e+00> : vector<16xf32>
    %9 = vector.multi_reduction <add>, %8, %cst_3 [1] : vector<16x32xf32> to vector<16xf32>
    %10 = vector.shape_cast %9 : vector<16xf32> to vector<16x1xf32>
    %cst_4 = arith.constant 3.200000e+01 : f32
    %11 = vector.broadcast %cst_4 : f32 to vector<16x1xf32>
    %12 = arith.divf %10, %11 : vector<16x1xf32>
    %cst_5 = arith.constant 9.99999996E-13 : f32
    %13 = vector.broadcast %cst_5 : f32 to vector<16x1xf32>
    %14 = arith.addf %12, %13 : vector<16x1xf32>
    %15 = math.rsqrt %14 : vector<16x1xf32>
    %16 = vector.broadcast %15 : vector<16x1xf32> to vector<16x32xf32>
    %17 = arith.mulf %7, %16 : vector<16x32xf32>
    %c0_6 = arith.constant 0 : index
    %c0_7 = arith.constant 0 : index
    %18 = vector.load %arg3[%c0_6, %c0_7] : memref<1x32xf32, #tpu.memory_space<vmem>>, vector<1x32xf32>
    %19 = vector.broadcast %18 : vector<1x32xf32> to vector<16x32xf32>
    %20 = arith.mulf %17, %19 : vector<16x32xf32>
    %c0_8 = arith.constant 0 : index
    %c0_9 = arith.constant 0 : index
    %21 = vector.load %arg4[%c0_8, %c0_9] : memref<1x32xf32, #tpu.memory_space<vmem>>, vector<1x32xf32>
    %22 = vector.broadcast %21 : vector<1x32xf32> to vector<16x32xf32>
    %23 = arith.addf %20, %22 : vector<16x32xf32>
    %24 = arith.truncf %23 : vector<16x32xf32> to vector<16x32xbf16>
    %c0_10 = arith.constant 0 : index
    %c0_11 = arith.constant 0 : index
    %c0_12 = arith.constant 0 : index
    %25 = vector.load %arg5[%c0_10, %c0_11, %c0_12] : memref<1x16x32xbf16, #tpu.memory_space<vmem>>, vector<1x16x32xbf16>
    %26 = vector.shape_cast %25 : vector<1x16x32xbf16> to vector<16x32xbf16>
    %27 = vector.shape_cast %24 : vector<16x32xbf16> to vector<1x16x32xbf16>
    tpu.vector_store %arg5[%c0_10, %c0_11, %c0_12], %27 {strides = array<i32>} : memref<1x16x32xbf16, #tpu.memory_space<vmem>>, vector<1x16x32xbf16>,
    return
  }
  func.func @transform_0(%arg0: i32, %arg1: i32) -> (i32, i32, i32) {
    %c0_i32 = arith.constant 0 : i32
    %c0_i32_0 = arith.constant 0 : i32
    return %arg0, %arg1, %c0_i32 : i32, i32, i32
  }
  func.func @transform_1(%arg0: i32, %arg1: i32) -> (i32, i32) {
    %c0_i32 = arith.constant 0 : i32
    %c0_i32_0 = arith.constant 0 : i32
    %c0_i32_1 = arith.constant 0 : i32
    return %c0_i32, %c0_i32_0 : i32, i32
  }
  func.func @transform_2(%arg0: i32, %arg1: i32) -> (i32, i32) {
    %c0_i32 = arith.constant 0 : i32
    %c0_i32_0 = arith.constant 0 : i32
    %c0_i32_1 = arith.constant 0 : i32
    return %c0_i32, %c0_i32_0 : i32, i32
  }
  func.func @transform_3(%arg0: i32, %arg1: i32) -> (i32, i32, i32) {
    %c0_i32 = arith.constant 0 : i32
    %c0_i32_0 = arith.constant 0 : i32
    return %arg0, %arg1, %c0_i32 : i32, i32, i32
  }
}

module attributes {stable_mosaic.version = 11 : i64} {
  func.func @_qkv_kernel(%arg0: i32, %arg1: i32, %arg2: memref<1x16x32xbf16, #tpu.memory_space<vmem>>, %arg3: memref<32x96xbf16, #tpu.memory_space<vmem>>, %arg4: memref<1x96xf32, #tpu.memory_space<vmem>>, %arg5: memref<1x2x16x16xbf16, #tpu.memory_space<vmem>>, %arg6: memref<1x2x16x16xbf16, #tpu.memory_space<vmem>>, %arg7: memref<1x2x16x16xbf16, #tpu.memory_space<vmem>>, %arg8: memref<16x96xf32, #tpu.memory_space<vmem>>) attributes {dimension_semantics = [#tpu.dimension_semantics<parallel>, #tpu.dimension_semantics<arbitrary>], iteration_bounds = array<i64: 2, 1>, scalar_prefetch = 0 : i64, scratch_operands = 1 : i64, tpu.core_type = #tpu.core_type<tc>, window_params = [{transform_indices = @transform_0, window_bounds = array<i64: 1, 16, 32>}, {transform_indices = @transform_1, window_bounds = array<i64: 32, 96>}, {pipeline_mode = #tpu.pipeline_mode<synchronous>, transform_indices = @transform_2, window_bounds = array<i64: 1, 96>}, {transform_indices = @transform_3, window_bounds = array<i64: 1, 2, 16, 16>}, {transform_indices = @transform_4, window_bounds = array<i64: 1, 2, 16, 16>}, {transform_indices = @transform_5, window_bounds = array<i64: 1, 2, 16, 16>}]} {
    %c0_i32 = arith.constant 0 : i32
    %0 = arith.cmpi eq, %arg1, %c0_i32 : i32
    %1 = arith.extui %0 : i1 to i32
    %c0_i32_0 = arith.constant 0 : i32
    %2 = arith.cmpi ne, %1, %c0_i32_0 : i32
    scf.if %2 {
      %cst_11 = arith.constant 0.000000e+00 : f32
      %13 = vector.broadcast %cst_11 : f32 to vector<16x96xf32>
      %c0_12 = arith.constant 0 : index
      %c0_13 = arith.constant 0 : index
      %14 = vector.load %arg8[%c0_12, %c0_13] : memref<16x96xf32, #tpu.memory_space<vmem>>, vector<16x96xf32>
      tpu.vector_store %arg8[%c0_12, %c0_13], %13 {strides = array<i32>} : memref<16x96xf32, #tpu.memory_space<vmem>>, vector<16x96xf32>,
    } else {
    }
    %c0 = arith.constant 0 : index
    %c0_1 = arith.constant 0 : index
    %3 = vector.load %arg8[%c0, %c0_1] : memref<16x96xf32, #tpu.memory_space<vmem>>, vector<16x96xf32>
    %c0_2 = arith.constant 0 : index
    %c0_3 = arith.constant 0 : index
    %c0_4 = arith.constant 0 : index
    %4 = vector.load %arg2[%c0_2, %c0_3, %c0_4] : memref<1x16x32xbf16, #tpu.memory_space<vmem>>, vector<1x16x32xbf16>
    %5 = vector.shape_cast %4 : vector<1x16x32xbf16> to vector<16x32xbf16>
    %c0_5 = arith.constant 0 : index
    %c0_6 = arith.constant 0 : index
    %6 = vector.load %arg3[%c0_5, %c0_6] : memref<32x96xbf16, #tpu.memory_space<vmem>>, vector<32x96xbf16>
    %cst = arith.constant dense<0.000000e+00> : vector<16x96xf32>
    %7 = tpu.matmul %5, %6, %cst {dimension_numbers = #tpu.dot_dimension_numbers<[1], [0], [0], [1], [0, 0, 1, 1], [], []>} : vector<16x32xbf16>, vector<32x96xbf16>, vector<16x96xf32> -> vector<16x96xf32>
    %8 = arith.addf %3, %7 : vector<16x96xf32>
    %c0_7 = arith.constant 0 : index
    %c0_8 = arith.constant 0 : index
    %9 = vector.load %arg8[%c0_7, %c0_8] : memref<16x96xf32, #tpu.memory_space<vmem>>, vector<16x96xf32>
    tpu.vector_store %arg8[%c0_7, %c0_8], %8 {strides = array<i32>} : memref<16x96xf32, #tpu.memory_space<vmem>>, vector<16x96xf32>,
    %c0_i32_9 = arith.constant 0 : i32
    %10 = arith.cmpi eq, %arg1, %c0_i32_9 : i32
    %11 = arith.extui %10 : i1 to i32
    %c0_i32_10 = arith.constant 0 : i32
    %12 = arith.cmpi ne, %11, %c0_i32_10 : i32
    scf.if %12 {
      %c0_11 = arith.constant 0 : index
      %c0_12 = arith.constant 0 : index
      %13 = vector.load %arg8[%c0_11, %c0_12] : memref<16x96xf32, #tpu.memory_space<vmem>>, vector<16x96xf32>
      %c0_13 = arith.constant 0 : index
      %c0_14 = arith.constant 0 : index
      %14 = vector.load %arg4[%c0_13, %c0_14] : memref<1x96xf32, #tpu.memory_space<vmem>>, vector<1x96xf32>
      %15 = vector.broadcast %14 : vector<1x96xf32> to vector<16x96xf32>
      %16 = arith.addf %13, %15 : vector<16x96xf32>
      %17 = vector.extract_strided_slice %16 {offsets = [0, 0], sizes = [16, 16], strides = [1, 1]} : vector<16x96xf32> to vector<16x16xf32>
      %cst_15 = arith.constant 2.500000e-01 : f32
      %18 = vector.broadcast %cst_15 : f32 to vector<16x16xf32>
      %19 = arith.mulf %17, %18 : vector<16x16xf32>
      %20 = arith.truncf %19 : vector<16x16xf32> to vector<16x16xbf16>
      %c0_16 = arith.constant 0 : index
      %c0_17 = arith.constant 0 : index
      %c0_18 = arith.constant 0 : index
      %c0_19 = arith.constant 0 : index
      %21 = vector.load %arg5[%c0_16, %c0_17, %c0_18, %c0_19] : memref<1x2x16x16xbf16, #tpu.memory_space<vmem>>, vector<1x1x16x16xbf16>
      %22 = vector.shape_cast %21 : vector<1x1x16x16xbf16> to vector<16x16xbf16>
      %23 = vector.shape_cast %20 : vector<16x16xbf16> to vector<1x1x16x16xbf16>
      tpu.vector_store %arg5[%c0_16, %c0_17, %c0_18, %c0_19], %23 {strides = array<i32>} : memref<1x2x16x16xbf16, #tpu.memory_space<vmem>>, vector<1x1x16x16xbf16>,
      %24 = vector.extract_strided_slice %16 {offsets = [0, 32], sizes = [16, 16], strides = [1, 1]} : vector<16x96xf32> to vector<16x16xf32>
      %25 = arith.truncf %24 : vector<16x16xf32> to vector<16x16xbf16>
      %c0_20 = arith.constant 0 : index
      %c0_21 = arith.constant 0 : index
      %c0_22 = arith.constant 0 : index
      %c0_23 = arith.constant 0 : index
      %26 = vector.load %arg6[%c0_20, %c0_21, %c0_22, %c0_23] : memref<1x2x16x16xbf16, #tpu.memory_space<vmem>>, vector<1x1x16x16xbf16>
      %27 = vector.shape_cast %26 : vector<1x1x16x16xbf16> to vector<16x16xbf16>
      %28 = vector.shape_cast %25 : vector<16x16xbf16> to vector<1x1x16x16xbf16>
      tpu.vector_store %arg6[%c0_20, %c0_21, %c0_22, %c0_23], %28 {strides = array<i32>} : memref<1x2x16x16xbf16, #tpu.memory_space<vmem>>, vector<1x1x16x16xbf16>,
      %29 = vector.extract_strided_slice %16 {offsets = [0, 64], sizes = [16, 16], strides = [1, 1]} : vector<16x96xf32> to vector<16x16xf32>
      %30 = arith.truncf %29 : vector<16x16xf32> to vector<16x16xbf16>
      %c0_24 = arith.constant 0 : index
      %c0_25 = arith.constant 0 : index
      %c0_26 = arith.constant 0 : index
      %c0_27 = arith.constant 0 : index
      %31 = vector.load %arg7[%c0_24, %c0_25, %c0_26, %c0_27] : memref<1x2x16x16xbf16, #tpu.memory_space<vmem>>, vector<1x1x16x16xbf16>
      %32 = vector.shape_cast %31 : vector<1x1x16x16xbf16> to vector<16x16xbf16>
      %33 = vector.shape_cast %30 : vector<16x16xbf16> to vector<1x1x16x16xbf16>
      tpu.vector_store %arg7[%c0_24, %c0_25, %c0_26, %c0_27], %33 {strides = array<i32>} : memref<1x2x16x16xbf16, #tpu.memory_space<vmem>>, vector<1x1x16x16xbf16>,
      %34 = vector.extract_strided_slice %16 {offsets = [0, 16], sizes = [16, 16], strides = [1, 1]} : vector<16x96xf32> to vector<16x16xf32>
      %cst_28 = arith.constant 2.500000e-01 : f32
      %35 = vector.broadcast %cst_28 : f32 to vector<16x16xf32>
      %36 = arith.mulf %34, %35 : vector<16x16xf32>
      %37 = arith.truncf %36 : vector<16x16xf32> to vector<16x16xbf16>
      %c0_29 = arith.constant 0 : index
      %c1 = arith.constant 1 : index
      %c0_30 = arith.constant 0 : index
      %c0_31 = arith.constant 0 : index
      %38 = vector.load %arg5[%c0_29, %c1, %c0_30, %c0_31] : memref<1x2x16x16xbf16, #tpu.memory_space<vmem>>, vector<1x1x16x16xbf16>
      %39 = vector.shape_cast %38 : vector<1x1x16x16xbf16> to vector<16x16xbf16>
      %40 = vector.shape_cast %37 : vector<16x16xbf16> to vector<1x1x16x16xbf16>
      tpu.vector_store %arg5[%c0_29, %c1, %c0_30, %c0_31], %40 {strides = array<i32>} : memref<1x2x16x16xbf16, #tpu.memory_space<vmem>>, vector<1x1x16x16xbf16>,
      %41 = vector.extract_strided_slice %16 {offsets = [0, 48], sizes = [16, 16], strides = [1, 1]} : vector<16x96xf32> to vector<16x16xf32>
      %42 = arith.truncf %41 : vector<16x16xf32> to vector<16x16xbf16>
      %c0_32 = arith.constant 0 : index
      %c1_33 = arith.constant 1 : index
      %c0_34 = arith.constant 0 : index
      %c0_35 = arith.constant 0 : index
      %43 = vector.load %arg6[%c0_32, %c1_33, %c0_34, %c0_35] : memref<1x2x16x16xbf16, #tpu.memory_space<vmem>>, vector<1x1x16x16xbf16>
      %44 = vector.shape_cast %43 : vector<1x1x16x16xbf16> to vector<16x16xbf16>
      %45 = vector.shape_cast %42 : vector<16x16xbf16> to vector<1x1x16x16xbf16>
      tpu.vector_store %arg6[%c0_32, %c1_33, %c0_34, %c0_35], %45 {strides = array<i32>} : memref<1x2x16x16xbf16, #tpu.memory_space<vmem>>, vector<1x1x16x16xbf16>,
      %46 = vector.extract_strided_slice %16 {offsets = [0, 80], sizes = [16, 16], strides = [1, 1]} : vector<16x96xf32> to vector<16x16xf32>
      %47 = arith.truncf %46 : vector<16x16xf32> to vector<16x16xbf16>
      %c0_36 = arith.constant 0 : index
      %c1_37 = arith.constant 1 : index
      %c0_38 = arith.constant 0 : index
      %c0_39 = arith.constant 0 : index
      %48 = vector.load %arg7[%c0_36, %c1_37, %c0_38, %c0_39] : memref<1x2x16x16xbf16, #tpu.memory_space<vmem>>, vector<1x1x16x16xbf16>
      %49 = vector.shape_cast %48 : vector<1x1x16x16xbf16> to vector<16x16xbf16>
      %50 = vector.shape_cast %47 : vector<16x16xbf16> to vector<1x1x16x16xbf16>
      tpu.vector_store %arg7[%c0_36, %c1_37, %c0_38, %c0_39], %50 {strides = array<i32>} : memref<1x2x16x16xbf16, #tpu.memory_space<vmem>>, vector<1x1x16x16xbf16>,
    } else {
    }
    return
  }
  func.func @transform_0(%arg0: i32, %arg1: i32) -> (i32, i32, i32) {
    %c0_i32 = arith.constant 0 : i32
    %c0_i32_0 = arith.constant 0 : i32
    return %arg0, %c0_i32, %arg1 : i32, i32, i32
  }
  func.func @transform_1(%arg0: i32, %arg1: i32) -> (i32, i32) {
    %c0_i32 = arith.constant 0 : i32
    %c0_i32_0 = arith.constant 0 : i32
    return %arg1, %c0_i32 : i32, i32
  }
  func.func @transform_2(%arg0: i32, %arg1: i32) -> (i32, i32) {
    %c0_i32 = arith.constant 0 : i32
    %c0_i32_0 = arith.constant 0 : i32
    %c0_i32_1 = arith.constant 0 : i32
    return %c0_i32, %c0_i32_0 : i32, i32
  }
  func.func @transform_3(%arg0: i32, %arg1: i32) -> (i32, i32, i32, i32) {
    %c0_i32 = arith.constant 0 : i32
    %c0_i32_0 = arith.constant 0 : i32
    %c0_i32_1 = arith.constant 0 : i32
    %c0_i32_2 = arith.constant 0 : i32
    return %arg0, %c0_i32, %c0_i32_0, %c0_i32_1 : i32, i32, i32, i32
  }
  func.func @transform_4(%arg0: i32, %arg1: i32) -> (i32, i32, i32, i32) {
    %c0_i32 = arith.constant 0 : i32
    %c0_i32_0 = arith.constant 0 : i32
    %c0_i32_1 = arith.constant 0 : i32
    %c0_i32_2 = arith.constant 0 : i32
    return %arg0, %c0_i32, %c0_i32_0, %c0_i32_1 : i32, i32, i32, i32
  }
  func.func @transform_5(%arg0: i32, %arg1: i32) -> (i32, i32, i32, i32) {
    %c0_i32 = arith.constant 0 : i32
    %c0_i32_0 = arith.constant 0 : i32
    %c0_i32_1 = arith.constant 0 : i32
    %c0_i32_2 = arith.constant 0 : i32
    return %arg0, %c0_i32, %c0_i32_0, %c0_i32_1 : i32, i32, i32, i32
  }
}

module attributes {stable_mosaic.version = 11 : i64} {
  func.func @_flash_attn_kernel(%arg0: i32, %arg1: i32, %arg2: i32, %arg3: i32, %arg4: memref<1x1x16x16xbf16, #tpu.memory_space<vmem>>, %arg5: memref<1x1x16x16xbf16, #tpu.memory_space<vmem>>, %arg6: memref<1x1x16x16xbf16, #tpu.memory_space<vmem>>, %arg7: memref<1x1x16xf32, #tpu.memory_space<vmem>>, %arg8: memref<1x1x16x16xbf16, #tpu.memory_space<vmem>>, %arg9: memref<16x1xf32, #tpu.memory_space<vmem>>, %arg10: memref<16x1xf32, #tpu.memory_space<vmem>>, %arg11: memref<16x16xf32, #tpu.memory_space<vmem>>) attributes {dimension_semantics = [#tpu.dimension_semantics<parallel>, #tpu.dimension_semantics<parallel>, #tpu.dimension_semantics<parallel>, #tpu.dimension_semantics<arbitrary>], iteration_bounds = array<i64: 2, 2, 1, 1>, scalar_prefetch = 0 : i64, scratch_operands = 3 : i64, tpu.core_type = #tpu.core_type<tc>, window_params = [{transform_indices = @transform_0, window_bounds = array<i64: 1, 1, 16, 16>}, {transform_indices = @transform_1, window_bounds = array<i64: 1, 1, 16, 16>}, {transform_indices = @transform_2, window_bounds = array<i64: 1, 1, 16, 16>}, {transform_indices = @transform_3, window_bounds = array<i64: 1, 1, 16>}, {transform_indices = @transform_4, window_bounds = array<i64: 1, 1, 16, 16>}]} {
    %c0_i32 = arith.constant 0 : i32
    %0 = arith.cmpi eq, %arg3, %c0_i32 : i32
    %1 = arith.extui %0 : i1 to i32
    %c0_i32_0 = arith.constant 0 : i32
    %2 = arith.cmpi ne, %1, %c0_i32_0 : i32
    scf.if %2 {
      %cst_32 = arith.constant -1.000000e+30 : f32
      %40 = vector.broadcast %cst_32 : f32 to vector<16x1xf32>
      %c0_33 = arith.constant 0 : index
      %c0_34 = arith.constant 0 : index
      %41 = vector.load %arg9[%c0_33, %c0_34] : memref<16x1xf32, #tpu.memory_space<vmem>>, vector<16x1xf32>
      tpu.vector_store %arg9[%c0_33, %c0_34], %40 {strides = array<i32>} : memref<16x1xf32, #tpu.memory_space<vmem>>, vector<16x1xf32>,
      %cst_35 = arith.constant 0.000000e+00 : f32
      %42 = vector.broadcast %cst_35 : f32 to vector<16x1xf32>
      %c0_36 = arith.constant 0 : index
      %c0_37 = arith.constant 0 : index
      %43 = vector.load %arg10[%c0_36, %c0_37] : memref<16x1xf32, #tpu.memory_space<vmem>>, vector<16x1xf32>
      tpu.vector_store %arg10[%c0_36, %c0_37], %42 {strides = array<i32>} : memref<16x1xf32, #tpu.memory_space<vmem>>, vector<16x1xf32>,
      %cst_38 = arith.constant 0.000000e+00 : f32
      %44 = vector.broadcast %cst_38 : f32 to vector<16x16xf32>
      %c0_39 = arith.constant 0 : index
      %c0_40 = arith.constant 0 : index
      %45 = vector.load %arg11[%c0_39, %c0_40] : memref<16x16xf32, #tpu.memory_space<vmem>>, vector<16x16xf32>
      tpu.vector_store %arg11[%c0_39, %c0_40], %44 {strides = array<i32>} : memref<16x16xf32, #tpu.memory_space<vmem>>, vector<16x16xf32>,
    } else {
    }
    %c0 = arith.constant 0 : index
    %c0_1 = arith.constant 0 : index
    %c0_2 = arith.constant 0 : index
    %c0_3 = arith.constant 0 : index
    %3 = vector.load %arg4[%c0, %c0_1, %c0_2, %c0_3] : memref<1x1x16x16xbf16, #tpu.memory_space<vmem>>, vector<1x1x16x16xbf16>
    %4 = vector.shape_cast %3 : vector<1x1x16x16xbf16> to vector<16x16xbf16>
    %c0_4 = arith.constant 0 : index
    %c0_5 = arith.constant 0 : index
    %c0_6 = arith.constant 0 : index
    %c0_7 = arith.constant 0 : index
    %5 = vector.load %arg5[%c0_4, %c0_5, %c0_6, %c0_7] : memref<1x1x16x16xbf16, #tpu.memory_space<vmem>>, vector<1x1x16x16xbf16>
    %6 = vector.shape_cast %5 : vector<1x1x16x16xbf16> to vector<16x16xbf16>
    %c0_8 = arith.constant 0 : index
    %c0_9 = arith.constant 0 : index
    %c0_10 = arith.constant 0 : index
    %c0_11 = arith.constant 0 : index
    %7 = vector.load %arg6[%c0_8, %c0_9, %c0_10, %c0_11] : memref<1x1x16x16xbf16, #tpu.memory_space<vmem>>, vector<1x1x16x16xbf16>
    %8 = vector.shape_cast %7 : vector<1x1x16x16xbf16> to vector<16x16xbf16>
    %c0_12 = arith.constant 0 : index
    %c0_13 = arith.constant 0 : index
    %c0_14 = arith.constant 0 : index
    %9 = vector.load %arg7[%c0_12, %c0_13, %c0_14] : memref<1x1x16xf32, #tpu.memory_space<vmem>>, vector<1x1x16xf32>
    %10 = vector.shape_cast %9 : vector<1x1x16xf32> to vector<1x16xf32>
    %cst = arith.constant dense<0.000000e+00> : vector<16x16xf32>
    %11 = tpu.matmul %4, %6, %cst {dimension_numbers = #tpu.dot_dimension_numbers<[1], [1], [0], [0], [0, 0, 1, 0], [], []>} : vector<16x16xbf16>, vector<16x16xbf16>, vector<16x16xf32> -> vector<16x16xf32>
    %12 = vector.broadcast %10 : vector<1x16xf32> to vector<16x16xf32>
    %13 = arith.addf %11, %12 : vector<16x16xf32>
    %c0_15 = arith.constant 0 : index
    %c0_16 = arith.constant 0 : index
    %14 = vector.load %arg9[%c0_15, %c0_16] : memref<16x1xf32, #tpu.memory_space<vmem>>, vector<16x1xf32>
    %cst_17 = arith.constant dense<0xFF800000> : vector<16xf32>
    %15 = vector.multi_reduction <maximumf>, %13, %cst_17 [1] : vector<16x16xf32> to vector<16xf32>
    %16 = vector.shape_cast %15 : vector<16xf32> to vector<16x1xf32>
    %17 = arith.maximumf %14, %16 : vector<16x1xf32>
    %18 = arith.subf %14, %17 : vector<16x1xf32>
    %19 = math.exp %18 : vector<16x1xf32>
    %20 = vector.broadcast %17 : vector<16x1xf32> to vector<16x16xf32>
    %21 = arith.subf %13, %20 : vector<16x16xf32>
    %22 = math.exp %21 : vector<16x16xf32>
    %c0_18 = arith.constant 0 : index
    %c0_19 = arith.constant 0 : index
    %23 = vector.load %arg10[%c0_18, %c0_19] : memref<16x1xf32, #tpu.memory_space<vmem>>, vector<16x1xf32>
    %24 = arith.mulf %19, %23 : vector<16x1xf32>
    %cst_20 = arith.constant dense<0.000000e+00> : vector<16xf32>
    %25 = vector.multi_reduction <add>, %22, %cst_20 [1] : vector<16x16xf32> to vector<16xf32>
    %26 = vector.shape_cast %25 : vector<16xf32> to vector<16x1xf32>
    %27 = arith.addf %24, %26 : vector<16x1xf32>
    %c0_21 = arith.constant 0 : index
    %c0_22 = arith.constant 0 : index
    %28 = vector.load %arg10[%c0_21, %c0_22] : memref<16x1xf32, #tpu.memory_space<vmem>>, vector<16x1xf32>
    tpu.vector_store %arg10[%c0_21, %c0_22], %27 {strides = array<i32>} : memref<16x1xf32, #tpu.memory_space<vmem>>, vector<16x1xf32>,
    %c0_23 = arith.constant 0 : index
    %c0_24 = arith.constant 0 : index
    %29 = vector.load %arg11[%c0_23, %c0_24] : memref<16x16xf32, #tpu.memory_space<vmem>>, vector<16x16xf32>
    %30 = vector.broadcast %19 : vector<16x1xf32> to vector<16x16xf32>
    %31 = arith.mulf %30, %29 : vector<16x16xf32>
    %32 = arith.truncf %22 : vector<16x16xf32> to vector<16x16xbf16>
    %cst_25 = arith.constant dense<0.000000e+00> : vector<16x16xf32>
    %33 = tpu.matmul %32, %8, %cst_25 {dimension_numbers = #tpu.dot_dimension_numbers<[1], [0], [0], [1], [0, 0, 1, 1], [], []>} : vector<16x16xbf16>, vector<16x16xbf16>, vector<16x16xf32> -> vector<16x16xf32>
    %34 = arith.addf %31, %33 : vector<16x16xf32>
    %c0_26 = arith.constant 0 : index
    %c0_27 = arith.constant 0 : index
    %35 = vector.load %arg11[%c0_26, %c0_27] : memref<16x16xf32, #tpu.memory_space<vmem>>, vector<16x16xf32>
    tpu.vector_store %arg11[%c0_26, %c0_27], %34 {strides = array<i32>} : memref<16x16xf32, #tpu.memory_space<vmem>>, vector<16x16xf32>,
    %c0_28 = arith.constant 0 : index
    %c0_29 = arith.constant 0 : index
    %36 = vector.load %arg9[%c0_28, %c0_29] : memref<16x1xf32, #tpu.memory_space<vmem>>, vector<16x1xf32>
    tpu.vector_store %arg9[%c0_28, %c0_29], %17 {strides = array<i32>} : memref<16x1xf32, #tpu.memory_space<vmem>>, vector<16x1xf32>,
    %c0_i32_30 = arith.constant 0 : i32
    %37 = arith.cmpi eq, %arg3, %c0_i32_30 : i32
    %38 = arith.extui %37 : i1 to i32
    %c0_i32_31 = arith.constant 0 : i32
    %39 = arith.cmpi ne, %38, %c0_i32_31 : i32
    scf.if %39 {
      %c0_32 = arith.constant 0 : index
      %c0_33 = arith.constant 0 : index
      %40 = vector.load %arg10[%c0_32, %c0_33] : memref<16x1xf32, #tpu.memory_space<vmem>>, vector<16x1xf32>
      %cst_34 = arith.constant 1.000000e-30 : f32
      %41 = vector.broadcast %cst_34 : f32 to vector<16x1xf32>
      %42 = arith.maximumf %40, %41 : vector<16x1xf32>
      %43 = tpu.reciprocal %42 {approx = true} : vector<16x1xf32> -> vector<16x1xf32>
      %c0_35 = arith.constant 0 : index
      %c0_36 = arith.constant 0 : index
      %44 = vector.load %arg11[%c0_35, %c0_36] : memref<16x16xf32, #tpu.memory_space<vmem>>, vector<16x16xf32>
      %45 = vector.broadcast %43 : vector<16x1xf32> to vector<16x16xf32>
      %46 = arith.mulf %44, %45 : vector<16x16xf32>
      %47 = arith.truncf %46 : vector<16x16xf32> to vector<16x16xbf16>
      %c0_37 = arith.constant 0 : index
      %c0_38 = arith.constant 0 : index
      %c0_39 = arith.constant 0 : index
      %c0_40 = arith.constant 0 : index
      %48 = vector.load %arg8[%c0_37, %c0_38, %c0_39, %c0_40] : memref<1x1x16x16xbf16, #tpu.memory_space<vmem>>, vector<1x1x16x16xbf16>
      %49 = vector.shape_cast %48 : vector<1x1x16x16xbf16> to vector<16x16xbf16>
      %50 = vector.shape_cast %47 : vector<16x16xbf16> to vector<1x1x16x16xbf16>
      tpu.vector_store %arg8[%c0_37, %c0_38, %c0_39, %c0_40], %50 {strides = array<i32>} : memref<1x1x16x16xbf16, #tpu.memory_space<vmem>>, vector<1x1x16x16xbf16>,
    } else {
    }
    return
  }
  func.func @transform_0(%arg0: i32, %arg1: i32, %arg2: i32, %arg3: i32) -> (i32, i32, i32, i32) {
    %c0_i32 = arith.constant 0 : i32
    %c0_i32_0 = arith.constant 0 : i32
    return %arg0, %arg1, %arg2, %c0_i32 : i32, i32, i32, i32
  }
  func.func @transform_1(%arg0: i32, %arg1: i32, %arg2: i32, %arg3: i32) -> (i32, i32, i32, i32) {
    %c0_i32 = arith.constant 0 : i32
    %c0_i32_0 = arith.constant 0 : i32
    return %arg0, %arg1, %arg3, %c0_i32 : i32, i32, i32, i32
  }
  func.func @transform_2(%arg0: i32, %arg1: i32, %arg2: i32, %arg3: i32) -> (i32, i32, i32, i32) {
    %c0_i32 = arith.constant 0 : i32
    %c0_i32_0 = arith.constant 0 : i32
    return %arg0, %arg1, %arg3, %c0_i32 : i32, i32, i32, i32
  }
  func.func @transform_3(%arg0: i32, %arg1: i32, %arg2: i32, %arg3: i32) -> (i32, i32, i32) {
    %c0_i32 = arith.constant 0 : i32
    %c0_i32_0 = arith.constant 0 : i32
    return %arg0, %c0_i32, %arg3 : i32, i32, i32
  }
  func.func @transform_4(%arg0: i32, %arg1: i32, %arg2: i32, %arg3: i32) -> (i32, i32, i32, i32) {
    %c0_i32 = arith.constant 0 : i32
    %c0_i32_0 = arith.constant 0 : i32
    return %arg0, %arg1, %arg2, %c0_i32 : i32, i32, i32, i32
  }
}

module attributes {stable_mosaic.version = 11 : i64} {
  func.func @_attn_out_res_ln_kernel(%arg0: i32, %arg1: i32, %arg2: memref<1x2x16x16xbf16, #tpu.memory_space<vmem>>, %arg3: memref<2x16x32xbf16, #tpu.memory_space<vmem>>, %arg4: memref<1x32xf32, #tpu.memory_space<vmem>>, %arg5: memref<1x16x32xbf16, #tpu.memory_space<vmem>>, %arg6: memref<1x32xf32, #tpu.memory_space<vmem>>, %arg7: memref<1x32xf32, #tpu.memory_space<vmem>>, %arg8: memref<1x16x32xbf16, #tpu.memory_space<vmem>>) attributes {dimension_semantics = [#tpu.dimension_semantics<parallel>, #tpu.dimension_semantics<parallel>], iteration_bounds = array<i64: 2, 1>, scalar_prefetch = 0 : i64, scratch_operands = 0 : i64, tpu.core_type = #tpu.core_type<tc>, window_params = [{transform_indices = @transform_0, window_bounds = array<i64: 1, 2, 16, 16>}, {pipeline_mode = #tpu.pipeline_mode<synchronous>, transform_indices = @transform_1, window_bounds = array<i64: 2, 16, 32>}, {pipeline_mode = #tpu.pipeline_mode<synchronous>, transform_indices = @transform_2, window_bounds = array<i64: 1, 32>}, {transform_indices = @transform_3, window_bounds = array<i64: 1, 16, 32>}, {pipeline_mode = #tpu.pipeline_mode<synchronous>, transform_indices = @transform_4, window_bounds = array<i64: 1, 32>}, {pipeline_mode = #tpu.pipeline_mode<synchronous>, transform_indices = @transform_5, window_bounds = array<i64: 1, 32>}, {transform_indices = @transform_6, window_bounds = array<i64: 1, 16, 32>}]} {
    %c0 = arith.constant 0 : index
    %c0_0 = arith.constant 0 : index
    %c0_1 = arith.constant 0 : index
    %c0_2 = arith.constant 0 : index
    %0 = vector.load %arg2[%c0, %c0_0, %c0_1, %c0_2] : memref<1x2x16x16xbf16, #tpu.memory_space<vmem>>, vector<1x1x16x16xbf16>
    %1 = vector.shape_cast %0 : vector<1x1x16x16xbf16> to vector<16x16xbf16>
    %c0_3 = arith.constant 0 : index
    %c0_4 = arith.constant 0 : index
    %c0_5 = arith.constant 0 : index
    %2 = vector.load %arg3[%c0_3, %c0_4, %c0_5] : memref<2x16x32xbf16, #tpu.memory_space<vmem>>, vector<1x16x32xbf16>
    %3 = vector.shape_cast %2 : vector<1x16x32xbf16> to vector<16x32xbf16>
    %cst = arith.constant dense<0.000000e+00> : vector<16x32xf32>
    %4 = tpu.matmul %1, %3, %cst {dimension_numbers = #tpu.dot_dimension_numbers<[1], [0], [0], [1], [0, 0, 1, 1], [], []>} : vector<16x16xbf16>, vector<16x32xbf16>, vector<16x32xf32> -> vector<16x32xf32>
    %c0_6 = arith.constant 0 : index
    %c1 = arith.constant 1 : index
    %c0_7 = arith.constant 0 : index
    %c0_8 = arith.constant 0 : index
    %5 = vector.load %arg2[%c0_6, %c1, %c0_7, %c0_8] : memref<1x2x16x16xbf16, #tpu.memory_space<vmem>>, vector<1x1x16x16xbf16>
    %6 = vector.shape_cast %5 : vector<1x1x16x16xbf16> to vector<16x16xbf16>
    %c1_9 = arith.constant 1 : index
    %c0_10 = arith.constant 0 : index
    %c0_11 = arith.constant 0 : index
    %7 = vector.load %arg3[%c1_9, %c0_10, %c0_11] : memref<2x16x32xbf16, #tpu.memory_space<vmem>>, vector<1x16x32xbf16>
    %8 = vector.shape_cast %7 : vector<1x16x32xbf16> to vector<16x32xbf16>
    %cst_12 = arith.constant dense<0.000000e+00> : vector<16x32xf32>
    %9 = tpu.matmul %6, %8, %cst_12 {dimension_numbers = #tpu.dot_dimension_numbers<[1], [0], [0], [1], [0, 0, 1, 1], [], []>} : vector<16x16xbf16>, vector<16x32xbf16>, vector<16x32xf32> -> vector<16x32xf32>
    %10 = arith.addf %4, %9 : vector<16x32xf32>
    %c0_13 = arith.constant 0 : index
    %c0_14 = arith.constant 0 : index
    %11 = vector.load %arg4[%c0_13, %c0_14] : memref<1x32xf32, #tpu.memory_space<vmem>>, vector<1x32xf32>
    %12 = vector.broadcast %11 : vector<1x32xf32> to vector<16x32xf32>
    %13 = arith.addf %10, %12 : vector<16x32xf32>
    %c0_15 = arith.constant 0 : index
    %c0_16 = arith.constant 0 : index
    %c0_17 = arith.constant 0 : index
    %14 = vector.load %arg5[%c0_15, %c0_16, %c0_17] : memref<1x16x32xbf16, #tpu.memory_space<vmem>>, vector<1x16x32xbf16>
    %15 = vector.shape_cast %14 : vector<1x16x32xbf16> to vector<16x32xbf16>
    %16 = arith.extf %15 : vector<16x32xbf16> to vector<16x32xf32>
    %17 = arith.addf %13, %16 : vector<16x32xf32>
    %cst_18 = arith.constant dense<0.000000e+00> : vector<16xf32>
    %18 = vector.multi_reduction <add>, %17, %cst_18 [1] : vector<16x32xf32> to vector<16xf32>
    %19 = vector.shape_cast %18 : vector<16xf32> to vector<16x1xf32>
    %cst_19 = arith.constant 3.200000e+01 : f32
    %20 = vector.broadcast %cst_19 : f32 to vector<16x1xf32>
    %21 = arith.divf %19, %20 : vector<16x1xf32>
    %22 = vector.broadcast %21 : vector<16x1xf32> to vector<16x32xf32>
    %23 = arith.subf %17, %22 : vector<16x32xf32>
    %24 = arith.mulf %23, %23 : vector<16x32xf32>
    %cst_20 = arith.constant dense<0.000000e+00> : vector<16xf32>
    %25 = vector.multi_reduction <add>, %24, %cst_20 [1] : vector<16x32xf32> to vector<16xf32>
    %26 = vector.shape_cast %25 : vector<16xf32> to vector<16x1xf32>
    %cst_21 = arith.constant 3.200000e+01 : f32
    %27 = vector.broadcast %cst_21 : f32 to vector<16x1xf32>
    %28 = arith.divf %26, %27 : vector<16x1xf32>
    %cst_22 = arith.constant 9.99999996E-13 : f32
    %29 = vector.broadcast %cst_22 : f32 to vector<16x1xf32>
    %30 = arith.addf %28, %29 : vector<16x1xf32>
    %31 = math.rsqrt %30 : vector<16x1xf32>
    %32 = vector.broadcast %31 : vector<16x1xf32> to vector<16x32xf32>
    %33 = arith.mulf %23, %32 : vector<16x32xf32>
    %c0_23 = arith.constant 0 : index
    %c0_24 = arith.constant 0 : index
    %34 = vector.load %arg6[%c0_23, %c0_24] : memref<1x32xf32, #tpu.memory_space<vmem>>, vector<1x32xf32>
    %35 = vector.broadcast %34 : vector<1x32xf32> to vector<16x32xf32>
    %36 = arith.mulf %33, %35 : vector<16x32xf32>
    %c0_25 = arith.constant 0 : index
    %c0_26 = arith.constant 0 : index
    %37 = vector.load %arg7[%c0_25, %c0_26] : memref<1x32xf32, #tpu.memory_space<vmem>>, vector<1x32xf32>
    %38 = vector.broadcast %37 : vector<1x32xf32> to vector<16x32xf32>
    %39 = arith.addf %36, %38 : vector<16x32xf32>
    %40 = arith.truncf %39 : vector<16x32xf32> to vector<16x32xbf16>
    %c0_27 = arith.constant 0 : index
    %c0_28 = arith.constant 0 : index
    %c0_29 = arith.constant 0 : index
    %41 = vector.load %arg8[%c0_27, %c0_28, %c0_29] : memref<1x16x32xbf16, #tpu.memory_space<vmem>>, vector<1x16x32xbf16>
    %42 = vector.shape_cast %41 : vector<1x16x32xbf16> to vector<16x32xbf16>
    %43 = vector.shape_cast %40 : vector<16x32xbf16> to vector<1x16x32xbf16>
    tpu.vector_store %arg8[%c0_27, %c0_28, %c0_29], %43 {strides = array<i32>} : memref<1x16x32xbf16, #tpu.memory_space<vmem>>, vector<1x16x32xbf16>,
    return
  }
  func.func @transform_0(%arg0: i32, %arg1: i32) -> (i32, i32, i32, i32) {
    %c0_i32 = arith.constant 0 : i32
    %c0_i32_0 = arith.constant 0 : i32
    %c0_i32_1 = arith.constant 0 : i32
    return %arg0, %c0_i32, %arg1, %c0_i32_0 : i32, i32, i32, i32
  }
  func.func @transform_1(%arg0: i32, %arg1: i32) -> (i32, i32, i32) {
    %c0_i32 = arith.constant 0 : i32
    %c0_i32_0 = arith.constant 0 : i32
    %c0_i32_1 = arith.constant 0 : i32
    %c0_i32_2 = arith.constant 0 : i32
    return %c0_i32, %c0_i32_0, %c0_i32_1 : i32, i32, i32
  }
  func.func @transform_2(%arg0: i32, %arg1: i32) -> (i32, i32) {
    %c0_i32 = arith.constant 0 : i32
    %c0_i32_0 = arith.constant 0 : i32
    %c0_i32_1 = arith.constant 0 : i32
    return %c0_i32, %c0_i32_0 : i32, i32
  }
  func.func @transform_3(%arg0: i32, %arg1: i32) -> (i32, i32, i32) {
    %c0_i32 = arith.constant 0 : i32
    %c0_i32_0 = arith.constant 0 : i32
    return %arg0, %arg1, %c0_i32 : i32, i32, i32
  }
  func.func @transform_4(%arg0: i32, %arg1: i32) -> (i32, i32) {
    %c0_i32 = arith.constant 0 : i32
    %c0_i32_0 = arith.constant 0 : i32
    %c0_i32_1 = arith.constant 0 : i32
    return %c0_i32, %c0_i32_0 : i32, i32
  }
  func.func @transform_5(%arg0: i32, %arg1: i32) -> (i32, i32) {
    %c0_i32 = arith.constant 0 : i32
    %c0_i32_0 = arith.constant 0 : i32
    %c0_i32_1 = arith.constant 0 : i32
    return %c0_i32, %c0_i32_0 : i32, i32
  }
  func.func @transform_6(%arg0: i32, %arg1: i32) -> (i32, i32, i32) {
    %c0_i32 = arith.constant 0 : i32
    %c0_i32_0 = arith.constant 0 : i32
    return %arg0, %arg1, %c0_i32 : i32, i32, i32
  }
}

module attributes {stable_mosaic.version = 11 : i64} {
  func.func @_ffn_res_ln_kernel(%arg0: i32, %arg1: i32, %arg2: i32, %arg3: memref<1x16x32xbf16, #tpu.memory_space<vmem>>, %arg4: memref<32x64xbf16, #tpu.memory_space<vmem>>, %arg5: memref<1x64xf32, #tpu.memory_space<vmem>>, %arg6: memref<64x32xbf16, #tpu.memory_space<vmem>>, %arg7: memref<1x32xf32, #tpu.memory_space<vmem>>, %arg8: memref<1x32xf32, #tpu.memory_space<vmem>>, %arg9: memref<1x32xf32, #tpu.memory_space<vmem>>, %arg10: memref<1x16x32xbf16, #tpu.memory_space<vmem>>, %arg11: memref<16x32xf32, #tpu.memory_space<vmem>>) attributes {dimension_semantics = [#tpu.dimension_semantics<parallel>, #tpu.dimension_semantics<parallel>, #tpu.dimension_semantics<arbitrary>], iteration_bounds = array<i64: 2, 1, 1>, scalar_prefetch = 0 : i64, scratch_operands = 1 : i64, tpu.core_type = #tpu.core_type<tc>, window_params = [{transform_indices = @transform_0, window_bounds = array<i64: 1, 16, 32>}, {transform_indices = @transform_1, window_bounds = array<i64: 32, 64>}, {transform_indices = @transform_2, window_bounds = array<i64: 1, 64>}, {transform_indices = @transform_3, window_bounds = array<i64: 64, 32>}, {pipeline_mode = #tpu.pipeline_mode<synchronous>, transform_indices = @transform_4, window_bounds = array<i64: 1, 32>}, {pipeline_mode = #tpu.pipeline_mode<synchronous>, transform_indices = @transform_5, window_bounds = array<i64: 1, 32>}, {pipeline_mode = #tpu.pipeline_mode<synchronous>, transform_indices = @transform_6, window_bounds = array<i64: 1, 32>}, {transform_indices = @transform_7, window_bounds = array<i64: 1, 16, 32>}]} {
    %c0_i32 = arith.constant 0 : i32
    %0 = arith.cmpi eq, %arg2, %c0_i32 : i32
    %1 = arith.extui %0 : i1 to i32
    %c0_i32_0 = arith.constant 0 : i32
    %2 = arith.cmpi ne, %1, %c0_i32_0 : i32
    scf.if %2 {
      %cst_20 = arith.constant 0.000000e+00 : f32
      %32 = vector.broadcast %cst_20 : f32 to vector<16x32xf32>
      %c0_21 = arith.constant 0 : index
      %c0_22 = arith.constant 0 : index
      %33 = vector.load %arg11[%c0_21, %c0_22] : memref<16x32xf32, #tpu.memory_space<vmem>>, vector<16x32xf32>
      tpu.vector_store %arg11[%c0_21, %c0_22], %32 {strides = array<i32>} : memref<16x32xf32, #tpu.memory_space<vmem>>, vector<16x32xf32>,
    } else {
    }
    %c0 = arith.constant 0 : index
    %c0_1 = arith.constant 0 : index
    %c0_2 = arith.constant 0 : index
    %3 = vector.load %arg3[%c0, %c0_1, %c0_2] : memref<1x16x32xbf16, #tpu.memory_space<vmem>>, vector<1x16x32xbf16>
    %4 = vector.shape_cast %3 : vector<1x16x32xbf16> to vector<16x32xbf16>
    %c0_3 = arith.constant 0 : index
    %c0_4 = arith.constant 0 : index
    %5 = vector.load %arg4[%c0_3, %c0_4] : memref<32x64xbf16, #tpu.memory_space<vmem>>, vector<32x64xbf16>
    %cst = arith.constant dense<0.000000e+00> : vector<16x64xf32>
    %6 = tpu.matmul %4, %5, %cst {dimension_numbers = #tpu.dot_dimension_numbers<[1], [0], [0], [1], [0, 0, 1, 1], [], []>} : vector<16x32xbf16>, vector<32x64xbf16>, vector<16x64xf32> -> vector<16x64xf32>
    %c0_5 = arith.constant 0 : index
    %c0_6 = arith.constant 0 : index
    %7 = vector.load %arg5[%c0_5, %c0_6] : memref<1x64xf32, #tpu.memory_space<vmem>>, vector<1x64xf32>
    %8 = vector.broadcast %7 : vector<1x64xf32> to vector<16x64xf32>
    %9 = arith.addf %6, %8 : vector<16x64xf32>
    %cst_7 = arith.constant 5.000000e-01 : f32
    %10 = vector.broadcast %cst_7 : f32 to vector<16x64xf32>
    %11 = arith.mulf %10, %9 : vector<16x64xf32>
    %cst_8 = arith.constant 4.471500e-02 : f32
    %12 = vector.broadcast %cst_8 : f32 to vector<16x64xf32>
    %13 = arith.mulf %12, %9 : vector<16x64xf32>
    %14 = arith.mulf %13, %9 : vector<16x64xf32>
    %15 = arith.mulf %14, %9 : vector<16x64xf32>
    %16 = arith.addf %9, %15 : vector<16x64xf32>
    %cst_9 = arith.constant 0.797884583 : f32
    %17 = vector.broadcast %cst_9 : f32 to vector<16x64xf32>
    %18 = arith.mulf %17, %16 : vector<16x64xf32>
    %19 = math.tanh %18 : vector<16x64xf32>
    %cst_10 = arith.constant 1.000000e+00 : f32
    %20 = vector.broadcast %cst_10 : f32 to vector<16x64xf32>
    %21 = arith.addf %20, %19 : vector<16x64xf32>
    %22 = arith.mulf %11, %21 : vector<16x64xf32>
    %c0_11 = arith.constant 0 : index
    %c0_12 = arith.constant 0 : index
    %23 = vector.load %arg11[%c0_11, %c0_12] : memref<16x32xf32, #tpu.memory_space<vmem>>, vector<16x32xf32>
    %24 = arith.truncf %22 : vector<16x64xf32> to vector<16x64xbf16>
    %c0_13 = arith.constant 0 : index
    %c0_14 = arith.constant 0 : index
    %25 = vector.load %arg6[%c0_13, %c0_14] : memref<64x32xbf16, #tpu.memory_space<vmem>>, vector<64x32xbf16>
    %cst_15 = arith.constant dense<0.000000e+00> : vector<16x32xf32>
    %26 = tpu.matmul %24, %25, %cst_15 {dimension_numbers = #tpu.dot_dimension_numbers<[1], [0], [0], [1], [0, 0, 1, 1], [], []>} : vector<16x64xbf16>, vector<64x32xbf16>, vector<16x32xf32> -> vector<16x32xf32>
    %27 = arith.addf %23, %26 : vector<16x32xf32>
    %c0_16 = arith.constant 0 : index
    %c0_17 = arith.constant 0 : index
    %28 = vector.load %arg11[%c0_16, %c0_17] : memref<16x32xf32, #tpu.memory_space<vmem>>, vector<16x32xf32>
    tpu.vector_store %arg11[%c0_16, %c0_17], %27 {strides = array<i32>} : memref<16x32xf32, #tpu.memory_space<vmem>>, vector<16x32xf32>,
    %c0_i32_18 = arith.constant 0 : i32
    %29 = arith.cmpi eq, %arg2, %c0_i32_18 : i32
    %30 = arith.extui %29 : i1 to i32
    %c0_i32_19 = arith.constant 0 : i32
    %31 = arith.cmpi ne, %30, %c0_i32_19 : i32
    scf.if %31 {
      %c0_20 = arith.constant 0 : index
      %c0_21 = arith.constant 0 : index
      %32 = vector.load %arg11[%c0_20, %c0_21] : memref<16x32xf32, #tpu.memory_space<vmem>>, vector<16x32xf32>
      %c0_22 = arith.constant 0 : index
      %c0_23 = arith.constant 0 : index
      %33 = vector.load %arg7[%c0_22, %c0_23] : memref<1x32xf32, #tpu.memory_space<vmem>>, vector<1x32xf32>
      %34 = vector.broadcast %33 : vector<1x32xf32> to vector<16x32xf32>
      %35 = arith.addf %32, %34 : vector<16x32xf32>
      %c0_24 = arith.constant 0 : index
      %c0_25 = arith.constant 0 : index
      %c0_26 = arith.constant 0 : index
      %36 = vector.load %arg3[%c0_24, %c0_25, %c0_26] : memref<1x16x32xbf16, #tpu.memory_space<vmem>>, vector<1x16x32xbf16>
      %37 = vector.shape_cast %36 : vector<1x16x32xbf16> to vector<16x32xbf16>
      %38 = arith.extf %37 : vector<16x32xbf16> to vector<16x32xf32>
      %39 = arith.addf %35, %38 : vector<16x32xf32>
      %cst_27 = arith.constant dense<0.000000e+00> : vector<16xf32>
      %40 = vector.multi_reduction <add>, %39, %cst_27 [1] : vector<16x32xf32> to vector<16xf32>
      %41 = vector.shape_cast %40 : vector<16xf32> to vector<16x1xf32>
      %cst_28 = arith.constant 3.200000e+01 : f32
      %42 = vector.broadcast %cst_28 : f32 to vector<16x1xf32>
      %43 = arith.divf %41, %42 : vector<16x1xf32>
      %44 = vector.broadcast %43 : vector<16x1xf32> to vector<16x32xf32>
      %45 = arith.subf %39, %44 : vector<16x32xf32>
      %46 = arith.mulf %45, %45 : vector<16x32xf32>
      %cst_29 = arith.constant dense<0.000000e+00> : vector<16xf32>
      %47 = vector.multi_reduction <add>, %46, %cst_29 [1] : vector<16x32xf32> to vector<16xf32>
      %48 = vector.shape_cast %47 : vector<16xf32> to vector<16x1xf32>
      %cst_30 = arith.constant 3.200000e+01 : f32
      %49 = vector.broadcast %cst_30 : f32 to vector<16x1xf32>
      %50 = arith.divf %48, %49 : vector<16x1xf32>
      %cst_31 = arith.constant 9.99999996E-13 : f32
      %51 = vector.broadcast %cst_31 : f32 to vector<16x1xf32>
      %52 = arith.addf %50, %51 : vector<16x1xf32>
      %53 = math.rsqrt %52 : vector<16x1xf32>
      %54 = vector.broadcast %53 : vector<16x1xf32> to vector<16x32xf32>
      %55 = arith.mulf %45, %54 : vector<16x32xf32>
      %c0_32 = arith.constant 0 : index
      %c0_33 = arith.constant 0 : index
      %56 = vector.load %arg8[%c0_32, %c0_33] : memref<1x32xf32, #tpu.memory_space<vmem>>, vector<1x32xf32>
      %57 = vector.broadcast %56 : vector<1x32xf32> to vector<16x32xf32>
      %58 = arith.mulf %55, %57 : vector<16x32xf32>
      %c0_34 = arith.constant 0 : index
      %c0_35 = arith.constant 0 : index
      %59 = vector.load %arg9[%c0_34, %c0_35] : memref<1x32xf32, #tpu.memory_space<vmem>>, vector<1x32xf32>
      %60 = vector.broadcast %59 : vector<1x32xf32> to vector<16x32xf32>
      %61 = arith.addf %58, %60 : vector<16x32xf32>
      %62 = arith.truncf %61 : vector<16x32xf32> to vector<16x32xbf16>
      %c0_36 = arith.constant 0 : index
      %c0_37 = arith.constant 0 : index
      %c0_38 = arith.constant 0 : index
      %63 = vector.load %arg10[%c0_36, %c0_37, %c0_38] : memref<1x16x32xbf16, #tpu.memory_space<vmem>>, vector<1x16x32xbf16>
      %64 = vector.shape_cast %63 : vector<1x16x32xbf16> to vector<16x32xbf16>
      %65 = vector.shape_cast %62 : vector<16x32xbf16> to vector<1x16x32xbf16>
      tpu.vector_store %arg10[%c0_36, %c0_37, %c0_38], %65 {strides = array<i32>} : memref<1x16x32xbf16, #tpu.memory_space<vmem>>, vector<1x16x32xbf16>,
    } else {
    }
    return
  }
  func.func @transform_0(%arg0: i32, %arg1: i32, %arg2: i32) -> (i32, i32, i32) {
    %c0_i32 = arith.constant 0 : i32
    %c0_i32_0 = arith.constant 0 : i32
    return %arg0, %arg1, %c0_i32 : i32, i32, i32
  }
  func.func @transform_1(%arg0: i32, %arg1: i32, %arg2: i32) -> (i32, i32) {
    %c0_i32 = arith.constant 0 : i32
    %c0_i32_0 = arith.constant 0 : i32
    return %c0_i32, %arg2 : i32, i32
  }
  func.func @transform_2(%arg0: i32, %arg1: i32, %arg2: i32) -> (i32, i32) {
    %c0_i32 = arith.constant 0 : i32
    %c0_i32_0 = arith.constant 0 : i32
    return %c0_i32, %arg2 : i32, i32
  }
  func.func @transform_3(%arg0: i32, %arg1: i32, %arg2: i32) -> (i32, i32) {
    %c0_i32 = arith.constant 0 : i32
    %c0_i32_0 = arith.constant 0 : i32
    return %arg2, %c0_i32 : i32, i32
  }
  func.func @transform_4(%arg0: i32, %arg1: i32, %arg2: i32) -> (i32, i32) {
    %c0_i32 = arith.constant 0 : i32
    %c0_i32_0 = arith.constant 0 : i32
    %c0_i32_1 = arith.constant 0 : i32
    return %c0_i32, %c0_i32_0 : i32, i32
  }
  func.func @transform_5(%arg0: i32, %arg1: i32, %arg2: i32) -> (i32, i32) {
    %c0_i32 = arith.constant 0 : i32
    %c0_i32_0 = arith.constant 0 : i32
    %c0_i32_1 = arith.constant 0 : i32
    return %c0_i32, %c0_i32_0 : i32, i32
  }
  func.func @transform_6(%arg0: i32, %arg1: i32, %arg2: i32) -> (i32, i32) {
    %c0_i32 = arith.constant 0 : i32
    %c0_i32_0 = arith.constant 0 : i32
    %c0_i32_1 = arith.constant 0 : i32
    return %c0_i32, %c0_i32_0 : i32, i32
  }
  func.func @transform_7(%arg0: i32, %arg1: i32, %arg2: i32) -> (i32, i32, i32) {
    %c0_i32 = arith.constant 0 : i32
    %c0_i32_0 = arith.constant 0 : i32
    return %arg0, %arg1, %c0_i32 : i32, i32, i32
  }
}

module attributes {stable_mosaic.version = 11 : i64} {
  func.func @_pool_cls_kernel(%arg0: i32, %arg1: memref<8x32xbf16, #tpu.memory_space<vmem>>, %arg2: memref<32x32xbf16, #tpu.memory_space<vmem>>, %arg3: memref<1x32xf32, #tpu.memory_space<vmem>>, %arg4: memref<32x128xbf16, #tpu.memory_space<vmem>>, %arg5: memref<1x128xf32, #tpu.memory_space<vmem>>, %arg6: memref<8x128xf32, #tpu.memory_space<vmem>>) attributes {dimension_semantics = [#tpu.dimension_semantics<arbitrary>], iteration_bounds = array<i64: 1>, scalar_prefetch = 0 : i64, scratch_operands = 0 : i64, tpu.core_type = #tpu.core_type<tc>, window_params = [{pipeline_mode = #tpu.pipeline_mode<synchronous>, transform_indices = @transform_0, window_bounds = array<i64: 8, 32>}, {pipeline_mode = #tpu.pipeline_mode<synchronous>, transform_indices = @transform_1, window_bounds = array<i64: 32, 32>}, {pipeline_mode = #tpu.pipeline_mode<synchronous>, transform_indices = @transform_2, window_bounds = array<i64: 1, 32>}, {pipeline_mode = #tpu.pipeline_mode<synchronous>, transform_indices = @transform_3, window_bounds = array<i64: 32, 128>}, {pipeline_mode = #tpu.pipeline_mode<synchronous>, transform_indices = @transform_4, window_bounds = array<i64: 1, 128>}, {pipeline_mode = #tpu.pipeline_mode<synchronous>, transform_indices = @transform_5, window_bounds = array<i64: 8, 128>}]} {
    %c0 = arith.constant 0 : index
    %c0_0 = arith.constant 0 : index
    %0 = vector.load %arg1[%c0, %c0_0] : memref<8x32xbf16, #tpu.memory_space<vmem>>, vector<8x32xbf16>
    %c0_1 = arith.constant 0 : index
    %c0_2 = arith.constant 0 : index
    %1 = vector.load %arg2[%c0_1, %c0_2] : memref<32x32xbf16, #tpu.memory_space<vmem>>, vector<32x32xbf16>
    %cst = arith.constant dense<0.000000e+00> : vector<8x32xf32>
    %2 = tpu.matmul %0, %1, %cst {dimension_numbers = #tpu.dot_dimension_numbers<[1], [0], [0], [1], [0, 0, 1, 1], [], []>} : vector<8x32xbf16>, vector<32x32xbf16>, vector<8x32xf32> -> vector<8x32xf32>
    %c0_3 = arith.constant 0 : index
    %c0_4 = arith.constant 0 : index
    %3 = vector.load %arg3[%c0_3, %c0_4] : memref<1x32xf32, #tpu.memory_space<vmem>>, vector<1x32xf32>
    %4 = vector.broadcast %3 : vector<1x32xf32> to vector<8x32xf32>
    %5 = arith.addf %2, %4 : vector<8x32xf32>
    %6 = math.tanh %5 : vector<8x32xf32>
    %7 = arith.truncf %6 : vector<8x32xf32> to vector<8x32xbf16>
    %c0_5 = arith.constant 0 : index
    %c0_6 = arith.constant 0 : index
    %8 = vector.load %arg4[%c0_5, %c0_6] : memref<32x128xbf16, #tpu.memory_space<vmem>>, vector<32x128xbf16>
    %cst_7 = arith.constant dense<0.000000e+00> : vector<8x128xf32>
    %9 = tpu.matmul %7, %8, %cst_7 {dimension_numbers = #tpu.dot_dimension_numbers<[1], [0], [0], [1], [0, 0, 1, 1], [], []>} : vector<8x32xbf16>, vector<32x128xbf16>, vector<8x128xf32> -> vector<8x128xf32>
    %c0_8 = arith.constant 0 : index
    %c0_9 = arith.constant 0 : index
    %10 = vector.load %arg5[%c0_8, %c0_9] : memref<1x128xf32, #tpu.memory_space<vmem>>, vector<1x128xf32>
    %11 = vector.broadcast %10 : vector<1x128xf32> to vector<8x128xf32>
    %12 = arith.addf %9, %11 : vector<8x128xf32>
    %c0_10 = arith.constant 0 : index
    %c0_11 = arith.constant 0 : index
    %13 = vector.load %arg6[%c0_10, %c0_11] : memref<8x128xf32, #tpu.memory_space<vmem>>, vector<8x128xf32>
    tpu.vector_store %arg6[%c0_10, %c0_11], %12 {strides = array<i32>} : memref<8x128xf32, #tpu.memory_space<vmem>>, vector<8x128xf32>,
    return
  }
  func.func @transform_0(%arg0: i32) -> (i32, i32) {
    %c0_i32 = arith.constant 0 : i32
    %c0_i32_0 = arith.constant 0 : i32
    %c0_i32_1 = arith.constant 0 : i32
    return %c0_i32, %c0_i32_0 : i32, i32
  }
  func.func @transform_1(%arg0: i32) -> (i32, i32) {
    %c0_i32 = arith.constant 0 : i32
    %c0_i32_0 = arith.constant 0 : i32
    %c0_i32_1 = arith.constant 0 : i32
    return %c0_i32, %c0_i32_0 : i32, i32
  }
  func.func @transform_2(%arg0: i32) -> (i32, i32) {
    %c0_i32 = arith.constant 0 : i32
    %c0_i32_0 = arith.constant 0 : i32
    %c0_i32_1 = arith.constant 0 : i32
    return %c0_i32, %c0_i32_0 : i32, i32
  }
  func.func @transform_3(%arg0: i32) -> (i32, i32) {
    %c0_i32 = arith.constant 0 : i32
    %c0_i32_0 = arith.constant 0 : i32
    %c0_i32_1 = arith.constant 0 : i32
    return %c0_i32, %c0_i32_0 : i32, i32
  }
  func.func @transform_4(%arg0: i32) -> (i32, i32) {
    %c0_i32 = arith.constant 0 : i32
    %c0_i32_0 = arith.constant 0 : i32
    %c0_i32_1 = arith.constant 0 : i32
    return %c0_i32, %c0_i32_0 : i32, i32
  }
  func.func @transform_5(%arg0: i32) -> (i32, i32) {
    %c0_i32 = arith.constant 0 : i32
    %c0_i32_0 = arith.constant 0 : i32
    %c0_i32_1 = arith.constant 0 : i32
    return %c0_i32, %c0_i32_0 : i32, i32
  }
}

</mosaic_0001>

<bundles_post_ra>
// kernel: _lambda_.10
= control target key start
LH: loop header
LB: loop body
LE: loop exit
PB: predicated region body
PF: predicated region fallthrough
CT: control target
= control target key end

     0   :  { %8 = vsyncpa [#allocation3], 0  ;;  %s989_s0 = inlined_call_operand.hbm [shape: f32[2,16,32], index: 0, kind: input, shape index: {}]   ;;  %s990_s1 = inlined_call_operand.hbm [shape: f32[1,32], index: 1, kind: input, shape index: {}]   ;;  %s991_s2 = inlined_call_operand.hbm [shape: f32[1,32], index: 2, kind: input, shape index: {}]   ;;  %s992_s3 = inlined_call_operand.hbm [shape: bf16[2,16,32], index: 3, kind: output, shape index: {}]  }
   0x1   :  { %10 = vsyncpa [#allocation3 + $0x1], 0 }
   0x2   :  { %11 = vsyncpa [#allocation6], 0 }
   0x3   :  { %12 = vsyncpa [#allocation4], 0 }
   0x4   :  { %14 = vsyncpa [#allocation4 + $0x1], 0  ;;  %s735_s12 = smov 0   ;;  %s737_s13 = smov 0  }
   0x5   :  { %s739_s14 = smov 0   ;;  %s741_s15 = smov 0  }
   0x6   :  { %s743_s16 = smov 0   ;;  %s745_s17 = smov 0  }
   0x7 LB: > { %s415_s18 = sadd.s32 4294967295, %s705_s17   ;;  %s416_s19 = sadd.s32 4294967294, %s705_s17   ;;  %s705_s17 = sphi %s745_s17, %s20_s17   ;;  %s701_s16 = sphi %s743_s16, %s1018_s16   ;;  %s697_s15 = sphi %s741_s15, %s1017_s15   ;;  %s693_s14 = sphi %s739_s14, %s1016_s14   ;;  %s689_s13 = sphi %s737_s13, %s1015_s13   ;;  %s685_s12 = sphi %s735_s12, %s1014_s12  }
   0x8   : > { %s41_s20 = sadd.s32 1, %s693_s14  ;;  %p48_p0 = scmp.ne.s32.totalorder %s693_s14, %s689_s13 }
   0x9   : > { %p49_p1 = scmp.eq.s32.totalorder %s705_s17, 0  ;;  %p54_p2 = scmp.ne.s32.totalorder %s689_s13, %s685_s12 }
   0xa   : > { %p773_p3 = scmp.eq.s32.totalorder %s415_s18, 0  ;;  %p122_p4 = scmp.eq.s32.totalorder %s415_s18, 1 }
   0xb   : > { %p777_p5 = por %p49_p1, %p48_p0  ;;  %p128_p6 = scmp.eq.s32.totalorder %s416_s19, 1 }
   0xc   : > { %s999_s21 = scalar_select %p773_p3, 1, 0 }
   0xd   : > { %p783_p7 = por %p773_p3, %p54_p2  ;;  %p787_p8 = por %p122_p4, %p48_p0 }
   0xe   : > { %p791_p9 = por %p128_p6, %p54_p2  ;;  %p417_p10 = scmp.ge.s32.totalorder %s705_s17, 1 }
   0xf   : > { %s1001_s23 = scalar_select %p783_p7, 1, 0 }
  0x10   : > { %s1002_s24 = scalar_select %p787_p8, 1, 0 }
  0x11   : > { %s1003_s25 = scalar_select %p791_p9, 1, 0 }
  0x12   : > { %p135_p11 = scmp.lt.s32.totalorder %s705_s17, 3  ;;  %s707_s27 = smov [#allocation5]  }
  0x13   : > { %s148_s28 = sshll.u32 %s707_s27, 4  ;;  %p471_p1 = scmp.lt.s32.totalorder %s705_s17, 2  ;;  %s149_s28 = int_to_ptr.vmem [resolvable:$true] %s148_s28 }
  0x14   : > { %p798_p13 = pnand %p417_p10, %p135_p11  ;;  %s708_s30 = smov [#allocation7]  }
  0x15   : > { %p807_p4 = pnand %p471_p1, %p777_p5  ;;  %s159_s4 = sshll.u32 %s708_s30, 4  ;;  %s817_s4 = int_to_ptr.vmem [resolvable:$true] %s159_s4 }
  0x16   : > { %s1004_s26 = scalar_select %p798_p13, 1, 0 }
  0x17   : > { %p454_p0 = pneg %p798_p13  ;;  %s533_s8 = scalar_lea.hbm %s990_s1, 16 }
  0x18   : > { %s1005_s29 = scalar_select %p807_p4, 1, 0 }
  0x19   : > { %p813_p2 = pnand %p454_p0, %p773_p3  ;;  %p534_p5 = scmp.ne.s32.totalorder %s990_s1, %s533_s8 }
  0x1a   : > { %p540_p1 = scmp.lt.u32.totalorder %s533_s8, %s990_s1 }
  0x1b   : > { %p535_p6 = pneg %p813_p2 }
  0x1d   : > { %p536_p10 = pnand %p535_p6, %p534_p5 }
  0x1f   : > { %p537_p11 = pneg %p536_p10 }
  0x21   : > { %p542_p0 = pnand %p540_p1, %p537_p11 }
  0x23   : > { %545 = shalt.err (!%p542_p0)
}
  0x24   : > { %s546_s19 = scalar_lea.vmem %s149_s28, 16  ;;  %s553_s22 = scalar_lea.vmem %s149_s28, 32 }
  0x25   : > { %p547_p12 = scmp.ne.s32.totalorder %s149_s28, %s546_s19  ;;  %p554_p3 = scmp.lt.s32.totalorder %s149_s28, %s149_s28 }
  0x26   : > { %p555_p7 = scmp.lt.s32.totalorder %s553_s22, %s546_s19 }
  0x27   : > { %p549_p9 = pnand %p547_p12, %p535_p6 }
  0x28   : > { %p556_p13 = por %p555_p7, %p554_p3 }
  0x29   : > { %p550_p8 = pneg %p549_p9 }
  0x2b   : > { %p557_p4 = pnand %p556_p13, %p550_p8 }
  0x2d   : > { %560 = shalt.err (!%p557_p4)
}
  0x2e   : > { %457 = dma.hbm_to_vmem [thread:$0]  (!%p813_p2), %s990_s1, 16, %s149_s28, [#allocation6]  }
  0x2f   : > { %s561_s8 = scalar_lea.hbm %s991_s2, 16 }
  0x30   : > { %p562_p9 = scmp.ne.s32.totalorder %s991_s2, %s561_s8  ;;  %p568_p8 = scmp.lt.u32.totalorder %s561_s8, %s991_s2 }
  0x32   : > { %p564_p3 = pnand %p562_p9, %p535_p6 }
  0x34   : > { %p565_p7 = pneg %p564_p3 }
  0x36   : > { %p570_p12 = pnand %p568_p8, %p565_p7 }
  0x38   : > { %573 = shalt.err (!%p570_p12)
}
  0x39   : > { %s574_s28 = scalar_lea.vmem %s817_s4, 16  ;;  %s581_s19 = scalar_lea.vmem %s817_s4, 32 }
  0x3a   : > { %p575_p13 = scmp.ne.s32.totalorder %s817_s4, %s574_s28  ;;  %p582_p10 = scmp.lt.s32.totalorder %s817_s4, %s817_s4 }
  0x3b   : > { %p583_p11 = scmp.lt.s32.totalorder %s581_s19, %s574_s28 }
  0x3c   : > { %p577_p4 = pnand %p575_p13, %p535_p6 }
  0x3d   : > { %p584_p1 = por %p583_p11, %p582_p10 }
  0x3e   : > { %p578_p5 = pneg %p577_p4 }
  0x40   : > { %p585_p0 = pnand %p584_p1, %p578_p5 }
  0x42   : > { %588 = shalt.err (!%p585_p0)
}
  0x43   : > { %460 = dma.hbm_to_vmem [thread:$0]  (!%p813_p2), %s991_s2, 16, %s817_s4, [#allocation6]  }
  0x44   : > { %s32_s30 = sadd.s32 1, %s701_s16  ;;  %s170_s6 = sand.u32 1, %s693_s14  }
  0x45   : > { %p34_p6 = scmp.ge.s32.totalorder %s32_s30, 2  ;;  %s421_s7 = sshll.u32 %s170_s6, 4 }
  0x46   : > { %s438_s8 = sshll.u32 %s701_s16, 8  ;;  %s174_s4 = scalar_lea.vmem [#allocation2], %s421_s7 }
  0x47   : > { %s1020_s30 = smov (%p34_p6, %s32_s30), 0  ;;  %s875_s10 = scalar_lea.hbm %s989_s0, %s438_s8 }
  0x48   : > { %s36_s11 = ssub.s32 %s701_s16, %s1020_s30  ;;  %s183_s18 = sshll.u32 %s174_s4, 4  ;;  %s879_s18 = int_to_ptr.vmem [resolvable:$true] %s183_s18 }
  0x49   : > { %p39_p2 = scmp.eq.s32.totalorder %s36_s11, 0  ;;  %s886_s19 = scalar_lea.sflag [#allocation3], %s170_s6 }
  0x4a   : > { %s589_s22 = scalar_lea.hbm %s875_s10, 256  ;;  %p1007_p3 = scmp.ne.s32.totalorder %s1005_s29, 0 }
  0x4b   : > { %s884_s28 = scalar_select %p39_p2, %s693_s14, %s41_s20  }
  0x4c   : > { %p590_p9 = scmp.ne.s32.totalorder %s875_s10, %s589_s22  ;;  %p591_p7 = pneg %p1007_p3 }
  0x4d   : > { %s594_s7 = scalar_lea.hbm %s989_s0, 512  ;;  %p595_p13 = scmp.lt.u32.totalorder %s875_s10, %s989_s0 }
  0x4e   : > { %p592_p8 = pnand %p591_p7, %p590_p9  ;;  %p596_p4 = scmp.lt.u32.totalorder %s594_s7, %s589_s22 }
  0x4f   : > { %p598_p10 = scmp.lt.u32.totalorder %s589_s22, %s875_s10 }
  0x50   : > { %p593_p12 = pneg %p592_p8  ;;  %p597_p5 = por %p596_p4, %p595_p13 }
  0x52   : > { %p599_p11 = por %p598_p10, %p597_p5 }
  0x54   : > { %p600_p1 = pnand %p599_p11, %p593_p12 }
  0x56   : > { %603 = shalt.err (!%p600_p1)
}
  0x57   : > { %s604_s20 = scalar_lea.vmem %s879_s18, 256  ;;  %s709_s6 = smov [#allocation2]  }
  0x58   : > { %p605_p0 = scmp.ne.s32.totalorder %s879_s18, %s604_s20  ;;  %s609_s11 = sshll.u32 %s709_s6, 4  ;;  %s610_s11 = int_to_ptr.vmem [resolvable:$false] %s609_s11 }
  0x59   : > { %s611_s4 = scalar_lea.vmem %s610_s11, 512  ;;  %p612_p9 = scmp.lt.s32.totalorder %s879_s18, %s610_s11 }
  0x5a   : > { %p607_p6 = pnand %p605_p0, %p591_p7  ;;  %p613_p8 = scmp.lt.s32.totalorder %s611_s4, %s604_s20 }
  0x5c   : > { %p608_p2 = pneg %p607_p6  ;;  %p614_p13 = por %p613_p8, %p612_p9 }
  0x5e   : > { %p615_p4 = pnand %p614_p13, %p608_p2 }
  0x60   : > { %618 = shalt.err (!%p615_p4)
}
  0x61   : > { %s710_s22 = smov 128   ;;  %s711_s27 = smov 8  }
  0x62   : > { %464 = dma.hbm_to_vmem [thread:$0]  (!%p1007_p3), %s875_s10, 256, %s879_s18, %s886_s19, %s710_s22, %s710_s22, %s711_s27  }
  0x63   : > { %p1008_p7 = scmp.ne.s32.totalorder %s1004_s26, 0 }
  0x64   : > { %s917_s8 = sand.u32 (!%p1008_p7), 1, %s689_s13   ;;  %p1009_p12 = scmp.ne.s32.totalorder (!%p1008_p7), %s1001_s23, 0 }
  0x65   : > { %195 = sbr.rel (%p1008_p7) target bundleno = 447 (0x1bf), region = 32  ;;  %s425_s7 = sshll.u32 (!%p1008_p7), %s917_s8, 4 }
  0x66   : > { %s198_s5 = scalar_lea.sflag (!%p1008_p7), [#allocation3], %s917_s8  ;;  %s201_s9 = scalar_lea.vmem (!%p1008_p7), [#allocation2], %s425_s7 }
  0x6c   : > { %672 = dma.done.wait (%p1009_p12), %s198_s5, 256  }
  0x6d   : > { %674 = vsyncadd (%p1009_p12), %s198_s5, 4294967040  ;;  %p1010_p5 = scmp.ne.s32.totalorder %s999_s21, 0 }
  0x6f   : > { %676 = dma.done.wait (%p1010_p5), [#allocation6], 32  }
  0x70   : > { %678 = vsyncadd (%p1010_p5), [#allocation6], 4294967264  ;;  %vm236_vm0 = vcmask 261120   ;;  %v234_v0 = vld [vmem:[%s201_s9] sm:$0xff]  ;;  %v235_v1 = vld [vmem:[%s201_s9 + $0x8] sm:$0xff]  ;;  %s428_s21 = sshll.u32 %s917_s8, 3 }
  0x71   : > { %v237_v2 = vsel %vm236_vm0, %v234_v0, 0.0  ;;  %v240_v3 = vsel %vm236_vm0, %v235_v1, 0.0  ;;  %v429_v21 = vld [vmem:[#allocation5] ss:$0 sm:$0xff]  ;;  %v430_v23 = vld [vmem:[#allocation7] ss:$0 sm:$0xff] }
  0x72   : > { %238 = vadd.xlane.f32.xlu0 %v237_v2  ;;  %vm290_vm1 = vcmask 257024   ;;  %s441_s23 = sshll.u32 %s697_s15, 7  ;;  %s231_s26 = scalar_lea.vmem [#allocation8], %s428_s21 }
  0x73   : > { %s309_s29 = sshll.u32 %s231_s26, 4  ;;  %s938_s19 = scalar_lea.hbm %s992_s3, %s441_s23  ;;  %s940_s29 = int_to_ptr.vmem [resolvable:$true] %s309_s29 }
  0x74   : > { %s294_s20 = scalar_lea.sflag [#allocation4], %s917_s8  ;;  %s619_s6 = scalar_lea.vmem %s940_s29, 128 }
  0x75   : > { %p620_p3 = scmp.ne.s32.totalorder %s940_s29, %s619_s6  ;;  %p1011_p10 = scmp.ne.s32.totalorder %s1002_s24, 0 }
  0x76   : > { %241 = vadd.xlane.f32.xlu0 %v240_v3  ;;  %s712_s15 = smov [#allocation8]  }
  0x77   : > { %p621_p11 = pnand %p620_p3, %p1011_p10  ;;  %s623_s11 = sshll.u32 %s712_s15, 4  ;;  %s624_s11 = int_to_ptr.vmem [resolvable:$false] %s623_s11 }
  0x78   : > { %s625_s4 = scalar_lea.vmem %s624_s11, 256  ;;  %p626_p0 = scmp.lt.s32.totalorder %s940_s29, %s624_s11 }
  0x79   : > { %p622_p1 = pneg %p621_p11  ;;  %p627_p6 = scmp.lt.s32.totalorder %s625_s4, %s619_s6 }
  0x7b   : > { %p628_p2 = por %p627_p6, %p626_p0 }
  0x7d   : > { %p629_p9 = pnand %p628_p2, %p622_p1 }
  0xff   : > { %v239_v4 = vpop.xlane.xlu0 %238 }
 0x100   : > { %v244_v5 = vmul.f32 0.03125, %v239_v4 }
 0x102   : > { %v246_v6 = vsub.f32 %v234_v0, %v244_v5 }
 0x103   : > { %v242_v7 = vpop.xlane.xlu0 %241 }
 0x104   : > { %v245_v8 = vmul.f32 0.03125, %v242_v7  ;;  %v248_v9 = vmul.f32 %v246_v6, %v246_v6 }
 0x106   : > { %v247_v10 = vsub.f32 %v235_v1, %v245_v8  ;;  %v250_v11 = vsel %vm236_vm0, %v248_v9, 0.0 }
 0x107   : > { %251 = vadd.xlane.f32.xlu1 %v250_v11 }
 0x108   : > { %v249_v12 = vmul.f32 %v247_v10, %v247_v10 }
 0x10a   : > { %v253_v13 = vsel %vm236_vm0, %v249_v12, 0.0 }
 0x10b   : > { %254 = vadd.xlane.f32.xlu1 %v253_v13 }
 0x194   : > { %v252_v14 = vpop.xlane.xlu1 %251 }
 0x195   : > { %v256_v15 = vmul.f32 0.03125, %v252_v14 }
 0x197   : > { %v258_v16 = vadd.f32 1e-12, %v256_v15 }
 0x198   : > { %v255_v17 = vpop.xlane.xlu1 %254 }
 0x199   : > { %529 = vrsqrt.f32 %v258_v16  ;;  %v257_v18 = vmul.f32 0.03125, %v255_v17 }
 0x19b   : > { %v259_v19 = vadd.f32 1e-12, %v257_v18 }
 0x19d   : > { %531 = vrsqrt.f32 %v259_v19 }
 0x1a3   : > { %v530_v20 = vpop.eup %529 }
 0x1a4   : > { %v262_v22 = vmul.f32 %v530_v20, %v246_v6 }
 0x1a6   : > { %v271_v24 = vmul.f32 %v429_v21, %v262_v22 }
 0x1a7   : > { %v532_v25 = vpop.eup %531 }
 0x1a8   : > { %v280_v26 = vadd.f32 %v430_v23, %v271_v24  ;;  %v263_v27 = vmul.f32 %v532_v25, %v247_v10 }
 0x1aa   : > { %v439_v28 = vpack.c.bf16 %v280_v26, %v280_v26  ;;  %v272_v29 = vmul.f32 %v429_v21, %v263_v27 }
 0x1ac   : > { %v281_v30 = vadd.f32 %v430_v23, %v272_v29  ;;  %291 = vst.msk [vmem:[%s231_s26] sm:$0xf] %vm290_vm1, %v439_v28 }
 0x1ae   : > { %v440_v31 = vpack.c.bf16 %v281_v30, %v281_v30 }
 0x1b0   : > { %292 = vst.msk [vmem:[%s231_s26 + $0x4] sm:$0xf] %vm290_vm1, %v440_v31 }
 0x1b1   : > { %632 = shalt.err (!%p629_p9)
}
 0x1b2   : > { %s633_s22 = scalar_lea.hbm %s938_s19, 128  ;;  %s637_s5 = scalar_lea.hbm %s992_s3, 256 }
 0x1b3   : > { %p634_p8 = scmp.ne.s32.totalorder %s938_s19, %s633_s22  ;;  %p638_p7 = scmp.lt.u32.totalorder %s938_s19, %s992_s3 }
 0x1b4   : > { %p639_p12 = scmp.lt.u32.totalorder %s637_s5, %s633_s22  ;;  %p641_p3 = scmp.lt.u32.totalorder %s633_s22, %s938_s19 }
 0x1b5   : > { %p635_p13 = pnand %p634_p8, %p1011_p10 }
 0x1b6   : > { %p640_p5 = por %p639_p12, %p638_p7 }
 0x1b7   : > { %p636_p4 = pneg %p635_p13 }
 0x1b8   : > { %p642_p11 = por %p641_p3, %p640_p5 }
 0x1ba   : > { %p643_p1 = pnand %p642_p11, %p636_p4 }
 0x1bc   : > { %646 = shalt.err (!%p643_p1)
}
 0x1bd   : > { %s713_s23 = smov 64   ;;  %s714_s26 = smov 4  }
 0x1be   : > { %452 = dma.vmem_to_hbm [thread:$0]  (%p1011_p10), %s940_s29, 128, %s938_s19, %s294_s20, %s713_s23, %s713_s23, %s714_s26  }
 0x1bf PF: > { %s324_s10 = sand.u32 1, %s685_s12   ;;  %p1012_p0 = scmp.ne.s32.totalorder %s1003_s25, 0 }
 0x1c0   : > { %p1013_p6 = scmp.ge.s32.totalorder %s705_s17, 2  ;;  %s325_s18 = scalar_lea.sflag [#allocation4], %s324_s10 }
 0x1c2   : > { %p466_p2 = pnand %p1013_p6, %p1012_p0 }
 0x1c4   : > { %680 = dma.done.wait (!%p466_p2), %s325_s18, 128  }
 0x1c5   : > { %682 = vsyncadd (!%p466_p2), %s325_s18, 4294967168  ;;  %s20_s17 = sadd.s32 1, %s705_s17   ;;  %s1014_s12 = smov %s689_s13 }
 0x1c6   : > { %p17_p9 = scmp.ge.s32.totalorder %s20_s17, 4   ;;  %s1015_s13 = smov %s693_s14 }
 0x1c7   : > { %s1016_s14 = smov %s884_s28  ;;  %s1017_s15 = smov %s701_s16 }
 0x1c8   : > { %s1018_s16 = smov %s1020_s30  ;;  %19 = sbr.rel (!%p17_p9) target bundleno = 7 (0x7), region = 85 }
 0x1cf   :  { %330 = vsyncpa [#allocation3], 1 }
 0x1d0   :  { %332 = vsyncpa [#allocation3 + $0x1], 1 }
 0x1d1   :  { %333 = vsyncpa [#allocation6], 1 }
 0x1d2   :  { %334 = vsyncpa [#allocation4], 1 }
 0x1d3   :  { %336 = vsyncpa [#allocation4 + $0x1], 1 }

// kernel: _lambda_.11
= control target key start
LH: loop header
LB: loop body
LE: loop exit
PB: predicated region body
PF: predicated region fallthrough
CT: control target
= control target key end

     0   :  { %11 = vsyncpa [#allocation4], 0  ;;  %s1516_s0 = inlined_call_operand.hbm [shape: bf16[2,16,32], index: 0, kind: input, shape index: {}]   ;;  %s1517_s1 = inlined_call_operand.hbm [shape: bf16[32,96], index: 1, kind: input, shape index: {}]   ;;  %s1518_s2 = inlined_call_operand.hbm [shape: f32[1,96], index: 2, kind: input, shape index: {}]   ;;  %s1519_s3 = inlined_call_operand.hbm [shape: bf16[2,2,16,16], index: 3, kind: output, shape index: {0}]   ;;  %s1520_s4 = inlined_call_operand.hbm [shape: bf16[2,2,16,16], index: 4, kind: output, shape index: {1}]   ;;  %s1521_s5 = inlined_call_operand.hbm [shape: bf16[2,2,16,16], index: 5, kind: output, shape index: {2}]  }
   0x1   :  { %13 = vsyncpa [#allocation4 + $0x1], 0 }
   0x2   :  { %14 = vsyncpa [#allocation7], 0 }
   0x3   :  { %15 = vsyncpa [#allocation5], 0 }
   0x4   :  { %17 = vsyncpa [#allocation5 + $0x1], 0 }
   0x5   :  { %18 = vsyncpa [#allocation11], 0 }
   0x6   :  { %20 = vsyncpa [#allocation11 + $0x1], 0  ;;  %s1139_s18 = smov 0   ;;  %s1141_s19 = smov 0  }
   0x7   :  { %s1143_s20 = smov 0   ;;  %s1145_s21 = smov 0  }
   0x8   :  { %s1147_s22 = smov 0   ;;  %s1149_s23 = smov 0  }
   0x9 LB: > { %s1170_s24 = sadd.s32 4294967295, %s1091_s23   ;;  %s1523_s25 = sadd.s32 4294967294, %s1091_s23   ;;  %s1091_s23 = sphi %s1149_s23, %s26_s23   ;;  %s1087_s22 = sphi %s1147_s22, %s1551_s22   ;;  %s1083_s21 = sphi %s1145_s21, %s1550_s21   ;;  %s1079_s20 = sphi %s1143_s20, %s1549_s20   ;;  %s1075_s19 = sphi %s1141_s19, %s1548_s19   ;;  %s1071_s18 = sphi %s1139_s18, %s1547_s18  }
   0xa   : > { %p60_p0 = scmp.ne.s32.totalorder %s1075_s19, %s1071_s18  ;;  %p1522_p1 = scmp.eq.s32.totalorder %s1170_s24, 0 }
   0xb   : > { %p137_p3 = scmp.eq.s32.totalorder %s1523_s25, 1  ;;  %p694_p5 = scmp.ge.s32.totalorder %s1091_s23, 1 }
   0xc   : > { %p1181_p4 = por %p1522_p1, %p60_p0  ;;  %p196_p7 = scmp.lt.s32.totalorder %s1091_s23, 3 }
   0xd   : > { %p1186_p6 = por %p137_p3, %p60_p0  ;;  %s1093_s29 = smov [#allocation6]  }
   0xe   : > { %s1529_s26 = scalar_select %p1181_p4, 1, 0 }
   0xf   : > { %s1530_s27 = scalar_select %p1186_p6, 1, 0 }
  0x10   : > { %p1191_p8 = pnand %p694_p5, %p196_p7  ;;  %s211_s30 = sshll.u32 %s1093_s29, 4  ;;  %s1195_s30 = int_to_ptr.vmem [resolvable:$true] %s211_s30 }
  0x11   : > { %s1094_s7 = smov [#allocation8]   ;;  %s859_s11 = scalar_lea.hbm %s1517_s1, 256 }
  0x12   : > { %p769_p9 = pneg %p1191_p8  ;;  %s225_s8 = sshll.u32 %s1094_s7, 4  ;;  %s1206_s8 = int_to_ptr.vmem [resolvable:$true] %s225_s8 }
  0x13   : > { %p860_p12 = scmp.ne.s32.totalorder %s1517_s1, %s859_s11  ;;  %p866_p5 = scmp.lt.u32.totalorder %s859_s11, %s1517_s1 }
  0x14   : > { %p1202_p11 = pnand %p769_p9, %p1522_p1 }
  0x16   : > { %p861_p13 = pneg %p1202_p11 }
  0x18   : > { %p862_p0 = pnand %p861_p13, %p860_p12 }
  0x1a   : > { %p863_p3 = pneg %p862_p0 }
  0x1c   : > { %p868_p7 = pnand %p866_p5, %p863_p3 }
  0x1e   : > { %871 = shalt.err (!%p868_p7)
}
  0x1f   : > { %s872_s16 = scalar_lea.vmem %s1195_s30, 256  ;;  %p880_p2 = scmp.lt.s32.totalorder %s1195_s30, %s1195_s30 }
  0x20   : > { %p873_p9 = scmp.ne.s32.totalorder %s1195_s30, %s872_s16  ;;  %p881_p12 = scmp.lt.s32.totalorder %s872_s16, %s872_s16 }
  0x22   : > { %p875_p10 = pnand %p873_p9, %p861_p13  ;;  %p882_p0 = por %p881_p12, %p880_p2 }
  0x24   : > { %p876_p1 = pneg %p875_p10 }
  0x26   : > { %p883_p6 = pnand %p882_p0, %p876_p1 }
  0x28   : > { %886 = shalt.err (!%p883_p6)
}
  0x29   : > { %s1524_s17 = smov 64   ;;  %s1096_s29 = smov 4  }
  0x2a   : > { %772 = dma.hbm_to_vmem [thread:$0]  (!%p1202_p11), %s1517_s1, 256, %s1195_s30, [#allocation7], %s1524_s17, %s1524_s17, %s1096_s29  }
  0x2b   : > { %s887_s12 = scalar_lea.hbm %s1518_s2, 16 }
  0x2c   : > { %p888_p1 = scmp.ne.s32.totalorder %s1518_s2, %s887_s12  ;;  %p894_p10 = scmp.lt.u32.totalorder %s887_s12, %s1518_s2 }
  0x2e   : > { %p890_p2 = pnand %p888_p1, %p861_p13 }
  0x30   : > { %p891_p6 = pneg %p890_p2 }
  0x32   : > { %p896_p3 = pnand %p894_p10, %p891_p6 }
  0x34   : > { %899 = shalt.err (!%p896_p3)
}
  0x35   : > { %s900_s30 = scalar_lea.vmem %s1206_s8, 16  ;;  %s907_s7 = scalar_lea.vmem %s1206_s8, 32 }
  0x36   : > { %p901_p5 = scmp.ne.s32.totalorder %s1206_s8, %s900_s30  ;;  %p908_p12 = scmp.lt.s32.totalorder %s1206_s8, %s1206_s8 }
  0x37   : > { %p909_p0 = scmp.lt.s32.totalorder %s907_s7, %s900_s30 }
  0x38   : > { %p903_p7 = pnand %p901_p5, %p861_p13 }
  0x39   : > { %p910_p1 = por %p909_p0, %p908_p12 }
  0x3a   : > { %p904_p9 = pneg %p903_p7 }
  0x3c   : > { %p911_p2 = pnand %p910_p1, %p904_p9 }
  0x3e   : > { %914 = shalt.err (!%p911_p2)
}
  0x3f   : > { %775 = dma.hbm_to_vmem [thread:$0]  (!%p1202_p11), %s1518_s2, 16, %s1206_s8, [#allocation7]  }
  0x40   : > { %s38_s11 = sadd.s32 1, %s1087_s22  ;;  %s47_s12 = sadd.s32 1, %s1079_s20 }
  0x41   : > { %p40_p13 = scmp.ge.s32.totalorder %s38_s11, 2  ;;  %p54_p6 = scmp.ne.s32.totalorder %s1079_s20, %s1075_s19 }
  0x42   : > { %p55_p10 = scmp.eq.s32.totalorder %s1091_s23, 0  ;;  %p792_p3 = scmp.lt.s32.totalorder %s1091_s23, 2 }
  0x43   : > { %s1553_s11 = smov (%p40_p13, %s38_s11), 0  ;;  %p1533_p7 = scmp.eq.s32.totalorder %s1170_s24, 1 }
  0x44   : > { %p56_p5 = por %p55_p10, %p54_p6  ;;  %s42_s13 = ssub.s32 %s1087_s22, %s1553_s11 }
  0x45   : > { %p1274_p9 = por %p1533_p7, %p54_p6  ;;  %s236_s14 = sand.u32 1, %s1079_s20  }
  0x46   : > { %p45_p12 = scmp.eq.s32.totalorder %s42_s13, 0  ;;  %s698_s8 = sshll.u32 %s236_s14, 3 }
  0x47   : > { %s1534_s6 = scalar_select %p1274_p9, 1, 0 }
  0x48   : > { %s734_s15 = sshll.u32 %s1087_s22, 7  ;;  %s240_s10 = scalar_lea.vmem [#allocation3], %s698_s8 }
  0x49   : > { %s1283_s16 = scalar_select %p45_p12, %s1079_s20, %s47_s12  }
  0x4a   : > { %s1288_s9 = scalar_lea.hbm %s1516_s0, %s734_s15  ;;  %s248_s25 = sshll.u32 %s240_s10, 4  ;;  %s1296_s25 = int_to_ptr.vmem [resolvable:$true] %s248_s25 }
  0x4b   : > { %p1292_p11 = pnand %p792_p3, %p56_p5  ;;  %s1298_s12 = scalar_lea.sflag [#allocation4], %s236_s14 }
  0x4c   : > { %s915_s13 = scalar_lea.hbm %s1288_s9, 128  ;;  %s920_s30 = scalar_lea.hbm %s1516_s0, 256 }
  0x4d   : > { %p916_p0 = scmp.ne.s32.totalorder %s1288_s9, %s915_s13  ;;  %p917_p1 = pneg %p1292_p11 }
  0x4e   : > { %p921_p6 = scmp.lt.u32.totalorder %s1288_s9, %s1516_s0  ;;  %p922_p10 = scmp.lt.u32.totalorder %s920_s30, %s915_s13 }
  0x4f   : > { %p918_p2 = pnand %p917_p1, %p916_p0  ;;  %p924_p5 = scmp.lt.u32.totalorder %s915_s13, %s1288_s9 }
  0x50   : > { %p923_p3 = por %p922_p10, %p921_p6 }
  0x51   : > { %p919_p13 = pneg %p918_p2 }
  0x52   : > { %p925_p7 = por %p924_p5, %p923_p3 }
  0x54   : > { %p926_p12 = pnand %p925_p7, %p919_p13 }
  0x56   : > { %929 = shalt.err (!%p926_p12)
}
  0x57   : > { %s930_s14 = scalar_lea.vmem %s1296_s25, 128  ;;  %s1097_s8 = smov [#allocation3]  }
  0x58   : > { %p931_p0 = scmp.ne.s32.totalorder %s1296_s25, %s930_s14  ;;  %s935_s15 = sshll.u32 %s1097_s8, 4  ;;  %s936_s15 = int_to_ptr.vmem [resolvable:$false] %s935_s15 }
  0x59   : > { %s937_s7 = scalar_lea.vmem %s936_s15, 256  ;;  %p938_p4 = scmp.lt.s32.totalorder %s1296_s25, %s936_s15 }
  0x5a   : > { %p933_p2 = pnand %p931_p0, %p917_p1  ;;  %p939_p6 = scmp.lt.s32.totalorder %s937_s7, %s930_s14 }
  0x5c   : > { %p934_p9 = pneg %p933_p2  ;;  %p940_p10 = por %p939_p6, %p938_p4 }
  0x5e   : > { %p941_p3 = pnand %p940_p10, %p934_p9 }
  0x60   : > { %944 = shalt.err (!%p941_p3)
}
  0x61   : > { %s1536_s13 = smov 64   ;;  %260 = sbr.rel (%p1191_p8) target bundleno = 528 (0x210), region = 32 }
  0x62   : > { %779 = dma.hbm_to_vmem [thread:$0]  (!%p1292_p11), %s1288_s9, 128, %s1296_s25, %s1298_s12, %s1536_s13, %s1536_s13, %s1096_s29  }
  0x63   : > { %s1332_s30 = sand.u32 (!%p1191_p8), 1, %s1075_s19   ;;  %p1537_p4 = scmp.ne.s32.totalorder (!%p1191_p8), %s1529_s26, 0 }
  0x64   : > { %s702_s10 = sshll.u32 (!%p1191_p8), %s1332_s30, 3  ;;  %s263_s14 = scalar_lea.sflag (!%p1191_p8), [#allocation4], %s1332_s30 }
  0x65   : > { %s266_s8 = scalar_lea.vmem (!%p1191_p8), [#allocation3], %s702_s10 }
  0x68   : > { %1054 = dma.done.wait (%p1537_p4), %s263_s14, 128  }
  0x69   : > { %1056 = vsyncadd (%p1537_p4), %s263_s14, 4294967168  ;;  %p1538_p9 = scmp.eq.s32.totalorder %s1170_s24, 0 }
  0x6b   : > { %1058 = dma.done.wait (%p1538_p9), [#allocation7], 272   ;;  %p1539_p11 = pmov %p1538_p9 }
  0x6c   : > { %vm317_vm0 = vcmask 785408   ;;  %v1098_v0 = vmov 0.0   ;;  %vm1099_vm1 = vmmov 0   ;;  %v856_v1 = vld [vmem:[#allocation6] sm:$0xff]   ;;  %v857_v2 = vld [vmem:[#allocation6 + $0x8] sm:$0xff]   ;;  %v858_v3 = vld [vmem:[%s266_s8] sm:$0xff]  }
  0x6d   : > { %1060 = vsyncadd (%p1539_p11), [#allocation7], 4294967024  ;;  %318 = vst.msk [vmem:[#allocation2] sm:$0xff] %vm317_vm0, %v1098_v0  ;;  %745 = vmatprep.subr.bf16.mxu0 %v1098_v0  ;;  %749 = vmatprep.mubr.msk.bf16.mxu0 %vm1099_vm1, %v1098_v0  ;;  %vm345_vm2 = vcmask 261120   ;;  %v712_v12 = vld [vmem:[#allocation8] ss:$0 sm:$0xff] }
  0x6e   : > { %319 = vst.msk [vmem:[#allocation2 + $0x8] sm:$0xff] %vm317_vm0, %v1098_v0  ;;  %746 = vmatpush3.bf16.msra.mxu0 %v856_v1  ;;  %s1349_s25 = sshll.u32 %s1332_s30, 4  ;;  %vm419_vm3 = vcmask 125952   ;;  %s1100_s26 = smov 80  }
  0x6f   : > { %747 = vmatprep.subr.bf16.mxu0 %v1098_v0  ;;  %s1101_s28 = smov 96   ;;  %s1352_s17 = scalar_lea.vmem [#allocation9], %s1349_s25 }
  0x70   : > { %s1527_s29 = smov 64   ;;  %s1103_s9 = smov 112  }
  0x71   : > { %s1104_s12 = smov 48   ;;  %s303_s15 = scalar_lea.vmem [#allocation10], %s1349_s25 }
  0x72   : > { %748 = vmatpush3.bf16.msra.mxu0 %v857_v2  ;;  %s511_s7 = sshll.u32 %s303_s15, 4  ;;  %s476_s13 = sand.u32 1, %s1170_s24   ;;  %s1367_s7 = int_to_ptr.vmem [resolvable:$true] %s511_s7 }
  0x73   : > { %s1365_s10 = sshll.u32 %s1083_s21, 8  ;;  %s1371_s14 = scalar_lea.vmem [#allocation12], %s1349_s25 }
  0x74   : > { %v320_v4 = vld [vmem:[#allocation2] sm:$0xff]  ;;  %s495_s8 = sshll.u32 %s1352_s17, 4  ;;  %s1380_s21 = scalar_lea.hbm %s1520_s4, %s1365_s10  ;;  %s1385_s8 = int_to_ptr.vmem [resolvable:$true] %s495_s8 }
  0x75   : > { %750 = vmatmul.mubr.msk.bf16.vlgmr.msra.gmra.mrb[0].mxu0 %vm345_vm2, %v858_v3  ;;  %v321_v6 = vld [vmem:[#allocation2 + $0x8] sm:$0xff]  ;;  %s1387_s25 = scalar_lea.sflag [#allocation11], %s476_s13  ;;  %p1540_p1 = scmp.ne.s32.totalorder %s1534_s6, 0 }
 0x148   : > { %v383_v5 = vpop.f32.mrb[0].mxu0 }
 0x149   : > { %v390_v7 = vadd.f32 %v383_v5, %v320_v4  ;;  %v751_v8 = vpop.f32.mrb[1].mxu0 }
 0x14a   : > { %v386_v9 = vpop.f32.mrb[2].mxu0 }
 0x14b   : > { %393 = vst.msk [vmem:[#allocation2] sm:$0xff] %vm317_vm0, %v390_v7  ;;  %v391_v10 = vadd.f32 %v386_v9, %v321_v6  ;;  %v752_v11 = vpop.f32.mrb[3].mxu0 }
 0x14d   : > { %394 = vst.msk [vmem:[#allocation2 + $0x8] sm:$0xff] %vm317_vm0, %v391_v10 }
 0x152   : > { %v398_v13 = vld [vmem:[#allocation2] sm:$0xff] }
 0x153   : > { %v407_v14 = vadd.f32 %v712_v12, %v398_v13 }
 0x154   : > { %v399_v15 = vld [vmem:[#allocation2 + $0x8] sm:$0xff] }
 0x155   : > { %v737_v16 = vpack.c.bf16 %v407_v14, %v407_v14  ;;  %v408_v17 = vadd.f32 %v712_v12, %v399_v15  ;;  %v409_v18 = vmul.f32 0.25, %v407_v14 }
 0x157   : > { %453 = vrot.lane.b32.xlu1 %v737_v16, %s1100_s26  ;;  %428 = vrot.lane.b32.xlu0 %v737_v16, %s1101_s28  ;;  %v410_v19 = vmul.f32 0.25, %v408_v17  ;;  %v735_v20 = vpack.c.bf16 %v409_v18, %v409_v18  ;;  %v738_v21 = vpack.c.bf16 %v408_v17, %v408_v17 }
 0x159   : > { %v736_v22 = vpack.c.bf16 %v410_v19, %v410_v19  ;;  %420 = vst.msk [vmem:[%s1352_s17] sm:$0xf] %vm419_vm3, %v735_v20 }
 0x15b   : > { %455 = vrot.lane.b32.xlu1 %v738_v21, %s1100_s26  ;;  %436 = vrot.lane.b32.xlu0 %v737_v16, %s1527_s29  ;;  %421 = vst.msk [vmem:[%s1352_s17 + $0x4] sm:$0xf] %vm419_vm3, %v736_v22 }
 0x15f   : > { %438 = vrot.lane.b32.xlu1 %v738_v21, %s1527_s29  ;;  %430 = vrot.lane.b32.xlu0 %v738_v21, %s1101_s28  ;;  %s945_s28 = scalar_lea.vmem %s1367_s7, 256 }
 0x160   : > { %p946_p8 = scmp.ne.s32.totalorder %s1367_s7, %s945_s28 }
 0x162   : > { %p947_p13 = pnand %p946_p8, %p1540_p1 }
 0x163   : > { %446 = vrot.lane.b32.xlu1 %v736_v22, %s1103_s9  ;;  %444 = vrot.lane.b32.xlu0 %v735_v20, %s1103_s9  ;;  %s1105_s9 = smov [#allocation10]  }
 0x164   : > { %p948_p5 = pneg %p947_p13 }
 0x167   : > { %464 = vrot.lane.b32.xlu1 %v738_v21, %s1104_s12  ;;  %462 = vrot.lane.b32.xlu0 %v737_v16, %s1104_s12  ;;  %s949_s12 = sshll.u32 %s1105_s9, 4  ;;  %s950_s12 = int_to_ptr.vmem [resolvable:$false] %s949_s12 }
 0x168   : > { %s951_s24 = scalar_lea.vmem %s950_s12, 512  ;;  %p952_p7 = scmp.lt.s32.totalorder %s1367_s7, %s950_s12 }
 0x169   : > { %p953_p12 = scmp.lt.s32.totalorder %s951_s24, %s945_s28 }
 0x16b   : > { %p954_p0 = por %p953_p12, %p952_p7 }
 0x16d   : > { %p955_p2 = pnand %p954_p0, %p948_p5 }
 0x1c9   : > { %v454_v23 = vpop.permute.xlu1 %453  ;;  %v429_v24 = vpop.permute.xlu0 %428 }
 0x1ca   : > { %719 = vst.msk [vmem:[%s303_s15 + $0x8] sm:$0xf] %vm419_vm3, %v454_v23  ;;  %434 = vst.msk [vmem:[%s303_s15] sm:$0xf] %vm419_vm3, %v429_v24 }
 0x1cd   : > { %v456_v25 = vpop.permute.xlu1 %455  ;;  %v437_v26 = vpop.permute.xlu0 %436 }
 0x1ce   : > { %720 = vst.msk [vmem:[%s303_s15 + $0xc] sm:$0xf] %vm419_vm3, %v456_v25  ;;  %442 = vst.msk [vmem:[%s1371_s14] sm:$0xf] %vm419_vm3, %v437_v26 }
 0x1d1   : > { %v439_v27 = vpop.permute.xlu1 %438  ;;  %v431_v28 = vpop.permute.xlu0 %430 }
 0x1d2   : > { %443 = vst.msk [vmem:[%s1371_s14 + $0x4] sm:$0xf] %vm419_vm3, %v439_v27  ;;  %435 = vst.msk [vmem:[%s303_s15 + $0x4] sm:$0xf] %vm419_vm3, %v431_v28 }
 0x1d3   : > { %958 = shalt.err (!%p955_p2)
}
 0x1d4   : > { %s959_s15 = scalar_lea.hbm %s1380_s21, 256  ;;  %s963_s9 = scalar_lea.hbm %s1520_s4, 512 }
 0x1d5   : > { %p960_p6 = scmp.ne.s32.totalorder %s1380_s21, %s959_s15  ;;  %p964_p4 = scmp.lt.u32.totalorder %s1380_s21, %s1520_s4 }
 0x1d6   : > { %p965_p9 = scmp.lt.u32.totalorder %s963_s9, %s959_s15  ;;  %p967_p8 = scmp.lt.u32.totalorder %s959_s15, %s1380_s21 }
 0x1d7   : > { %p961_p10 = pnand %p960_p6, %p1540_p1 }
 0x1d8   : > { %p966_p11 = por %p965_p9, %p964_p4 }
 0x1d9   : > { %p962_p3 = pneg %p961_p10 }
 0x1da   : > { %p968_p13 = por %p967_p8, %p966_p11 }
 0x1dc   : > { %p969_p5 = pnand %p968_p13, %p962_p3 }
 0x1de   : > { %972 = shalt.err (!%p969_p5)
}
 0x1df   : > { %s1106_s28 = smov 4   ;;  %s1541_s24 = smov 64   ;;  %v447_v29 = vpop.permute.xlu1 %446  ;;  %v445_v30 = vpop.permute.xlu0 %444 }
 0x1e0   : > { %764 = dma.vmem_to_hbm [thread:$0]  (%p1540_p1), %s1367_s7, 256, %s1380_s21, %s1387_s25, %s1541_s24, %s1541_s24, %s1106_s28  }
 0x1e1   : > { %s1418_s13 = scalar_lea.hbm %s1519_s3, %s1365_s10  ;;  %718 = vst.msk [vmem:[%s1352_s17 + $0xc] sm:$0xf] %vm419_vm3, %v447_v29  ;;  %717 = vst.msk [vmem:[%s1352_s17 + $0x8] sm:$0xf] %vm419_vm3, %v445_v30  ;;  %s973_s12 = scalar_lea.vmem %s1385_s8, 256 }
 0x1e2   : > { %p974_p7 = scmp.ne.s32.totalorder %s1385_s8, %s973_s12  ;;  %s1107_s7 = smov [#allocation9]  }
 0x1e3   : > { %s977_s21 = sshll.u32 %s1107_s7, 4  ;;  %s978_s21 = int_to_ptr.vmem [resolvable:$false] %s977_s21 }
 0x1e4   : > { %p975_p12 = pnand %p974_p7, %p1540_p1  ;;  %s979_s29 = scalar_lea.vmem %s978_s21, 512 }
 0x1e5   : > { %p980_p2 = scmp.lt.s32.totalorder %s1385_s8, %s978_s21  ;;  %p981_p6 = scmp.lt.s32.totalorder %s979_s29, %s973_s12 }
 0x1e6   : > { %p976_p0 = pneg %p975_p12 }
 0x1e7   : > { %p982_p10 = por %p981_p6, %p980_p2 }
 0x1e9   : > { %p983_p3 = pnand %p982_p10, %p976_p0 }
 0x1eb   : > { %986 = shalt.err (!%p983_p3)
}
 0x1ec   : > { %s987_s17 = scalar_lea.hbm %s1418_s13, 256  ;;  %s991_s7 = scalar_lea.hbm %s1519_s3, 512 }
 0x1ed   : > { %p988_p4 = scmp.ne.s32.totalorder %s1418_s13, %s987_s17  ;;  %p992_p8 = scmp.lt.u32.totalorder %s1418_s13, %s1519_s3 }
 0x1ee   : > { %p993_p13 = scmp.lt.u32.totalorder %s991_s7, %s987_s17  ;;  %p995_p7 = scmp.lt.u32.totalorder %s987_s17, %s1418_s13 }
 0x1ef   : > { %p989_p9 = pnand %p988_p4, %p1540_p1 }
 0x1f0   : > { %p994_p5 = por %p993_p13, %p992_p8 }
 0x1f1   : > { %p990_p11 = pneg %p989_p9 }
 0x1f2   : > { %p996_p12 = por %p995_p7, %p994_p5 }
 0x1f4   : > { %p997_p0 = pnand %p996_p12, %p990_p11 }
 0x1f6   : > { %1000 = shalt.err (!%p997_p0)
}
 0x1f7   : > { %s1542_s12 = scalar_lea.sflag [#allocation5], %s1332_s30  ;;  %s1543_s26 = sshll.u32 %s1371_s14, 4  ;;  %v465_v31 = vpop.permute.xlu1 %464  ;;  %v463_v32 = vpop.permute.xlu0 %462  ;;  %s1454_s26 = int_to_ptr.vmem [resolvable:$true] %s1543_s26 }
 0x1f8   : > { %763 = dma.vmem_to_hbm [thread:$0]  (%p1540_p1), %s1385_s8, 256, %s1418_s13, %s1542_s12, %s1541_s24, %s1541_s24, %s1106_s28  }
 0x1f9   : > { %s1460_s17 = scalar_lea.hbm %s1521_s5, %s1365_s10  ;;  %722 = vst.msk [vmem:[%s1371_s14 + $0xc] sm:$0xf] %vm419_vm3, %v465_v31  ;;  %721 = vst.msk [vmem:[%s1371_s14 + $0x8] sm:$0xf] %vm419_vm3, %v463_v32  ;;  %s1001_s30 = scalar_lea.vmem %s1454_s26, 256 }
 0x1fa   : > { %p1002_p2 = scmp.ne.s32.totalorder %s1454_s26, %s1001_s30  ;;  %s1108_s8 = smov [#allocation12]  }
 0x1fb   : > { %s1005_s13 = sshll.u32 %s1108_s8, 4  ;;  %s1006_s13 = int_to_ptr.vmem [resolvable:$false] %s1005_s13 }
 0x1fc   : > { %p1003_p6 = pnand %p1002_p2, %p1540_p1  ;;  %s1007_s15 = scalar_lea.vmem %s1006_s13, 512 }
 0x1fd   : > { %p1008_p3 = scmp.lt.s32.totalorder %s1454_s26, %s1006_s13  ;;  %p1009_p4 = scmp.lt.s32.totalorder %s1007_s15, %s1001_s30 }
 0x1fe   : > { %p1004_p10 = pneg %p1003_p6 }
 0x1ff   : > { %p1010_p9 = por %p1009_p4, %p1008_p3 }
 0x201   : > { %p1011_p11 = pnand %p1010_p9, %p1004_p10 }
 0x203   : > { %1014 = shalt.err (!%p1011_p11)
}
 0x204   : > { %s1015_s10 = scalar_lea.hbm %s1460_s17, 256  ;;  %s1019_s21 = scalar_lea.hbm %s1521_s5, 512 }
 0x205   : > { %p1016_p8 = scmp.ne.s32.totalorder %s1460_s17, %s1015_s10  ;;  %p1020_p7 = scmp.lt.u32.totalorder %s1460_s17, %s1521_s5 }
 0x206   : > { %p1021_p12 = scmp.lt.u32.totalorder %s1019_s21, %s1015_s10  ;;  %p1023_p2 = scmp.lt.u32.totalorder %s1015_s10, %s1460_s17 }
 0x207   : > { %p1017_p13 = pnand %p1016_p8, %p1540_p1 }
 0x208   : > { %p1022_p0 = por %p1021_p12, %p1020_p7 }
 0x209   : > { %p1018_p5 = pneg %p1017_p13 }
 0x20a   : > { %p1024_p6 = por %p1023_p2, %p1022_p0 }
 0x20c   : > { %p1025_p10 = pnand %p1024_p6, %p1018_p5 }
 0x20e   : > { %1028 = shalt.err (!%p1025_p10)
}
 0x20f   : > { %765 = dma.vmem_to_hbm [thread:$0]  (%p1540_p1), %s1454_s26, 256, %s1460_s17, %s1387_s25, %s1541_s24, %s1541_s24, %s1106_s28  }
 0x210 PF: > { %s542_s29 = sand.u32 1, %s1071_s18   ;;  %p1544_p3 = scmp.ne.s32.totalorder %s1530_s27, 0 }
 0x211   : > { %p1545_p4 = scmp.ge.s32.totalorder %s1091_s23, 2  ;;  %s543_s30 = scalar_lea.sflag [#allocation5], %s542_s29 }
 0x213   : > { %p781_p9 = pnand %p1545_p4, %p1544_p3 }
 0x215   : > { %1062 = dma.done.wait (!%p781_p9), %s543_s30, 256  }
 0x216   : > { %1064 = vsyncadd (!%p781_p9), %s543_s30, 4294967040  ;;  %s1546_s6 = sadd.s32 4294967294, %s1091_s23  }
 0x217   : > { %s551_s8 = sand.u32 1, %s1546_s6  }
 0x218   : > { %s552_s13 = scalar_lea.sflag [#allocation11], %s551_s8 }
 0x219   : > { %1066 = dma.done.wait (!%p781_p9), %s552_s13, 512  }
 0x21a   : > { %1068 = vsyncadd (!%p781_p9), %s552_s13, 4294966784  ;;  %s26_s23 = sadd.s32 1, %s1091_s23   ;;  %s1547_s18 = smov %s1075_s19 }
 0x21b   : > { %p23_p1 = scmp.ge.s32.totalorder %s26_s23, 4   ;;  %s1548_s19 = smov %s1079_s20 }
 0x21c   : > { %s1549_s20 = smov %s1283_s16  ;;  %s1550_s21 = smov %s1087_s22 }
 0x21d   : > { %s1551_s22 = smov %s1553_s11  ;;  %25 = sbr.rel (!%p23_p1) target bundleno = 9 (0x9), region = 129 }
 0x224   :  { %566 = vsyncpa [#allocation4], 1 }
 0x225   :  { %568 = vsyncpa [#allocation4 + $0x1], 1 }
 0x226   :  { %569 = vsyncpa [#allocation7], 1 }
 0x227   :  { %570 = vsyncpa [#allocation5], 1 }
 0x228   :  { %572 = vsyncpa [#allocation5 + $0x1], 1 }
 0x229   :  { %573 = vsyncpa [#allocation11], 1 }
 0x22a   :  { %575 = vsyncpa [#allocation11 + $0x1], 1 }

// kernel: _lambda_.13
= control target key start
LH: loop header
LB: loop body
LE: loop exit
PB: predicated region body
PF: predicated region fallthrough
CT: control target
= control target key end

     0   :  { %s1618_s0 = inlined_call_operand.hbm [shape: bf16[2,2,16,16], index: 0, kind: input, shape index: {}]   ;;  %s1619_s1 = inlined_call_operand.hbm [shape: bf16[2,16,32], index: 1, kind: input, shape index: {}]   ;;  %s1620_s2 = inlined_call_operand.hbm [shape: f32[1,32], index: 2, kind: input, shape index: {}]   ;;  %s1621_s3 = inlined_call_operand.hbm [shape: bf16[2,16,32], index: 3, kind: input, shape index: {}]   ;;  %s1622_s4 = inlined_call_operand.hbm [shape: f32[1,32], index: 4, kind: input, shape index: {}]   ;;  %s1623_s5 = inlined_call_operand.hbm [shape: f32[1,32], index: 5, kind: input, shape index: {}]   ;;  %s1624_s6 = inlined_call_operand.hbm [shape: bf16[2,16,32], index: 6, kind: output, shape index: {}]  }
   0x1   :  { %1632 = sst [smem:[#allocation22_spill]] %s1618_s0 }
   0x2   :  { %1633 = sst [smem:[#allocation23_spill]] %s1619_s1 }
   0x3   :  { %1634 = sst [smem:[#allocation24_spill]] %s1620_s2 }
   0x4   :  { %1635 = sst [smem:[#allocation25_spill]] %s1622_s4 }
   0x5   :  { %11 = vsyncpa [#allocation3], 0 }
   0x6   :  { %13 = vsyncpa [#allocation3 + $0x1], 0 }
   0x7   :  { %14 = vsyncpa [#allocation6], 0 }
   0x8   :  { %15 = vsyncpa [#allocation9], 0 }
   0x9   :  { %17 = vsyncpa [#allocation9 + $0x1], 0 }
   0xa   :  { %18 = vsyncpa [#allocation12], 0 }
   0xb   :  { %19 = vsyncpa [#allocation4], 0 }
   0xc   :  { %21 = vsyncpa [#allocation4 + $0x1], 0  ;;  %s1255_s21 = smov 0   ;;  %s1257_s22 = smov 0  }
   0xd   :  { %s1259_s23 = smov 0   ;;  %s1261_s24 = smov 0  }
   0xe   :  { %s1263_s25 = smov 0   ;;  %s1265_s26 = smov 0  }
   0xf LB: > { %1636 = sst [smem:[#allocation20_spill]] %s1185_s21  ;;  %s1286_s27 = sadd.s32 4294967295, %s1205_s26   ;;  %s1205_s26 = sphi %s1265_s26, %s27_s26   ;;  %s1201_s25 = sphi %s1263_s25, %s1668_s25   ;;  %s1197_s24 = sphi %s1261_s24, %s1667_s24   ;;  %s1193_s23 = sphi %s1259_s23, %s1666_s23   ;;  %s1189_s22 = sphi %s1257_s22, %s1665_s22   ;;  %s1185_s21 = sphi %s1255_s21, %s1664_s21  }
  0x10   : > { %s749_s28 = sadd.s32 4294967294, %s1205_s26   ;;  %p61_p0 = scmp.ne.s32.totalorder %s1189_s22, %s1185_s21 }
  0x11   : > { %p1625_p1 = scmp.eq.s32.totalorder %s1286_s27, 0  ;;  %p205_p3 = scmp.eq.s32.totalorder %s749_s28, 1 }
  0x12   : > { %p750_p5 = scmp.ge.s32.totalorder %s1205_s26, 1  ;;  %p212_p7 = scmp.lt.s32.totalorder %s1205_s26, 3 }
  0x13   : > { %p1295_p4 = por %p1625_p1, %p61_p0  ;;  %p1300_p6 = por %p205_p3, %p61_p0 }
  0x14   : > { %p1305_p8 = pnand %p750_p5, %p212_p7  ;;  %s1207_s8 = smov [#allocation5]  }
  0x15   : > { %s1637_s29 = scalar_select %p1295_p4, 1, 0 }
  0x16   : > { %s1638_s30 = scalar_select %p1300_p6, 1, 0 }
  0x17   : > { %s1640_s7 = scalar_select %p1305_p8, 1, 0 }
  0x18   : > { %1639 = sst [smem:[#allocation21_spill]] %s1638_s30  ;;  %s224_s9 = sshll.u32 %s1207_s8, 4  ;;  %s1309_s9 = int_to_ptr.vmem [resolvable:$true] %s224_s9 }
  0x19   : > { %p835_p9 = pneg %p1305_p8  ;;  %s1208_s11 = smov [#allocation10]  }
  0x1a   : > { %s249_s12 = sshll.u32 %s1208_s11, 4  ;;  %s1209_s13 = smov [#allocation7]   ;;  %s1320_s12 = int_to_ptr.vmem [resolvable:$true] %s249_s12 }
  0x1b   : > { %p1316_p11 = pnand %p835_p9, %p1625_p1  ;;  %s1322_s14 = sshll.u32 %s1209_s13, 4  ;;  %s239_s14 = int_to_ptr.vmem [resolvable:$true] %s1322_s14 }
  0x1c   : > { %s1642_s1 = sld [smem:[#allocation23_spill]] }
  0x1d   : > { %p1332_p13 = pneg %p1316_p11 }
  0x22   : > { %s935_s17 = scalar_lea.hbm %s1642_s1, 256 }
  0x23   : > { %p936_p12 = scmp.ne.s32.totalorder %s1642_s1, %s935_s17  ;;  %p942_p5 = scmp.lt.u32.totalorder %s935_s17, %s1642_s1 }
  0x25   : > { %p938_p0 = pnand %p1332_p13, %p936_p12 }
  0x27   : > { %p939_p3 = pneg %p938_p0 }
  0x29   : > { %p944_p7 = pnand %p942_p5, %p939_p3 }
  0x2b   : > { %947 = shalt.err (!%p944_p7)
}
  0x2c   : > { %s948_s11 = scalar_lea.vmem %s1309_s9, 256  ;;  %p956_p2 = scmp.lt.s32.totalorder %s1309_s9, %s1309_s9 }
  0x2d   : > { %p949_p9 = scmp.ne.s32.totalorder %s1309_s9, %s948_s11  ;;  %p957_p6 = scmp.lt.s32.totalorder %s948_s11, %s948_s11 }
  0x2f   : > { %p951_p10 = pnand %p949_p9, %p1332_p13  ;;  %p958_p12 = por %p957_p6, %p956_p2 }
  0x31   : > { %p952_p1 = pneg %p951_p10 }
  0x33   : > { %p959_p0 = pnand %p958_p12, %p952_p1 }
  0x35   : > { %962 = shalt.err (!%p959_p0)
}
  0x36   : > { %s1630_s13 = smov 64   ;;  %s1211_s15 = smov 4  }
  0x37   : > { %838 = dma.hbm_to_vmem [thread:$0]  (!%p1316_p11), %s1642_s1, 256, %s1309_s9, [#allocation6], %s1630_s13, %s1630_s13, %s1211_s15  }
  0x38   : > { %s1644_s4 = sld [smem:[#allocation25_spill]] }
  0x3e   : > { %s963_s28 = scalar_lea.hbm %s1644_s4, 16 }
  0x3f   : > { %p964_p1 = scmp.ne.s32.totalorder %s1644_s4, %s963_s28  ;;  %p970_p10 = scmp.lt.u32.totalorder %s963_s28, %s1644_s4 }
  0x41   : > { %p966_p2 = pnand %p964_p1, %p1332_p13 }
  0x43   : > { %p967_p6 = pneg %p966_p2 }
  0x45   : > { %p972_p3 = pnand %p970_p10, %p967_p6 }
  0x47   : > { %975 = shalt.err (!%p972_p3)
}
  0x48   : > { %s976_s9 = scalar_lea.vmem %s1320_s12, 16  ;;  %s983_s16 = scalar_lea.vmem %s1320_s12, 32 }
  0x49   : > { %p977_p5 = scmp.ne.s32.totalorder %s1320_s12, %s976_s9  ;;  %p984_p12 = scmp.lt.s32.totalorder %s1320_s12, %s1320_s12 }
  0x4a   : > { %p985_p0 = scmp.lt.s32.totalorder %s983_s16, %s976_s9 }
  0x4b   : > { %p979_p7 = pnand %p977_p5, %p1332_p13 }
  0x4c   : > { %p986_p1 = por %p985_p0, %p984_p12 }
  0x4d   : > { %p980_p9 = pneg %p979_p7 }
  0x4f   : > { %p987_p2 = pnand %p986_p1, %p980_p9 }
  0x51   : > { %990 = shalt.err (!%p987_p2)
}
  0x52   : > { %844 = dma.hbm_to_vmem [thread:$0]  (!%p1316_p11), %s1644_s4, 16, %s1320_s12, [#allocation9]  }
  0x53   : > { %s1645_s2 = sld [smem:[#allocation24_spill]] }
  0x59   : > { %s991_s19 = scalar_lea.hbm %s1645_s2, 16 }
  0x5a   : > { %p992_p6 = scmp.ne.s32.totalorder %s1645_s2, %s991_s19  ;;  %p998_p5 = scmp.lt.u32.totalorder %s991_s19, %s1645_s2 }
  0x5c   : > { %p994_p10 = pnand %p992_p6, %p1332_p13 }
  0x5e   : > { %p995_p3 = pneg %p994_p10 }
  0x60   : > { %p1000_p7 = pnand %p998_p5, %p995_p3 }
  0x62   : > { %1003 = shalt.err (!%p1000_p7)
}
  0x63   : > { %s1004_s16 = scalar_lea.vmem %s239_s14, 16  ;;  %s1011_s12 = scalar_lea.vmem %s239_s14, 32 }
  0x64   : > { %p1005_p9 = scmp.ne.s32.totalorder %s239_s14, %s1004_s16  ;;  %p1012_p1 = scmp.lt.s32.totalorder %s239_s14, %s239_s14 }
  0x65   : > { %p1013_p2 = scmp.lt.s32.totalorder %s1011_s12, %s1004_s16 }
  0x66   : > { %p1007_p12 = pnand %p1005_p9, %p1332_p13 }
  0x67   : > { %p1014_p4 = por %p1013_p2, %p1012_p1 }
  0x68   : > { %p1008_p0 = pneg %p1007_p12 }
  0x6a   : > { %p1015_p8 = pnand %p1014_p4, %p1008_p0 }
  0x6c   : > { %1018 = shalt.err (!%p1015_p8)
}
  0x6d   : > { %841 = dma.hbm_to_vmem [thread:$0]  (!%p1316_p11), %s1645_s2, 16, %s239_s14, [#allocation6]  }
  0x6e   : > { %s1212_s17 = smov [#allocation11]   ;;  %s1019_s8 = scalar_lea.hbm %s1623_s5, 16 }
  0x6f   : > { %s260_s18 = sshll.u32 %s1212_s17, 4  ;;  %p1020_p6 = scmp.ne.s32.totalorder %s1623_s5, %s1019_s8  ;;  %s261_s18 = int_to_ptr.vmem [resolvable:$true] %s260_s18 }
  0x70   : > { %p1026_p10 = scmp.lt.u32.totalorder %s1019_s8, %s1623_s5 }
  0x71   : > { %p1022_p4 = pnand %p1020_p6, %p1332_p13 }
  0x73   : > { %p1023_p8 = pneg %p1022_p4 }
  0x75   : > { %p1028_p3 = pnand %p1026_p10, %p1023_p8 }
  0x77   : > { %1031 = shalt.err (!%p1028_p3)
}
  0x78   : > { %s1032_s14 = scalar_lea.vmem %s261_s18, 16  ;;  %s1039_s21 = scalar_lea.vmem %s261_s18, 32 }
  0x79   : > { %p1033_p5 = scmp.ne.s32.totalorder %s261_s18, %s1032_s14  ;;  %p1040_p12 = scmp.lt.s32.totalorder %s261_s18, %s261_s18 }
  0x7a   : > { %p1041_p0 = scmp.lt.s32.totalorder %s1039_s21, %s1032_s14 }
  0x7b   : > { %p1035_p7 = pnand %p1033_p5, %p1332_p13 }
  0x7c   : > { %p1042_p1 = por %p1041_p0, %p1040_p12 }
  0x7d   : > { %p1036_p9 = pneg %p1035_p7 }
  0x7f   : > { %p1043_p2 = pnand %p1042_p1, %p1036_p9 }
  0x81   : > { %1046 = shalt.err (!%p1043_p2)
}
  0x82   : > { %847 = dma.hbm_to_vmem [thread:$0]  (!%p1316_p11), %s1623_s5, 16, %s261_s18, [#allocation12]  }
  0x83   : > { %s39_s20 = sadd.s32 1, %s1201_s25  ;;  %s48_s19 = sadd.s32 1, %s1193_s23 }
  0x84   : > { %p41_p13 = scmp.ge.s32.totalorder %s39_s20, 2  ;;  %p55_p6 = scmp.ne.s32.totalorder %s1193_s23, %s1189_s22 }
  0x85   : > { %p56_p4 = scmp.eq.s32.totalorder %s1205_s26, 0  ;;  %p863_p8 = scmp.lt.s32.totalorder %s1205_s26, 2 }
  0x86   : > { %s1670_s20 = smov (%p41_p13, %s39_s20), 0  ;;  %p1646_p3 = scmp.eq.s32.totalorder %s1286_s27, 1 }
  0x87   : > { %p57_p10 = por %p56_p4, %p55_p6  ;;  %s43_s28 = ssub.s32 %s1201_s25, %s1670_s20 }
  0x88   : > { %p1427_p5 = por %p1646_p3, %p55_p6  ;;  %s1434_s8 = sand.u32 1, %s1193_s23  }
  0x89   : > { %p46_p11 = scmp.eq.s32.totalorder %s43_s28, 0  ;;  %s756_s18 = sshll.u32 %s1434_s8, 4 }
  0x8a   : > { %s788_s11 = sshll.u32 %s1201_s25, 8  ;;  %s1648_s0 = sld [smem:[#allocation22_spill]] }
  0x8b   : > { %s1439_s9 = scalar_select %p46_p11, %s1193_s23, %s48_s19  }
  0x8c   : > { %s275_s21 = scalar_lea.vmem [#allocation2], %s756_s18  ;;  %p1448_p7 = pnand %p863_p8, %p57_p10 }
  0x8d   : > { %s284_s30 = sshll.u32 %s275_s21, 4  ;;  %s272_s28 = scalar_lea.sflag [#allocation3], %s1434_s8  ;;  %s1452_s30 = int_to_ptr.vmem [resolvable:$true] %s284_s30 }
  0x8e   : > { %p1049_p12 = pneg %p1448_p7 }
  0x90   : > { %s1444_s14 = scalar_lea.hbm %s1648_s0, %s788_s11  ;;  %s1052_s12 = scalar_lea.hbm %s1648_s0, 512 }
  0x91   : > { %s1047_s16 = scalar_lea.hbm %s1444_s14, 256  ;;  %p1053_p2 = scmp.lt.u32.totalorder %s1444_s14, %s1648_s0 }
  0x92   : > { %p1048_p9 = scmp.ne.s32.totalorder %s1444_s14, %s1047_s16  ;;  %p1054_p13 = scmp.lt.u32.totalorder %s1052_s12, %s1047_s16 }
  0x93   : > { %p1056_p4 = scmp.lt.u32.totalorder %s1047_s16, %s1444_s14 }
  0x94   : > { %p1050_p0 = pnand %p1049_p12, %p1048_p9  ;;  %p1055_p6 = por %p1054_p13, %p1053_p2 }
  0x96   : > { %p1051_p1 = pneg %p1050_p0  ;;  %p1057_p8 = por %p1056_p4, %p1055_p6 }
  0x98   : > { %p1058_p10 = pnand %p1057_p8, %p1051_p1 }
  0x9a   : > { %1061 = shalt.err (!%p1058_p10)
}
  0x9b   : > { %s1062_s19 = scalar_lea.vmem %s1452_s30, 256  ;;  %s1213_s18 = smov [#allocation2]  }
  0x9c   : > { %p1063_p3 = scmp.ne.s32.totalorder %s1452_s30, %s1062_s19  ;;  %s1067_s11 = sshll.u32 %s1213_s18, 4  ;;  %s1068_s11 = int_to_ptr.vmem [resolvable:$false] %s1067_s11 }
  0x9d   : > { %s1069_s13 = scalar_lea.vmem %s1068_s11, 512  ;;  %p1070_p0 = scmp.lt.s32.totalorder %s1452_s30, %s1068_s11 }
  0x9e   : > { %p1065_p11 = pnand %p1063_p3, %p1049_p12  ;;  %p1071_p2 = scmp.lt.s32.totalorder %s1069_s13, %s1062_s19 }
  0xa0   : > { %p1066_p9 = pneg %p1065_p11  ;;  %p1072_p13 = por %p1071_p2, %p1070_p0 }
  0xa2   : > { %p1073_p6 = pnand %p1072_p13, %p1066_p9 }
  0xa4   : > { %1076 = shalt.err (!%p1073_p6)
}
  0xa5   : > { %s1650_s16 = smov 64   ;;  %s759_s12 = sshll.u32 %s1434_s8, 3 }
  0xa6   : > { %851 = dma.hbm_to_vmem [thread:$0]  (!%p1448_p7), %s1444_s14, 256, %s1452_s30, %s272_s28, %s1650_s16, %s1650_s16, %s1211_s15  }
  0xa7   : > { %s789_s21 = sshll.u32 %s1201_s25, 7  ;;  %s298_s13 = scalar_lea.vmem [#allocation8], %s759_s12 }
  0xa8   : > { %s1491_s11 = scalar_lea.hbm %s1621_s3, %s789_s21  ;;  %s307_s0 = sshll.u32 %s298_s13, 4  ;;  %s1493_s0 = int_to_ptr.vmem [resolvable:$true] %s307_s0 }
  0xa9   : > { %s1651_s1 = sand.u32 1, %s1205_s26   ;;  %s1077_s4 = scalar_lea.hbm %s1491_s11, 128 }
  0xaa   : > { %s1497_s2 = scalar_lea.sflag [#allocation9], %s1651_s1  ;;  %p1078_p1 = scmp.ne.s32.totalorder %s1491_s11, %s1077_s4 }
  0xab   : > { %s1082_s30 = scalar_lea.hbm %s1621_s3, 256  ;;  %p1083_p10 = scmp.lt.u32.totalorder %s1491_s11, %s1621_s3 }
  0xac   : > { %p1080_p4 = pnand %p1078_p1, %p1049_p12  ;;  %p1084_p3 = scmp.lt.u32.totalorder %s1082_s30, %s1077_s4 }
  0xad   : > { %p1086_p9 = scmp.lt.u32.totalorder %s1077_s4, %s1491_s11 }
  0xae   : > { %p1081_p8 = pneg %p1080_p4  ;;  %p1085_p11 = por %p1084_p3, %p1083_p10 }
  0xb0   : > { %p1087_p0 = por %p1086_p9, %p1085_p11 }
  0xb2   : > { %p1088_p2 = pnand %p1087_p0, %p1081_p8 }
  0xb4   : > { %1091 = shalt.err (!%p1088_p2)
}
  0xb5   : > { %s1092_s1 = scalar_lea.vmem %s1493_s0, 128  ;;  %s1214_s12 = smov [#allocation8]  }
  0xb6   : > { %p1093_p13 = scmp.ne.s32.totalorder %s1493_s0, %s1092_s1  ;;  %s1097_s19 = sshll.u32 %s1214_s12, 4  ;;  %s1098_s19 = int_to_ptr.vmem [resolvable:$false] %s1097_s19 }
  0xb7   : > { %s1099_s18 = scalar_lea.vmem %s1098_s19, 256  ;;  %p1100_p4 = scmp.lt.s32.totalorder %s1493_s0, %s1098_s19 }
  0xb8   : > { %p1095_p6 = pnand %p1093_p13, %p1049_p12  ;;  %p1101_p10 = scmp.lt.s32.totalorder %s1099_s18, %s1092_s1 }
  0xba   : > { %p1096_p1 = pneg %p1095_p6  ;;  %p1102_p3 = por %p1101_p10, %p1100_p4 }
  0xbc   : > { %p1103_p11 = pnand %p1102_p3, %p1096_p1 }
  0xbe   : > { %1106 = shalt.err (!%p1103_p11)
}
  0xbf   : > { %854 = dma.hbm_to_vmem [thread:$0]  (!%p1448_p7), %s1491_s11, 128, %s1493_s0, %s1497_s2, %s1650_s16, %s1650_s16, %s1211_s15  }
  0xc0   : > { %p1652_p12 = scmp.ne.s32.totalorder %s1640_s7, 0 }
  0xc1   : > { %s1529_s4 = sand.u32 (!%p1652_p12), 1, %s1189_s22   ;;  %p1653_p8 = scmp.ne.s32.totalorder (!%p1652_p12), %s1637_s29, 0 }
  0xc2   : > { %319 = sbr.rel (%p1652_p12) target bundleno = 772 (0x304), region = 44  ;;  %s763_s13 = sshll.u32 (!%p1652_p12), %s1529_s4, 4 }
  0xc3   : > { %s322_s8 = scalar_lea.sflag (!%p1652_p12), [#allocation3], %s1529_s4  ;;  %s325_s14 = scalar_lea.vmem (!%p1652_p12), [#allocation2], %s763_s13 }
  0xc9   : > { %1160 = dma.done.wait (%p1653_p8), %s322_s8, 256  }
  0xca   : > { %1162 = vsyncadd (%p1653_p8), %s322_s8, 4294967040  ;;  %p1654_p9 = scmp.eq.s32.totalorder %s1286_s27, 0 }
  0xcc   : > { %1164 = dma.done.wait (%p1654_p9), [#allocation6], 272   ;;  %p1655_p7 = pmov %p1654_p9 }
  0xcd   : > { %s338_s0 = sand.u32 1, %s1286_s27   ;;  %s766_s2 = sshll.u32 %s1529_s4, 3 }
  0xce   : > { %1166 = vsyncadd (%p1655_p7), [#allocation6], 4294967024  ;;  %s339_s7 = scalar_lea.sflag [#allocation9], %s338_s0  ;;  %s342_s15 = scalar_lea.vmem [#allocation8], %s766_s2 }
  0xcf   : > { %1168 = dma.done.wait (%p1653_p8), %s339_s7, 128  }
  0xd0   : > { %1170 = vsyncadd (%p1653_p8), %s339_s7, 4294967168  ;;  %p1656_p0 = pmov %p1655_p7 }
  0xd2   : > { %1172 = dma.done.wait (%p1656_p0), [#allocation9], 16   ;;  %p1657_p2 = pmov %p1656_p0 }
  0xd3   : > { %p1658_p13 = pmov %p1656_p0 }
  0xd4   : > { %1174 = vsyncadd (%p1657_p2), [#allocation9], 4294967280 }
  0xd5   : > { %1176 = dma.done.wait (%p1658_p13), [#allocation12], 16   ;;  %p1659_p6 = pmov %p1656_p0 }
  0xd6   : > { %v1215_v0 = vmov 0.0   ;;  %vm1216_vm0 = vmmov 0   ;;  %v927_v1 = vld [vmem:[#allocation5 + $0x8] sm:$0xff]   ;;  %v928_v2 = vld [vmem:[#allocation5] sm:$0xff]   ;;  %vm409_vm1 = vcmask 130048   ;;  %vm524_vm2 = vcmask 261120  }
  0xd7   : > { %1178 = vsyncadd (%p1659_p6), [#allocation12], 4294967280  ;;  %801 = vmatprep.subr.bf16.mxu0 %v1215_v0  ;;  %807 = vmatprep.subr.bf16.mxu1 %v1215_v0  ;;  %v929_v3 = vld [vmem:[%s325_s14 + $0x8] sm:$0xff]   ;;  %v930_v4 = vld [vmem:[%s325_s14] sm:$0xff]   ;;  %vm578_vm3 = vcmask 257024   ;;  %s792_s27 = sshll.u32 %s1197_s24, 7 }
  0xd8   : > { %803 = vmatprep.mubr.msk.bf16.mxu0 %vm1216_vm0, %v1215_v0  ;;  %809 = vmatprep.mubr.msk.bf16.mxu1 %vm1216_vm0, %v1215_v0  ;;  %v794_v5 = vld [vmem:[%s342_s15] sm:$0xff]   ;;  %v778_v8 = vld [vmem:[#allocation7] ss:$0 sm:$0xff]  ;;  %v779_v42 = vld [vmem:[#allocation10] ss:$0 sm:$0xff]  ;;  %s383_s29 = scalar_lea.vmem [#allocation13], %s766_s2  ;;  %s1567_s30 = scalar_lea.hbm %s1624_s6, %s792_s27 }
  0xd9   : > { %802 = vmatpush3.bf16.msra.mxu0 %v927_v1  ;;  %808 = vmatpush3.bf16.msra.mxu1 %v928_v2  ;;  %v795_v13 = vunpack.c.l.bf16 %v794_v5  ;;  %v796_v19 = vunpack.c.h.bf16 %v794_v5  ;;  %v780_v44 = vld [vmem:[#allocation11] ss:$0 sm:$0xff]  ;;  %s597_s17 = sshll.u32 %s383_s29, 4  ;;  %s582_s28 = scalar_lea.sflag [#allocation4], %s1529_s4  ;;  %s1569_s17 = int_to_ptr.vmem [resolvable:$true] %s597_s17 }
  0xda   : > { %s1107_s21 = scalar_lea.vmem %s1569_s17, 128  ;;  %s1217_s24 = smov [#allocation13]  }
  0xdb   : > { %p1108_p1 = scmp.ne.s32.totalorder %s1569_s17, %s1107_s21  ;;  %s1111_s1 = sshll.u32 %s1217_s24, 4  ;;  %s1112_s1 = int_to_ptr.vmem [resolvable:$false] %s1111_s1 }
  0xdc   : > { %804 = vmatmul.mubr.msk.bf16.vlgmr.msra.gmra.mrb[0].mxu0 %vm409_vm1, %v929_v3  ;;  %810 = vmatmul.mubr.msk.bf16.vlgmr.msra.gmra.mrb[0].mxu1 %vm409_vm1, %v930_v4  ;;  %s1113_s12 = scalar_lea.vmem %s1112_s1, 256  ;;  %p1114_p3 = scmp.lt.s32.totalorder %s1569_s17, %s1112_s1 }
  0xdd   : > { %p1109_p4 = pnand %p1108_p1, %p1427_p5  ;;  %p1115_p11 = scmp.lt.s32.totalorder %s1113_s12, %s1107_s21 }
  0xdf   : > { %p1110_p10 = pneg %p1109_p4  ;;  %p1116_p12 = por %p1115_p11, %p1114_p3 }
  0xe1   : > { %p1117_p8 = pnand %p1116_p12, %p1110_p10 }
 0x1af   : > { %v447_v6 = vpop.f32.mrb[0].mxu0  ;;  %v502_v7 = vpop.f32.mrb[0].mxu1 }
 0x1b0   : > { %v805_v9 = vpop.f32.mrb[1].mxu0  ;;  %v503_v10 = vadd.f32 %v502_v7, %v447_v6  ;;  %v811_v11 = vpop.f32.mrb[1].mxu1 }
 0x1b1   : > { %v450_v12 = vpop.f32.mrb[2].mxu0  ;;  %v505_v14 = vpop.f32.mrb[2].mxu1 }
 0x1b2   : > { %v806_v15 = vpop.f32.mrb[3].mxu0  ;;  %v516_v16 = vadd.f32 %v778_v8, %v503_v10  ;;  %v506_v17 = vadd.f32 %v505_v14, %v450_v12  ;;  %v812_v18 = vpop.f32.mrb[3].mxu1 }
 0x1b4   : > { %v517_v20 = vadd.f32 %v778_v8, %v506_v17  ;;  %v522_v21 = vadd.f32 %v795_v13, %v516_v16 }
 0x1b6   : > { %v525_v22 = vsel %vm524_vm2, %v522_v21, 0.0  ;;  %v523_v23 = vadd.f32 %v796_v19, %v517_v20 }
 0x1b7   : > { %526 = vadd.xlane.f32.xlu0 %v525_v22 }
 0x1b8   : > { %v528_v24 = vsel %vm524_vm2, %v523_v23, 0.0 }
 0x1bb   : > { %529 = vadd.xlane.f32.xlu0 %v528_v24 }
 0x244   : > { %v527_v25 = vpop.xlane.xlu0 %526 }
 0x245   : > { %v532_v26 = vmul.f32 0.03125, %v527_v25 }
 0x247   : > { %v534_v27 = vsub.f32 %v522_v21, %v532_v26 }
 0x248   : > { %v530_v28 = vpop.xlane.xlu0 %529 }
 0x249   : > { %v533_v29 = vmul.f32 0.03125, %v530_v28  ;;  %v536_v30 = vmul.f32 %v534_v27, %v534_v27 }
 0x24b   : > { %v535_v31 = vsub.f32 %v523_v23, %v533_v29  ;;  %v538_v32 = vsel %vm524_vm2, %v536_v30, 0.0 }
 0x24c   : > { %539 = vadd.xlane.f32.xlu1 %v538_v32 }
 0x24d   : > { %v537_v33 = vmul.f32 %v535_v31, %v535_v31 }
 0x24f   : > { %v541_v34 = vsel %vm524_vm2, %v537_v33, 0.0 }
 0x250   : > { %542 = vadd.xlane.f32.xlu1 %v541_v34 }
 0x2d9   : > { %v540_v35 = vpop.xlane.xlu1 %539 }
 0x2da   : > { %v544_v36 = vmul.f32 0.03125, %v540_v35 }
 0x2dc   : > { %v546_v37 = vadd.f32 1e-12, %v544_v36 }
 0x2dd   : > { %v543_v38 = vpop.xlane.xlu1 %542 }
 0x2de   : > { %931 = vrsqrt.f32 %v546_v37  ;;  %v545_v39 = vmul.f32 0.03125, %v543_v38 }
 0x2e0   : > { %v547_v40 = vadd.f32 1e-12, %v545_v39 }
 0x2e2   : > { %933 = vrsqrt.f32 %v547_v40 }
 0x2e8   : > { %v932_v41 = vpop.eup %931 }
 0x2e9   : > { %v550_v43 = vmul.f32 %v932_v41, %v534_v27 }
 0x2eb   : > { %v559_v45 = vmul.f32 %v779_v42, %v550_v43 }
 0x2ec   : > { %v934_v46 = vpop.eup %933 }
 0x2ed   : > { %v568_v47 = vadd.f32 %v780_v44, %v559_v45  ;;  %v551_v48 = vmul.f32 %v934_v46, %v535_v31 }
 0x2ef   : > { %v790_v49 = vpack.c.bf16 %v568_v47, %v568_v47  ;;  %v560_v50 = vmul.f32 %v779_v42, %v551_v48 }
 0x2f1   : > { %v569_v51 = vadd.f32 %v780_v44, %v560_v50  ;;  %579 = vst.msk [vmem:[%s383_s29] sm:$0xf] %vm578_vm3, %v790_v49 }
 0x2f3   : > { %v791_v52 = vpack.c.bf16 %v569_v51, %v569_v51 }
 0x2f5   : > { %580 = vst.msk [vmem:[%s383_s29 + $0x4] sm:$0xf] %vm578_vm3, %v791_v52 }
 0x2f6   : > { %1120 = shalt.err (!%p1117_p8)
}
 0x2f7   : > { %s1121_s19 = scalar_lea.hbm %s1567_s30, 128  ;;  %s1125_s8 = scalar_lea.hbm %s1624_s6, 256 }
 0x2f8   : > { %p1122_p9 = scmp.ne.s32.totalorder %s1567_s30, %s1121_s19  ;;  %p1126_p2 = scmp.lt.u32.totalorder %s1567_s30, %s1624_s6 }
 0x2f9   : > { %p1127_p13 = scmp.lt.u32.totalorder %s1125_s8, %s1121_s19  ;;  %p1129_p1 = scmp.lt.u32.totalorder %s1121_s19, %s1567_s30 }
 0x2fa   : > { %p1123_p7 = pnand %p1122_p9, %p1427_p5 }
 0x2fb   : > { %p1128_p6 = por %p1127_p13, %p1126_p2 }
 0x2fc   : > { %p1124_p0 = pneg %p1123_p7 }
 0x2fd   : > { %p1130_p4 = por %p1129_p1, %p1128_p6 }
 0x2ff   : > { %p1131_p10 = pnand %p1130_p4, %p1124_p0 }
 0x301   : > { %1134 = shalt.err (!%p1131_p10)
}
 0x302   : > { %s1218_s2 = smov 64   ;;  %s1219_s7 = smov 4  }
 0x303   : > { %833 = dma.vmem_to_hbm [thread:$0]  (%p1427_p5), %s1569_s17, 128, %s1567_s30, %s582_s28, %s1218_s2, %s1218_s2, %s1219_s7  }
 0x304 PF: > { %s1660_s15 = sld [smem:[#allocation20_spill]]  ;;  %s1661_s27 = sld [smem:[#allocation21_spill]] }
 0x305   : > { %p1663_p11 = scmp.ge.s32.totalorder %s1205_s26, 2 }
 0x30a   : > { %s612_s29 = sand.u32 1, %s1660_s15   ;;  %p1662_p3 = scmp.ne.s32.totalorder %s1661_s27, 0 }
 0x30b   : > { %s613_s16 = scalar_lea.sflag [#allocation4], %s612_s29 }
 0x30c   : > { %p856_p12 = pnand %p1663_p11, %p1662_p3 }
 0x30e   : > { %1180 = dma.done.wait (!%p856_p12), %s613_s16, 128  }
 0x30f   : > { %1182 = vsyncadd (!%p856_p12), %s613_s16, 4294967168  ;;  %s27_s26 = sadd.s32 1, %s1205_s26   ;;  %s1664_s21 = smov %s1189_s22 }
 0x310   : > { %p24_p8 = scmp.ge.s32.totalorder %s27_s26, 4   ;;  %s1665_s22 = smov %s1193_s23 }
 0x311   : > { %s1666_s23 = smov %s1439_s9  ;;  %s1667_s24 = smov %s1201_s25 }
 0x312   : > { %s1668_s25 = smov %s1670_s20  ;;  %26 = sbr.rel (!%p24_p8) target bundleno = 15 (0xf), region = 120 }
 0x319   :  { %618 = vsyncpa [#allocation3], 1 }
 0x31a   :  { %620 = vsyncpa [#allocation3 + $0x1], 1 }
 0x31b   :  { %621 = vsyncpa [#allocation6], 1 }
 0x31c   :  { %622 = vsyncpa [#allocation9], 1 }
 0x31d   :  { %624 = vsyncpa [#allocation9 + $0x1], 1 }
 0x31e   :  { %625 = vsyncpa [#allocation12], 1 }
 0x31f   :  { %626 = vsyncpa [#allocation4], 1 }
 0x320   :  { %628 = vsyncpa [#allocation4 + $0x1], 1 }

// kernel: _lambda_.12
= control target key start
LH: loop header
LB: loop body
LE: loop exit
PB: predicated region body
PF: predicated region fallthrough
CT: control target
= control target key end

     0   :  { %s1738_s0 = inlined_call_operand.hbm [shape: bf16[2,2,16,16], index: 0, kind: input, shape index: {}]   ;;  %s1739_s1 = inlined_call_operand.hbm [shape: bf16[2,2,16,16], index: 1, kind: input, shape index: {}]   ;;  %s1740_s2 = inlined_call_operand.hbm [shape: bf16[2,2,16,16], index: 2, kind: input, shape index: {}]   ;;  %s1741_s3 = inlined_call_operand.hbm [shape: f32[2,1,16], index: 3, kind: input, shape index: {}]   ;;  %s1742_s4 = inlined_call_operand.hbm [shape: bf16[2,2,16,16], index: 4, kind: output, shape index: {}]  }
   0x1   :  { %1757 = sst [smem:[#allocation24_spill]] %s1739_s1 }
   0x2   :  { %1758 = sst [smem:[#allocation25_spill]] %s1742_s4 }
   0x3   :  { %9 = vsyncpa [#allocation6], 0 }
   0x4   :  { %11 = vsyncpa [#allocation6 + $0x1], 0 }
   0x5   :  { %12 = vsyncpa [#allocation9], 0 }
   0x6   :  { %14 = vsyncpa [#allocation9 + $0x1], 0 }
   0x7   :  { %15 = vsyncpa [#allocation12], 0 }
   0x8   :  { %17 = vsyncpa [#allocation12 + $0x1], 0 }
   0x9   :  { %18 = vsyncpa [#allocation7], 0 }
   0xa   :  { %20 = vsyncpa [#allocation7 + $0x1], 0  ;;  %s1302_s15 = smov 0   ;;  %s1304_s16 = smov 0  }
   0xb   :  { %s1306_s17 = smov 0   ;;  %s1308_s18 = smov 0  }
   0xc   :  { %s1310_s19 = smov 0   ;;  %s1312_s20 = smov 0  }
   0xd   :  { %s1314_s21 = smov 0   ;;  %s1316_s22 = smov 0  }
   0xe   :  { %s1318_s23 = smov 0   ;;  %s1320_s24 = smov 0  }
   0xf   :  { %s1322_s25 = smov 0  }
  0x10 LB: > { %1759 = sst [smem:[#allocation18_spill]] %s1246_s21  ;;  %s48_s26 = sadd.s32 1, %s1254_s23  ;;  %s1262_s25 = sphi %s1322_s25, %s26_s25   ;;  %s1258_s24 = sphi %s1320_s24, %s1803_s24   ;;  %s1254_s23 = sphi %s1318_s23, %s1794_s23   ;;  %s1250_s22 = sphi %s1316_s22, %s1802_s22   ;;  %s1246_s21 = sphi %s1314_s21, %s1793_s21   ;;  %s1242_s20 = sphi %s1312_s20, %s1801_s20   ;;  %s1238_s19 = sphi %s1310_s19, %s1800_s19   ;;  %s1234_s18 = sphi %s1308_s18, %s1799_s18   ;;  %s1230_s17 = sphi %s1306_s17, %s1798_s17   ;;  %s1226_s16 = sphi %s1304_s16, %s1797_s16   ;;  %s1222_s15 = sphi %s1302_s15, %s1796_s15  }
  0x11   : > { %1760 = sst [smem:[#allocation19_spill]] %s1250_s22  ;;  %s52_s27 = sadd.s32 1, %s1258_s24 }
  0x12   : > { %1761 = sst [smem:[#allocation20_spill]] %s1254_s23  ;;  %p50_p0 = scmp.ge.s32.totalorder %s48_s26, 2 }
  0x13   : > { %s63_s28 = sadd.s32 1, %s1242_s20  ;;  %p1748_p1 = scmp.ne.s32.totalorder %s1242_s20, %s1238_s19 }
  0x14   : > { %p1749_p2 = scmp.eq.s32.totalorder %s1262_s25, 0  ;;  %s1805_s26 = smov (%p50_p0, %s48_s26), 0 }
  0x15   : > { %1762 = sst [smem:[#allocation21_spill]] %s1805_s26  ;;  %s1807_s27 = smov (!%p50_p0, %s52_s27), %s1258_s24 }
  0x16   : > { %s57_s29 = ssub.s32 %s1254_s23, %s1805_s26  ;;  %p1373_p3 = por %p1749_p2, %p1748_p1 }
  0x17   : > { %p54_p4 = scmp.ge.s32.totalorder %s1807_s27, 2  ;;  %p1747_p5 = scmp.lt.s32.totalorder %s1262_s25, 4 }
  0x18   : > { %s1743_s5 = sand.u32 1, %s1242_s20   ;;  %s821_s7 = sshll.u32 %s1254_s23, 1 }
  0x19   : > { %s1809_s27 = smov (%p54_p4, %s1807_s27), 0  ;;  %s1383_s6 = sshll.u32 %s1743_s5, 3 }
  0x1a   : > { %1764 = sst [smem:[#allocation22_spill]] %s1809_s27  ;;  %s1388_s8 = ssub.s32 %s1258_s24, %s1809_s27 }
  0x1b   : > { %s822_s9 = sshll.u32 %s1258_s24, 2  ;;  %s58_s10 = sor.u32 %s57_s29, %s1388_s8 }
  0x1c   : > { %s230_s11 = sadd.s32 %s822_s9, %s821_s7  ;;  %p61_p6 = scmp.eq.s32.totalorder %s58_s10, 0 }
  0x1d   : > { %s1392_s12 = sshll.u32 %s230_s11, 6  ;;  %p1398_p7 = pnand %p1747_p5, %p1373_p3 }
  0x1e   : > { %s1403_s14 = scalar_select %p61_p6, %s1242_s20, %s63_s28  }
  0x1f   : > { %s243_s5 = sand.u32 1, %s1262_s25   ;;  %s1767_s1 = sld [smem:[#allocation24_spill]] }
  0x20   : > { %1766 = sst [smem:[#allocation23_spill]] %s1403_s14  ;;  %s247_s29 = scalar_lea.vmem [#allocation8], %s1383_s6 }
  0x21   : > { %s258_s30 = sshll.u32 %s247_s29, 4  ;;  %s1417_s7 = scalar_lea.sflag [#allocation9], %s243_s5  ;;  %s1414_s30 = int_to_ptr.vmem [resolvable:$true] %s258_s30 }
  0x22   : > { %p1423_p11 = pneg %p1398_p7 }
  0x25   : > { %s1410_s23 = scalar_lea.hbm %s1767_s1, %s1392_s12  ;;  %s1017_s10 = scalar_lea.hbm %s1767_s1, 512 }
  0x26   : > { %s1012_s28 = scalar_lea.hbm %s1410_s23, 128  ;;  %p1018_p0 = scmp.lt.u32.totalorder %s1410_s23, %s1767_s1 }
  0x27   : > { %p1013_p10 = scmp.ne.s32.totalorder %s1410_s23, %s1012_s28  ;;  %p1019_p3 = scmp.lt.u32.totalorder %s1017_s10, %s1012_s28 }
  0x28   : > { %p1021_p6 = scmp.lt.u32.totalorder %s1012_s28, %s1410_s23 }
  0x29   : > { %p1015_p12 = pnand %p1423_p11, %p1013_p10  ;;  %p1020_p4 = por %p1019_p3, %p1018_p0 }
  0x2b   : > { %p1016_p13 = pneg %p1015_p12  ;;  %p1022_p5 = por %p1021_p6, %p1020_p4 }
  0x2d   : > { %p1023_p1 = pnand %p1022_p5, %p1016_p13 }
  0x2f   : > { %1026 = shalt.err (!%p1023_p1)
}
  0x30   : > { %s1027_s5 = scalar_lea.vmem %s1414_s30, 128  ;;  %s1264_s26 = smov [#allocation8]  }
  0x31   : > { %p1028_p10 = scmp.ne.s32.totalorder %s1414_s30, %s1027_s5  ;;  %s1032_s27 = sshll.u32 %s1264_s26, 4  ;;  %s1033_s27 = int_to_ptr.vmem [resolvable:$false] %s1032_s27 }
  0x32   : > { %s1034_s11 = scalar_lea.vmem %s1033_s27, 256  ;;  %p1035_p8 = scmp.lt.s32.totalorder %s1414_s30, %s1033_s27 }
  0x33   : > { %p1030_p12 = pnand %p1028_p10, %p1423_p11  ;;  %p1036_p9 = scmp.lt.s32.totalorder %s1034_s11, %s1027_s5 }
  0x35   : > { %p1031_p2 = pneg %p1030_p12  ;;  %p1037_p0 = por %p1036_p9, %p1035_p8 }
  0x37   : > { %p1038_p3 = pnand %p1037_p0, %p1031_p2 }
  0x39   : > { %1041 = shalt.err (!%p1038_p3)
}
  0x3a   : > { %s1750_s28 = smov 64   ;;  %s1752_s10 = smov 4  }
  0x3b   : > { %886 = dma.hbm_to_vmem [thread:$0]  (!%p1398_p7), %s1410_s23, 128, %s1414_s30, %s1417_s7, %s1750_s28, %s1750_s28, %s1752_s10  }
  0x3c   : > { %p1769_p1 = scmp.lt.s32.totalorder %s1262_s25, 5  ;;  %p1770_p2 = scmp.ge.s32.totalorder %s1262_s25, 1 }
  0x3d   : > { %s1462_s27 = scalar_lea.hbm %s1738_s0, %s1392_s12  ;;  %s222_s11 = scalar_lea.vmem [#allocation5], %s1383_s6 }
  0x3e   : > { %p1454_p5 = pnand %p1770_p2, %p1769_p1  ;;  %s233_s1 = sshll.u32 %s222_s11, 4  ;;  %s1465_s1 = int_to_ptr.vmem [resolvable:$true] %s233_s1 }
  0x3f   : > { %s1471_s28 = scalar_lea.hbm %s1740_s2, %s1392_s12  ;;  %s1772_s10 = sand.u32 1, %s1242_s20  }
  0x40   : > { %s1771_s29 = scalar_select %p1454_p5, 1, 0 }
  0x41   : > { %s1475_s14 = scalar_lea.sflag [#allocation6], %s1772_s10  ;;  %s1042_s4 = scalar_lea.hbm %s1462_s27, 128 }
  0x42   : > { %p1043_p8 = scmp.ne.s32.totalorder %s1462_s27, %s1042_s4  ;;  %s1047_s22 = scalar_lea.hbm %s1738_s0, 512 }
  0x43   : > { %p1048_p4 = scmp.lt.u32.totalorder %s1462_s27, %s1738_s0  ;;  %p1049_p6 = scmp.lt.u32.totalorder %s1047_s22, %s1042_s4 }
  0x44   : > { %p1045_p9 = pnand %p1043_p8, %p1423_p11  ;;  %p1051_p12 = scmp.lt.u32.totalorder %s1042_s4, %s1462_s27 }
  0x45   : > { %p1050_p10 = por %p1049_p6, %p1048_p4 }
  0x46   : > { %p1046_p13 = pneg %p1045_p9 }
  0x47   : > { %p1052_p0 = por %p1051_p12, %p1050_p10 }
  0x49   : > { %p1053_p3 = pnand %p1052_p0, %p1046_p13 }
  0x4b   : > { %1056 = shalt.err (!%p1053_p3)
}
  0x4c   : > { %s1057_s12 = scalar_lea.vmem %s1465_s1, 128  ;;  %s1267_s10 = smov [#allocation5]  }
  0x4d   : > { %p1058_p1 = scmp.ne.s32.totalorder %s1465_s1, %s1057_s12  ;;  %s1062_s23 = sshll.u32 %s1267_s10, 4  ;;  %s1063_s23 = int_to_ptr.vmem [resolvable:$false] %s1062_s23 }
  0x4e   : > { %s1064_s21 = scalar_lea.vmem %s1063_s23, 256  ;;  %p1065_p9 = scmp.lt.s32.totalorder %s1465_s1, %s1063_s23 }
  0x4f   : > { %p1060_p2 = pnand %p1058_p1, %p1423_p11  ;;  %p1066_p5 = scmp.lt.s32.totalorder %s1064_s21, %s1057_s12 }
  0x51   : > { %p1061_p8 = pneg %p1060_p2  ;;  %p1067_p4 = por %p1066_p5, %p1065_p9 }
  0x53   : > { %p1068_p6 = pnand %p1067_p4, %p1061_p8 }
  0x55   : > { %1071 = shalt.err (!%p1068_p6)
}
  0x56   : > { %s1773_s4 = smov 4   ;;  %s1774_s22 = smov 64  }
  0x57   : > { %883 = dma.hbm_to_vmem [thread:$0]  (!%p1398_p7), %s1462_s27, 128, %s1465_s1, %s1475_s14, %s1774_s22, %s1774_s22, %s1773_s4  }
  0x58   : > { %s272_s30 = scalar_lea.vmem [#allocation10], %s1383_s6  ;;  %s1072_s26 = scalar_lea.hbm %s1471_s28, 128 }
  0x59   : > { %s283_s5 = sshll.u32 %s272_s30, 4  ;;  %p1073_p5 = scmp.ne.s32.totalorder %s1471_s28, %s1072_s26  ;;  %s1503_s5 = int_to_ptr.vmem [resolvable:$true] %s283_s5 }
  0x5a   : > { %s1077_s10 = scalar_lea.hbm %s1740_s2, 512  ;;  %p1078_p12 = scmp.lt.u32.totalorder %s1471_s28, %s1740_s2 }
  0x5b   : > { %p1075_p13 = pnand %p1073_p5, %p1423_p11  ;;  %p1079_p0 = scmp.lt.u32.totalorder %s1077_s10, %s1072_s26 }
  0x5c   : > { %p1081_p1 = scmp.lt.u32.totalorder %s1072_s26, %s1471_s28 }
  0x5d   : > { %p1076_p10 = pneg %p1075_p13  ;;  %p1080_p3 = por %p1079_p0, %p1078_p12 }
  0x5f   : > { %p1082_p2 = por %p1081_p1, %p1080_p3 }
  0x61   : > { %p1083_p8 = pnand %p1082_p2, %p1076_p10 }
  0x63   : > { %1086 = shalt.err (!%p1083_p8)
}
  0x64   : > { %s1087_s1 = scalar_lea.vmem %s1503_s5, 128  ;;  %s1268_s6 = smov [#allocation10]  }
  0x65   : > { %p1088_p9 = scmp.ne.s32.totalorder %s1503_s5, %s1087_s1  ;;  %s1092_s14 = sshll.u32 %s1268_s6, 4  ;;  %s1093_s14 = int_to_ptr.vmem [resolvable:$false] %s1092_s14 }
  0x66   : > { %s1094_s27 = scalar_lea.vmem %s1093_s14, 256  ;;  %p1095_p5 = scmp.lt.s32.totalorder %s1503_s5, %s1093_s14 }
  0x67   : > { %p1090_p4 = pnand %p1088_p9, %p1423_p11  ;;  %p1096_p13 = scmp.lt.s32.totalorder %s1094_s27, %s1087_s1 }
  0x69   : > { %p1091_p6 = pneg %p1090_p4  ;;  %p1097_p12 = por %p1096_p13, %p1095_p5 }
  0x6b   : > { %p1098_p0 = pnand %p1097_p12, %p1091_p6 }
  0x6d   : > { %1101 = shalt.err (!%p1098_p0)
}
  0x6e   : > { %889 = dma.hbm_to_vmem [thread:$0]  (!%p1398_p7), %s1471_s28, 128, %s1503_s5, %s1417_s7, %s1774_s22, %s1774_s22, %s1773_s4  }
  0x6f   : > { %s1531_s13 = sadd.s32 4294967295, %s1262_s25   ;;  %s817_s9 = sadd.s32 4294967294, %s1262_s25  }
  0x70   : > { %p76_p11 = scmp.ne.s32.totalorder %s1238_s19, %s1234_s18  ;;  %p77_p10 = scmp.eq.s32.totalorder %s1531_s13, 0 }
  0x71   : > { %p149_p3 = scmp.eq.s32.totalorder %s1388_s8, 0  ;;  %s151_s30 = sadd.s32 1, %s1230_s17 }
  0x72   : > { %p1542_p1 = por %p77_p10, %p76_p11  ;;  %p158_p7 = scmp.ne.s32.totalorder %s1230_s17, %s1226_s16 }
  0x73   : > { %s1549_s7 = scalar_select %p149_p3, %s1230_s17, %s151_s30  }
  0x74   : > { %p1776_p2 = scmp.eq.s32.totalorder %s1262_s25, 0  ;;  %p164_p9 = scmp.ne.s32.totalorder %s1226_s16, %s1222_s15 }
  0x75   : > { %p192_p4 = scmp.eq.s32.totalorder %s1531_s13, 3  ;;  %p198_p6 = scmp.eq.s32.totalorder %s817_s9, 3 }
  0x76   : > { %p1553_p8 = por %p158_p7, %p1776_p2  ;;  %p1560_p5 = por %p164_p9, %p77_p10 }
  0x77   : > { %s293_s4 = sand.u32 1, %s1230_s17   ;;  %p1779_p13 = scmp.ne.s32.totalorder %s1242_s20, %s1238_s19 }
  0x78   : > { %s1778_s8 = scalar_select %p1560_p5, 1, 0 }
  0x79   : > { %p1568_p12 = por %p192_p4, %p1779_p13  ;;  %p1575_p0 = por %p198_p6, %p76_p11 }
  0x7a   : > { %s832_s11 = sshll.u32 %s1258_s24, 4  ;;  %s296_s12 = scalar_lea.vmem [#allocation11], %s293_s4 }
  0x7b   : > { %s1780_s22 = scalar_select %p1568_p12, 1, 0 }
  0x7c   : > { %s1781_s5 = scalar_select %p1575_p0, 1, 0 }
  0x7d   : > { %s304_s15 = sshll.u32 %s296_s12, 4  ;;  %s1583_s21 = scalar_lea.hbm %s1741_s3, %s832_s11  ;;  %s1585_s15 = int_to_ptr.vmem [resolvable:$true] %s304_s15 }
  0x7e   : > { %p1782_p10 = scmp.lt.s32.totalorder %s1262_s25, 4  ;;  %s294_s6 = scalar_lea.sflag [#allocation12], %s293_s4 }
  0x7f   : > { %s1102_s14 = scalar_lea.hbm %s1583_s21, 16  ;;  %s1107_s30 = scalar_lea.hbm %s1741_s3, 32 }
  0x80   : > { %p1591_p11 = pnand %p1782_p10, %p1553_p8  ;;  %p1103_p3 = scmp.ne.s32.totalorder %s1583_s21, %s1102_s14 }
  0x81   : > { %p1108_p8 = scmp.lt.u32.totalorder %s1583_s21, %s1741_s3  ;;  %p1109_p4 = scmp.lt.u32.totalorder %s1107_s30, %s1102_s14 }
  0x82   : > { %p1104_p7 = pneg %p1591_p11  ;;  %p1111_p13 = scmp.lt.u32.totalorder %s1102_s14, %s1583_s21 }
  0x83   : > { %p1110_p6 = por %p1109_p4, %p1108_p8 }
  0x84   : > { %p1105_p2 = pnand %p1104_p7, %p1103_p3 }
  0x85   : > { %p1112_p10 = por %p1111_p13, %p1110_p6 }
  0x86   : > { %p1106_p9 = pneg %p1105_p2 }
  0x88   : > { %p1113_p0 = pnand %p1112_p10, %p1106_p9 }
  0x8a   : > { %1116 = shalt.err (!%p1113_p0)
}
  0x8b   : > { %s1117_s4 = scalar_lea.vmem %s1585_s15, 16  ;;  %s1269_s12 = smov [#allocation11]  }
  0x8c   : > { %p1118_p3 = scmp.ne.s32.totalorder %s1585_s15, %s1117_s4  ;;  %s1122_s10 = sshll.u32 %s1269_s12, 4  ;;  %s1123_s10 = int_to_ptr.vmem [resolvable:$false] %s1122_s10 }
  0x8d   : > { %s1124_s23 = scalar_lea.vmem %s1123_s10, 32  ;;  %p1125_p5 = scmp.lt.s32.totalorder %s1585_s15, %s1123_s10 }
  0x8e   : > { %p1120_p2 = pnand %p1118_p3, %p1104_p7  ;;  %p1126_p8 = scmp.lt.s32.totalorder %s1124_s23, %s1117_s4 }
  0x90   : > { %p1121_p12 = pneg %p1120_p2  ;;  %p1127_p4 = por %p1126_p8, %p1125_p5 }
  0x92   : > { %p1128_p6 = pnand %p1127_p4, %p1121_p12 }
  0x94   : > { %1131 = shalt.err (!%p1128_p6)
}
  0x95   : > { %892 = dma.hbm_to_vmem [thread:$0]  (!%p1591_p11), %s1583_s21, 16, %s1585_s15, %s294_s6  }
  0x96   : > { %p1784_p0 = scmp.ne.s32.totalorder %s1771_s29, 0 }
  0x97   : > { %s1623_s14 = sand.u32 (!%p1784_p0), 1, %s1238_s19  }
  0x98   : > { %313 = sbr.rel (%p1784_p0) target bundleno = 997 (0x3e5), region = 36  ;;  %s1626_s27 = sshll.u32 (!%p1784_p0), %s1623_s14, 3 }
  0x99   : > { %s316_s9 = scalar_lea.sflag (!%p1784_p0), [#allocation6], %s1623_s14  ;;  %s319_s30 = scalar_lea.vmem (!%p1784_p0), [#allocation5], %s1626_s27 }
  0x9f   : > { %1205 = dma.done.wait (%p1542_p1), %s316_s9, 128  }
  0xa0   : > { %1207 = vsyncadd (%p1542_p1), %s316_s9, 4294967168  ;;  %s324_s29 = sand.u32 1, %s1531_s13   ;;  %s328_s21 = scalar_lea.vmem [#allocation8], %s1626_s27 }
  0xa1   : > { %s325_s15 = scalar_lea.sflag [#allocation9], %s324_s29 }
  0xa2   : > { %1209 = dma.done.wait (%p1542_p1), %s325_s15, 256  }
  0xa3   : > { %1211 = vsyncadd (%p1542_p1), %s325_s15, 4294967040  ;;  %s342_s1 = sand.u32 1, %s1226_s16   ;;  %s337_s6 = scalar_lea.vmem [#allocation10], %s1626_s27 }
  0xa4   : > { %s343_s28 = scalar_lea.sflag [#allocation12], %s342_s1  ;;  %s345_s11 = scalar_lea.vmem [#allocation11], %s342_s1 }
  0xa5   : > { %p1785_p5 = scmp.ne.s32.totalorder %s1778_s8, 0 }
  0xa7   : > { %1213 = dma.done.wait (%p1785_p5), %s343_s28, 16  }
  0xa8   : > { %1215 = vsyncadd (%p1785_p5), %s343_s28, 4294967280  ;;  %vm398_vm0 = vcmask 130048   ;;  %v1270_v0 = vmov 0.0   ;;  %vm1271_vm1 = vmmov 0   ;;  %v997_v1 = vld [vmem:[%s328_s21] sm:$0xff]   ;;  %v998_v3 = vld [vmem:[%s319_s30] sm:$0xff]  }
  0xa9   : > { %858 = vmatprep.subr.bf16.mxu0 %v1270_v0  ;;  %399 = vst.msk [vmem:[#allocation4] sm:$0xff] %vm398_vm0, %v1270_v0  ;;  %400 = vst.msk [vmem:[#allocation4 + $0x8] sm:$0xff] %vm398_vm0, %v1270_v0  ;;  %860 = vmatprep.mubr.msk.bf16.mxu0 %vm1271_vm1, %v1270_v0  ;;  %v429_v2 = vsel %vm398_vm0, %v997_v1, 0  ;;  %vm393_vm2 = vcmask 7168   ;;  %v1272_v4 = vmov -1e+30  }
  0xaa   : > { %864 = vmatprep.subr.bf16.mxu1 %v1270_v0  ;;  %866 = vmatprep.mubr.msk.bf16.mxu1 %vm1271_vm1, %v1270_v0  ;;  %394 = vst.msk [vmem:[#allocation2] sm:$0xff] %vm393_vm2, %v1272_v4  ;;  %395 = vst.msk [vmem:[#allocation2 + $0x8] sm:$0xff] %vm393_vm2, %v1272_v4  ;;  %v838_v5 = vld [vmem:[%s345_s11] ss:$0 sm:$0xff]  ;;  %v1273_v14 = vmov 0   ;;  %v999_v23 = vld [vmem:[%s337_s6] sm:$0xff]  }
  0xab   : > { %859 = vmatpush3.bf16.xpose.msra.mxu0 %v429_v2  ;;  %396 = vst.msk [vmem:[#allocation3] sm:$0xff] %vm393_vm2, %v1270_v0  ;;  %397 = vst.msk [vmem:[#allocation3 + $0x8] sm:$0xff] %vm393_vm2, %v1270_v0  ;;  %995 = vset.pattern.permute.xlu1 %v1273_v14  ;;  %s1786_s13 = sld [smem:[#allocation18_spill]]  ;;  %s1787_s26 = sld [smem:[#allocation19_spill]]  ;;  %vm621_vm3 = vcmask 125952  }
  0xac   : > { %996 = vset.pattern.permute.xlu0 %v1273_v14  ;;  %865 = vmatpush3.bf16.msra.mxu1 %v999_v23  ;;  %s383_s10 = scalar_lea.vmem [#allocation13], %s1626_s27  ;;  %s1788_s15 = sld [smem:[#allocation25_spill]] }
  0xad   : > { %s642_s23 = sshll.u32 %s383_s10, 4  ;;  %s625_s27 = scalar_lea.sflag [#allocation7], %s1623_s14  ;;  %s1675_s23 = int_to_ptr.vmem [resolvable:$true] %s642_s23 }
  0xae   : > { %s1132_s6 = scalar_lea.vmem %s1675_s23, 128  ;;  %p1790_p12 = scmp.ne.s32.totalorder %s1780_s22, 0 }
  0xaf   : > { %p1133_p1 = scmp.ne.s32.totalorder %s1675_s23, %s1132_s6  ;;  %s1274_s28 = smov [#allocation13]  }
  0xb0   : > { %v519_v53 = vld [vmem:[#allocation4] sm:$0xff]  ;;  %v520_v55 = vld [vmem:[#allocation4 + $0x8] sm:$0xff]  ;;  %s1136_s11 = sshll.u32 %s1274_s28, 4  ;;  %s1137_s11 = int_to_ptr.vmem [resolvable:$false] %s1136_s11 }
  0xb1   : > { %v472_v15 = vld [vmem:[#allocation2] sm:$0xff]  ;;  %v473_v18 = vld [vmem:[#allocation2 + $0x8] sm:$0xff]  ;;  %s847_s8 = sshll.u32 %s1786_s13, 1  ;;  %s848_s4 = sshll.u32 %s1787_s26, 2 }
  0xb2   : > { %861 = vmatmul.mubr.msk.bf16.vlgmr.msra.gmra.mrb[0].mxu0 %vm398_vm0, %v998_v3  ;;  %v504_v39 = vld [vmem:[#allocation3] sm:$0xff]  ;;  %v505_v42 = vld [vmem:[#allocation3 + $0x8] sm:$0xff]  ;;  %s639_s12 = sadd.s32 %s848_s4, %s847_s8  ;;  %s1789_s1 = smov %s1788_s15 }
  0xb3   : > { %s849_s9 = sshll.u32 %s639_s12, 6  ;;  %p1134_p11 = pnand %p1133_p1, %p1790_p12 }
  0xb4   : > { %s1673_s21 = scalar_lea.hbm %s1788_s15, %s849_s9  ;;  %s1138_s13 = scalar_lea.vmem %s1137_s11, 256 }
  0xb5   : > { %p1135_p7 = pneg %p1134_p11  ;;  %p1139_p9 = scmp.lt.s32.totalorder %s1675_s23, %s1137_s11 }
  0xb6   : > { %p1140_p13 = scmp.lt.s32.totalorder %s1138_s13, %s1132_s6 }
  0xb8   : > { %p1141_p10 = por %p1140_p13, %p1139_p9 }
  0xba   : > { %p1142_p3 = pnand %p1141_p10, %p1135_p7 }
 0x185   : > { %v465_v6 = vpop.f32.mrb[0].mxu0 }
 0x186   : > { %v466_v7 = vadd.f32 %v838_v5, %v465_v6  ;;  %v862_v8 = vpop.f32.mrb[1].mxu0 }
 0x187   : > { %v468_v9 = vpop.f32.mrb[2].mxu0 }
 0x188   : > { %v469_v10 = vadd.f32 %v838_v5, %v468_v9  ;;  %v863_v11 = vpop.f32.mrb[3].mxu0  ;;  %v474_v12 = vsel %vm398_vm0, %v466_v7, -inf }
 0x189   : > { %475 = vmax.xlane.f32.xlu0 %v474_v12 }
 0x18a   : > { %v477_v13 = vsel %vm398_vm0, %v469_v10, -inf }
 0x18d   : > { %478 = vmax.xlane.f32.xlu0 %v477_v13 }
 0x216   : > { %v476_v16 = vpop.xlane.xlu0 %475 }
 0x217   : > { %v480_v17 = vmax.f32 %v472_v15, %v476_v16 }
 0x219   : > { %v482_v19 = vsub.f32 %v472_v15, %v480_v17  ;;  %588 = vst.msk [vmem:[#allocation2] sm:$0xff] %vm393_vm2, %v480_v17  ;;  %490 = vperm.xlu1 %995, %v480_v17  }
 0x21a   : > { %v479_v20 = vpop.xlane.xlu0 %478 }
 0x21b   : > { %v481_v21 = vmax.f32 %v473_v18, %v479_v20  ;;  %v484_v36 = vmul.f32 1.442695, %v482_v19 }
 0x21d   : > { %v483_v22 = vsub.f32 %v473_v18, %v481_v21  ;;  %589 = vst.msk [vmem:[#allocation2 + $0x8] sm:$0xff] %vm393_vm2, %v481_v21  ;;  %495 = vperm.xlu1 %995, %v481_v21  }
 0x21f   : > { %v486_v35 = vmul.f32 1.442695, %v483_v22 }
 0x298   : > { %v491_v24 = vpop.permute.xlu1 %490 }
 0x299   : > { %v498_v25 = vsub.f32 %v466_v7, %v491_v24 }
 0x29b   : > { %v500_v26 = vmul.f32 1.442695, %v498_v25 }
 0x29c   : > { %v496_v27 = vpop.permute.xlu1 %495 }
 0x29d   : > { %1000 = vpow2.f32 %v500_v26  ;;  %v499_v28 = vsub.f32 %v469_v10, %v496_v27 }
 0x29f   : > { %v502_v29 = vmul.f32 1.442695, %v499_v28 }
 0x2a1   : > { %1002 = vpow2.f32 %v502_v29 }
 0x2a2   : > { %1004 = vpow2.f32 %v486_v35 }
 0x2a3   : > { %1006 = vpow2.f32 %v484_v36 }
 0x2a7   : > { %v1001_v30 = vpop.eup %1000 }
 0x2a8   : > { %v508_v31 = vsel %vm398_vm0, %v1001_v30, 0.0 }
 0x2a9   : > { %509 = vadd.xlane.f32.xlu0 %v508_v31 }
 0x2ab   : > { %v1003_v32 = vpop.eup %1002 }
 0x2ac   : > { %v511_v33 = vsel %vm398_vm0, %v1003_v32, 0.0  ;;  %v533_v34 = vpack.c.bf16 %v1003_v32, %v1001_v30  ;;  %v1005_v37 = vpop.eup %1004 }
 0x2ad   : > { %512 = vadd.xlane.f32.xlu1 %v511_v33  ;;  %v1007_v38 = vpop.eup %1006  ;;  %v507_v44 = vmul.f32 %v1005_v37, %v505_v42 }
 0x2ae   : > { %867 = vmatmul.mubr.msk.bf16.vlgmr.msra.gmra.mrb[0].mxu1 %vm398_vm0, %v533_v34  ;;  %v506_v40 = vmul.f32 %v1007_v38, %v504_v39 }
 0x2be   : > { %528 = vperm.xlu1 %995, %v1005_v37  }
 0x2bf   : > { %523 = vperm.xlu0 %996, %v1007_v38  }
 0x336   : > { %v510_v41 = vpop.xlane.xlu0 %509 }
 0x337   : > { %v514_v43 = vadd.f32 %v510_v41, %v506_v40 }
 0x339   : > { %517 = vst.msk [vmem:[#allocation3] sm:$0xff] %vm393_vm2, %v514_v43 }
 0x33a   : > { %v513_v45 = vpop.xlane.xlu1 %512 }
 0x33b   : > { %v515_v46 = vadd.f32 %v513_v45, %v507_v44 }
 0x33d   : > { %518 = vst.msk [vmem:[#allocation3 + $0x8] sm:$0xff] %vm393_vm2, %v515_v46 }
 0x33e   : > { %v524_v54 = vpop.permute.xlu0 %523  ;;  %v529_v56 = vpop.permute.xlu1 %528 }
 0x33f   : > { %v531_v57 = vmul.f32 %v524_v54, %v519_v53  ;;  %v532_v59 = vmul.f32 %v529_v56, %v520_v55 }
 0x340   : > { %v593_v47 = vld [vmem:[#allocation3] sm:$0xff] }
 0x341   : > { %v595_v48 = vmax.f32 %v593_v47, 1e-30 }
 0x343   : > { %1008 = vrcp.f32 %v595_v48 }
 0x344   : > { %v594_v49 = vld [vmem:[#allocation3 + $0x8] sm:$0xff] }
 0x345   : > { %v596_v50 = vmax.f32 %v594_v49, 1e-30 }
 0x347   : > { %1010 = vrcp.f32 %v596_v50 }
 0x34d   : > { %v1009_v51 = vpop.eup %1008 }
 0x34e   : > { %603 = vperm.xlu0 %996, %v1009_v51  }
 0x351   : > { %v1011_v52 = vpop.eup %1010 }
 0x352   : > { %608 = vperm.xlu0 %996, %v1011_v52  }
 0x381   : > { %v577_v58 = vpop.f32.mrb[0].mxu1 }
 0x382   : > { %v584_v60 = vadd.f32 %v577_v58, %v531_v57  ;;  %v868_v61 = vpop.f32.mrb[1].mxu1 }
 0x383   : > { %v580_v62 = vpop.f32.mrb[2].mxu1 }
 0x384   : > { %586 = vst.msk [vmem:[#allocation4] sm:$0xff] %vm398_vm0, %v584_v60  ;;  %v585_v63 = vadd.f32 %v580_v62, %v532_v59  ;;  %v869_v0 = vpop.f32.mrb[3].mxu1 }
 0x386   : > { %587 = vst.msk [vmem:[#allocation4 + $0x8] sm:$0xff] %vm398_vm0, %v585_v63 }
 0x38b   : > { %v599_v1 = vld [vmem:[#allocation4] sm:$0xff] }
 0x38d   : > { %v600_v5 = vld [vmem:[#allocation4 + $0x8] sm:$0xff] }
 0x3cd   : > { %v604_v2 = vpop.permute.xlu0 %603 }
 0x3ce   : > { %v611_v3 = vmul.f32 %v604_v2, %v599_v1 }
 0x3d0   : > { %v852_v4 = vpack.c.bf16 %v611_v3, %v611_v3 }
 0x3d1   : > { %v609_v6 = vpop.permute.xlu0 %608 }
 0x3d2   : > { %622 = vst.msk [vmem:[%s383_s10] sm:$0xf] %vm621_vm3, %v852_v4  ;;  %v612_v7 = vmul.f32 %v609_v6, %v600_v5 }
 0x3d4   : > { %v853_v8 = vpack.c.bf16 %v612_v7, %v612_v7 }
 0x3d6   : > { %623 = vst.msk [vmem:[%s383_s10 + $0x4] sm:$0xf] %vm621_vm3, %v853_v8 }
 0x3d7   : > { %1145 = shalt.err (!%p1142_p3)
}
 0x3d8   : > { %s1146_s26 = scalar_lea.hbm %s1673_s21, 128  ;;  %s1150_s12 = scalar_lea.hbm %s1789_s1, 512 }
 0x3d9   : > { %p1147_p2 = scmp.ne.s32.totalorder %s1673_s21, %s1146_s26  ;;  %p1151_p6 = scmp.lt.u32.totalorder %s1673_s21, %s1789_s1 }
 0x3da   : > { %p1152_p0 = scmp.lt.u32.totalorder %s1150_s12, %s1146_s26  ;;  %p1154_p1 = scmp.lt.u32.totalorder %s1146_s26, %s1673_s21 }
 0x3db   : > { %p1148_p8 = pnand %p1147_p2, %p1790_p12 }
 0x3dc   : > { %p1153_p5 = por %p1152_p0, %p1151_p6 }
 0x3dd   : > { %p1149_p4 = pneg %p1148_p8 }
 0x3de   : > { %p1155_p11 = por %p1154_p1, %p1153_p5 }
 0x3e0   : > { %p1156_p7 = pnand %p1155_p11, %p1149_p4 }
 0x3e2   : > { %1159 = shalt.err (!%p1156_p7)
}
 0x3e3   : > { %s1275_s30 = smov 64   ;;  %s1276_s29 = smov 4  }
 0x3e4   : > { %878 = dma.vmem_to_hbm [thread:$0]  (%p1790_p12), %s1675_s23, 128, %s1673_s21, %s625_s27, %s1275_s30, %s1275_s30, %s1276_s29  }
 0x3e5 PF: > { %p898_p9 = scmp.ge.s32.totalorder %s1262_s25, 2  ;;  %s657_s15 = sand.u32 1, %s1234_s18  }
 0x3e6   : > { %p1791_p13 = scmp.ne.s32.totalorder %s1781_s5, 0  ;;  %s658_s6 = scalar_lea.sflag [#allocation7], %s657_s15 }
 0x3e8   : > { %p894_p10 = pnand %p898_p9, %p1791_p13 }
 0x3ea   : > { %1217 = dma.done.wait (!%p894_p10), %s658_s6, 128  }
 0x3eb   : > { %1219 = vsyncadd (!%p894_p10), %s658_s6, 4294967168  ;;  %s26_s25 = sadd.s32 1, %s1262_s25   ;;  %s1792_s22 = sld [smem:[#allocation23_spill]] }
 0x3ec   : > { %p23_p3 = scmp.ge.s32.totalorder %s26_s25, 6   ;;  %s1793_s21 = sld [smem:[#allocation20_spill]] }
 0x3ed   : > { %s1794_s23 = sld [smem:[#allocation21_spill]]  ;;  %s1795_s14 = sld [smem:[#allocation22_spill]] }
 0x3ee   : > { %s1796_s15 = smov %s1226_s16  ;;  %s1797_s16 = smov %s1230_s17 }
 0x3ef   : > { %s1798_s17 = smov %s1549_s7  ;;  %s1799_s18 = smov %s1238_s19 }
 0x3f0   : > { %s1800_s19 = smov %s1242_s20  ;;  %25 = sbr.rel (!%p23_p3) target bundleno = 16 (0x10), region = 126 }
 0x3f1   : > { %s1801_s20 = smov %s1792_s22  ;;  %s1802_s22 = smov %s1258_s24 }
 0x3f3   : > { %s1803_s24 = smov %s1795_s14 }
 0x3f7   :  { %663 = vsyncpa [#allocation6], 1 }
 0x3f8   :  { %665 = vsyncpa [#allocation6 + $0x1], 1 }
 0x3f9   :  { %666 = vsyncpa [#allocation9], 1 }
 0x3fa   :  { %668 = vsyncpa [#allocation9 + $0x1], 1 }
 0x3fb   :  { %669 = vsyncpa [#allocation12], 1 }
 0x3fc   :  { %671 = vsyncpa [#allocation12 + $0x1], 1 }
 0x3fd   :  { %672 = vsyncpa [#allocation7], 1 }
 0x3fe   :  { %674 = vsyncpa [#allocation7 + $0x1], 1 }

// kernel: _lambda_.19
= control target key start
LH: loop header
LB: loop body
LE: loop exit
PB: predicated region body
PF: predicated region fallthrough
CT: control target
= control target key end

     0   :  { %10 = vsyncpa [#allocation3], 0  ;;  %s538_s0 = inlined_call_operand.hbm [shape: bf16[8,32], index: 0, kind: input, shape index: {}]   ;;  %s539_s1 = inlined_call_operand.hbm [shape: bf16[32,32], index: 1, kind: input, shape index: {}]   ;;  %s540_s2 = inlined_call_operand.hbm [shape: f32[1,32], index: 2, kind: input, shape index: {}]   ;;  %s541_s3 = inlined_call_operand.hbm [shape: bf16[32,128], index: 3, kind: input, shape index: {}]   ;;  %s542_s4 = inlined_call_operand.hbm [shape: f32[1,128], index: 4, kind: input, shape index: {}]   ;;  %s543_s5 = inlined_call_operand.hbm [shape: f32[8,128], index: 5, kind: output, shape index: {}]  }
   0x1   :  { %11 = vsyncpa [#allocation6], 0 }
   0x2   :  { %12 = vsyncpa [#allocation9], 0 }
   0x3   :  { %13 = vsyncpa [#allocation4], 0  ;;  %s424_s18 = smov [#allocation5]   ;;  %s284_s22 = scalar_lea.hbm %s539_s1, 256 }
   0x4   :  { %s29_s19 = sshll.u32 %s424_s18, 4  ;;  %p285_p0 = scmp.ne.s32.totalorder %s539_s1, %s284_s22  ;;  %s30_s19 = int_to_ptr.vmem [resolvable:$true] %s29_s19 }
   0x5   :  { %p288_p1 = scmp.lt.u32.totalorder %s284_s22, %s539_s1 }
   0x7   :  { %p290_p2 = pnand %p288_p1, %p285_p0 }
   0x9   :  { %293 = shalt.err (!%p290_p2)
}
   0xa   :  { %s294_s27 = scalar_lea.vmem %s30_s19, 256  ;;  %p299_p4 = scmp.lt.s32.totalorder %s30_s19, %s30_s19 }
   0xb   :  { %p295_p3 = scmp.ne.s32.totalorder %s30_s19, %s294_s27  ;;  %p300_p5 = scmp.lt.s32.totalorder %s294_s27, %s294_s27 }
   0xd   :  { %p301_p6 = por %p300_p5, %p299_p4 }
   0xf   :  { %p302_p7 = pnand %p301_p6, %p295_p3 }
  0x11   :  { %305 = shalt.err (!%p302_p7)
}
  0x12   :  { %s425_s28 = smov 64   ;;  %s426_s29 = smov 4  }
  0x13   :  { %35 = dma.hbm_to_vmem [thread:$0]  %s539_s1, 256, %s30_s19, [#allocation6], %s425_s28, %s425_s28, %s426_s29  }
  0x14   :  { %s427_s7 = smov [#allocation8]   ;;  %s428_s9 = smov [#allocation2]  }
  0x15   :  { %s51_s8 = sshll.u32 %s427_s7, 4  ;;  %s20_s10 = sshll.u32 %s428_s9, 4  ;;  %s52_s8 = int_to_ptr.vmem [resolvable:$true] %s51_s8  ;;  %s21_s10 = int_to_ptr.vmem [resolvable:$true] %s20_s10 }
  0x16   :  { %s306_s13 = scalar_lea.hbm %s541_s3, 256 }
  0x17   :  { %p307_p8 = scmp.ne.s32.totalorder %s541_s3, %s306_s13  ;;  %p310_p9 = scmp.lt.u32.totalorder %s306_s13, %s541_s3 }
  0x19   :  { %p312_p10 = pnand %p310_p9, %p307_p8 }
  0x1b   :  { %315 = shalt.err (!%p312_p10)
}
  0x1c   :  { %s316_s1 = scalar_lea.vmem %s52_s8, 256  ;;  %p321_p12 = scmp.lt.s32.totalorder %s52_s8, %s52_s8 }
  0x1d   :  { %p317_p11 = scmp.ne.s32.totalorder %s52_s8, %s316_s1  ;;  %p322_p13 = scmp.lt.s32.totalorder %s316_s1, %s316_s1 }
  0x1f   :  { %p323_p0 = por %p322_p13, %p321_p12 }
  0x21   :  { %p324_p1 = pnand %p323_p0, %p317_p11 }
  0x23   :  { %327 = shalt.err (!%p324_p1)
}
  0x24   :  { %57 = dma.hbm_to_vmem [thread:$0]  %s541_s3, 256, %s52_s8, [#allocation9], %s425_s28, %s425_s28, %s426_s29  }
  0x25   :  { %s328_s22 = scalar_lea.hbm %s538_s0, 64 }
  0x26   :  { %p329_p2 = scmp.ne.s32.totalorder %s538_s0, %s328_s22  ;;  %p332_p3 = scmp.lt.u32.totalorder %s328_s22, %s538_s0 }
  0x28   :  { %p334_p4 = pnand %p332_p3, %p329_p2 }
  0x2a   :  { %337 = shalt.err (!%p334_p4)
}
  0x2b   :  { %s338_s27 = scalar_lea.vmem %s21_s10, 64  ;;  %p343_p6 = scmp.lt.s32.totalorder %s21_s10, %s21_s10 }
  0x2c   :  { %p339_p5 = scmp.ne.s32.totalorder %s21_s10, %s338_s27  ;;  %p344_p7 = scmp.lt.s32.totalorder %s338_s27, %s338_s27 }
  0x2e   :  { %p345_p8 = por %p344_p7, %p343_p6 }
  0x30   :  { %p346_p9 = pnand %p345_p8, %p339_p5 }
  0x32   :  { %349 = shalt.err (!%p346_p9)
}
  0x33   :  { %23 = dma.hbm_to_vmem [thread:$0]  %s538_s0, 64, %s21_s10, [#allocation3]  }
  0x34   :  { %s429_s29 = smov [#allocation7]   ;;  %s430_s6 = smov [#allocation10]  }
  0x35   :  { %s42_s30 = sshll.u32 %s429_s29, 4  ;;  %s64_s7 = sshll.u32 %s430_s6, 4  ;;  %s43_s30 = int_to_ptr.vmem [resolvable:$true] %s42_s30  ;;  %s65_s7 = int_to_ptr.vmem [resolvable:$true] %s64_s7 }
  0x36   :  { %s350_s11 = scalar_lea.hbm %s540_s2, 16 }
  0x37   :  { %p351_p10 = scmp.ne.s32.totalorder %s540_s2, %s350_s11  ;;  %p354_p11 = scmp.lt.u32.totalorder %s350_s11, %s540_s2 }
  0x39   :  { %p356_p12 = pnand %p354_p11, %p351_p10 }
  0x3b   :  { %359 = shalt.err (!%p356_p12)
}
  0x3c   :  { %s360_s0 = scalar_lea.vmem %s43_s30, 16  ;;  %s364_s10 = scalar_lea.vmem %s43_s30, 32 }
  0x3d   :  { %p361_p13 = scmp.ne.s32.totalorder %s43_s30, %s360_s0  ;;  %p365_p0 = scmp.lt.s32.totalorder %s43_s30, %s43_s30 }
  0x3e   :  { %p366_p1 = scmp.lt.s32.totalorder %s364_s10, %s360_s0 }
  0x40   :  { %p367_p2 = por %p366_p1, %p365_p0 }
  0x42   :  { %p368_p3 = pnand %p367_p2, %p361_p13 }
  0x44   :  { %371 = shalt.err (!%p368_p3)
}
  0x45   :  { %45 = dma.hbm_to_vmem [thread:$0]  %s540_s2, 16, %s43_s30, [#allocation6]  }
  0x46   :  { %s372_s19 = scalar_lea.hbm %s542_s4, 16 }
  0x47   :  { %p373_p4 = scmp.ne.s32.totalorder %s542_s4, %s372_s19  ;;  %p376_p5 = scmp.lt.u32.totalorder %s372_s19, %s542_s4 }
  0x49   :  { %p378_p6 = pnand %p376_p5, %p373_p4 }
  0x4b   :  { %381 = shalt.err (!%p378_p6)
}
  0x4c   :  { %s382_s24 = scalar_lea.vmem %s65_s7, 16  ;;  %s386_s25 = scalar_lea.vmem %s65_s7, 32 }
  0x4d   :  { %p383_p7 = scmp.ne.s32.totalorder %s65_s7, %s382_s24  ;;  %p387_p8 = scmp.lt.s32.totalorder %s65_s7, %s65_s7 }
  0x4e   :  { %p388_p9 = scmp.lt.s32.totalorder %s386_s25, %s382_s24 }
  0x50   :  { %p389_p10 = por %p388_p9, %p387_p8 }
  0x52   :  { %p390_p11 = pnand %p389_p10, %p383_p7 }
  0x54   :  { %393 = shalt.err (!%p390_p11)
}
  0x55   :  { %67 = dma.hbm_to_vmem [thread:$0]  %s542_s4, 16, %s65_s7, [#allocation9]  }
  0x56   :  { %416 = dma.done.wait [#allocation3], 64  }
  0x57   :  { %417 = vsyncadd [#allocation3], 4294967232 }
  0x58   :  { %418 = dma.done.wait [#allocation6], 272  }
  0x59   :  { %419 = vsyncadd [#allocation6], 4294967024 }
  0x5a   :  { %420 = dma.done.wait [#allocation9], 272  }
  0x5b   :  { %421 = vsyncadd [#allocation9], 4294967024  ;;  %v431_v0 = vmov 0.0   ;;  %vm432_vm0 = vmmov 0   ;;  %v278_v1 = vld [vmem:[#allocation5] sm:$0xff]   ;;  %v279_v2 = vld [vmem:[#allocation5 + $0x8] sm:$0xff]  }
  0x5c   :  { %252 = vmatprep.subr.bf16.mxu0 %v431_v0  ;;  %256 = vmatprep.mubr.msk.bf16.mxu0 %vm432_vm0, %v431_v0  ;;  %v84_v3 = vld [vmem:[#allocation2] sm:$0xf]  ;;  %vm108_vm1 = vcmask 261120   ;;  %v280_v4 = vld [vmem:[#allocation8] sm:$0xff]   ;;  %v238_v6 = vld [vmem:[#allocation7] ss:$0 sm:$0xff] }
  0x5d   :  { %260 = vmatprep.subr.bf16.mxu1 %v431_v0  ;;  %264 = vmatprep.mubr.msk.bf16.mxu1 %vm432_vm0, %v431_v0  ;;  %v281_v5 = vld [vmem:[#allocation8 + $0x8] sm:$0xff]   ;;  %v242_v14 = vld [vmem:[#allocation10] ss:$0 sm:$0xff]  ;;  %s433_s4 = smov [#allocation11]  }
  0x5e   :  { %253 = vmatpush3.bf16.msra.mxu0 %v278_v1  ;;  %261 = vmatpush3.bf16.msra.mxu1 %v280_v4  ;;  %s227_s27 = sshll.u32 %s433_s4, 4  ;;  %s228_s27 = int_to_ptr.vmem [resolvable:$true] %s227_s27 }
  0x5f   :  { %254 = vmatprep.subr.bf16.mxu0 %v431_v0  ;;  %262 = vmatprep.subr.bf16.mxu1 %v431_v0  ;;  %s394_s3 = scalar_lea.vmem %s228_s27, 128  ;;  %p399_p13 = scmp.lt.s32.totalorder %s228_s27, %s228_s27 }
  0x60   :  { %p395_p12 = scmp.ne.s32.totalorder %s228_s27, %s394_s3  ;;  %p400_p0 = scmp.lt.s32.totalorder %s394_s3, %s394_s3 }
  0x62   :  { %255 = vmatpush3.bf16.msra.mxu0 %v279_v2  ;;  %263 = vmatpush3.bf16.msra.mxu1 %v281_v5  ;;  %p401_p1 = por %p400_p0, %p399_p13 }
  0x64   :  { %p402_p2 = pnand %p401_p1, %p395_p12 }
  0x65   :  { %257 = vmatmul.mubr.msk.bf16.vlgmr.msra.gmra.mrb[0].mxu0 %vm108_vm1, %v84_v3 }
 0x138   :  { %v146_v7 = vpop.f32.mrb[0].mxu0 }
 0x139   :  { %v147_v8 = vadd.f32 %v238_v6, %v146_v7  ;;  %v258_v9 = vpop.f32.mrb[1].mxu0 }
 0x13a   :  { %v149_v10 = vpop.f32.mrb[2].mxu0 }
 0x13b   :  { %282 = vtanh.f32 %v147_v8  ;;  %v259_v11 = vpop.f32.mrb[3].mxu0 }
 0x145   :  { %v283_v12 = vpop.eup %282 }
 0x146   :  { %v153_v13 = vpack.c.bf16 %v283_v12, %v283_v12 }
 0x148   :  { %265 = vmatmul.mubr.msk.bf16.vlgmr.msra.gmra.mrb[0].mxu1 %vm108_vm1, %v153_v13 }
 0x21b   :  { %v214_v15 = vpop.f32.mrb[0].mxu1 }
 0x21c   :  { %v215_v16 = vadd.f32 %v242_v14, %v214_v15  ;;  %v266_v17 = vpop.f32.mrb[1].mxu1 }
 0x21d   :  { %v217_v18 = vpop.f32.mrb[2].mxu1 }
 0x21e   :  { %220 = vst [vmem:[#allocation11] sm:$0xff] %v215_v16  ;;  %v267_v19 = vpop.f32.mrb[3].mxu1 }
 0x21f   :  { %405 = shalt.err (!%p402_p2)
}
 0x220   :  { %s406_s30 = scalar_lea.hbm %s543_s5, 128 }
 0x221   :  { %p407_p3 = scmp.ne.s32.totalorder %s543_s5, %s406_s30  ;;  %p410_p4 = scmp.lt.u32.totalorder %s406_s30, %s543_s5 }
 0x223   :  { %p412_p5 = pnand %p410_p4, %p407_p3 }
 0x225   :  { %415 = shalt.err (!%p412_p5)
}
 0x226   :  { %230 = dma.vmem_to_hbm [thread:$0]  %s228_s27, 128, %s543_s5, [#allocation4]  }
 0x227   :  { %422 = dma.done.wait [#allocation4], 128  }
 0x228   :  { %423 = vsyncadd [#allocation4], 4294967168 }
 0x229   :  { %234 = vsyncpa [#allocation3], 1 }
 0x22a   :  { %235 = vsyncpa [#allocation6], 1 }
 0x22b   :  { %236 = vsyncpa [#allocation9], 1 }
 0x22c   :  { %237 = vsyncpa [#allocation4], 1 }

// kernel: _lambda_.14
= control target key start
LH: loop header
LB: loop body
LE: loop exit
PB: predicated region body
PF: predicated region fallthrough
CT: control target
= control target key end

     0   :  { %s1792_s0 = inlined_call_operand.hbm [shape: bf16[2,16,32], index: 0, kind: input, shape index: {}]   ;;  %s1793_s1 = inlined_call_operand.hbm [shape: bf16[32,64], index: 1, kind: input, shape index: {}]   ;;  %s1794_s2 = inlined_call_operand.hbm [shape: f32[1,64], index: 2, kind: input, shape index: {}]   ;;  %s1795_s3 = inlined_call_operand.hbm [shape: bf16[64,32], index: 3, kind: input, shape index: {}]   ;;  %s1796_s4 = inlined_call_operand.hbm [shape: f32[1,32], index: 4, kind: input, shape index: {}]   ;;  %s1797_s5 = inlined_call_operand.hbm [shape: f32[1,32], index: 5, kind: input, shape index: {}]   ;;  %s1798_s6 = inlined_call_operand.hbm [shape: f32[1,32], index: 6, kind: input, shape index: {}]   ;;  %s1799_s7 = inlined_call_operand.hbm [shape: bf16[2,16,32], index: 7, kind: output, shape index: {}]  }
   0x1   :  { %1808 = sst [smem:[#allocation21_spill]] %s1799_s7 }
   0x2   :  { %12 = vsyncpa [#allocation4], 0 }
   0x3   :  { %14 = vsyncpa [#allocation4 + $0x1], 0 }
   0x4   :  { %15 = vsyncpa [#allocation7], 0 }
   0x5   :  { %16 = vsyncpa [#allocation10], 0 }
   0x6   :  { %17 = vsyncpa [#allocation13], 0 }
   0x7   :  { %18 = vsyncpa [#allocation5], 0 }
   0x8   :  { %20 = vsyncpa [#allocation5 + $0x1], 0  ;;  %s1426_s24 = smov 0   ;;  %s1428_s25 = smov 0  }
   0x9   :  { %s1430_s26 = smov 0   ;;  %s1432_s27 = smov 0  }
   0xa   :  { %s1434_s28 = smov 0   ;;  %s1436_s29 = smov 0  }
   0xb LB: > { %s1800_s30 = sadd.s32 4294967295, %s1370_s29   ;;  %p858_p0 = scmp.ge.s32.totalorder %s1370_s29, 1  ;;  %s1370_s29 = sphi %s1436_s29, %s26_s29   ;;  %s1366_s28 = sphi %s1434_s28, %s1832_s28   ;;  %s1362_s27 = sphi %s1432_s27, %s1831_s27   ;;  %s1358_s26 = sphi %s1430_s26, %s1830_s26   ;;  %s1354_s25 = sphi %s1428_s25, %s1829_s25   ;;  %s1350_s24 = sphi %s1426_s24, %s1828_s24  }
   0xc   : > { %p1460_p1 = scmp.eq.s32.totalorder %s1800_s30, 0  ;;  %p247_p2 = scmp.lt.s32.totalorder %s1370_s29, 3 }
   0xd   : > { %s1372_s10 = smov [#allocation6]   ;;  %s1373_s13 = smov [#allocation9]  }
   0xe   : > { %s1809_s8 = scalar_select %p1460_p1, 1, 0 }
   0xf   : > { %p1465_p3 = pnand %p858_p0, %p247_p2  ;;  %s261_s11 = sshll.u32 %s1372_s10, 4  ;;  %s1469_s11 = int_to_ptr.vmem [resolvable:$true] %s261_s11 }
  0x10   : > { %s290_s14 = sshll.u32 %s1373_s13, 4  ;;  %s1374_s15 = smov [#allocation12]   ;;  %s1480_s14 = int_to_ptr.vmem [resolvable:$true] %s290_s14 }
  0x11   : > { %s1810_s9 = scalar_select %p1465_p3, 1, 0 }
  0x12   : > { %p962_p4 = pneg %p1465_p3  ;;  %s1482_s16 = sshll.u32 %s1374_s15, 4  ;;  %s316_s16 = int_to_ptr.vmem [resolvable:$true] %s1482_s16 }
  0x13   : > { %s1078_s19 = scalar_lea.hbm %s1793_s1, 256 }
  0x14   : > { %p1476_p6 = pnand %p962_p4, %p1460_p1  ;;  %p1079_p7 = scmp.ne.s32.totalorder %s1793_s1, %s1078_s19 }
  0x15   : > { %p1085_p11 = scmp.lt.u32.totalorder %s1078_s19, %s1793_s1 }
  0x16   : > { %p1492_p8 = pneg %p1476_p6 }
  0x18   : > { %p1081_p9 = pnand %p1492_p8, %p1079_p7 }
  0x1a   : > { %p1082_p10 = pneg %p1081_p9 }
  0x1c   : > { %p1087_p12 = pnand %p1085_p11, %p1082_p10 }
  0x1e   : > { %1090 = shalt.err (!%p1087_p12)
}
  0x1f   : > { %s1091_s13 = scalar_lea.vmem %s1469_s11, 256  ;;  %p1099_p4 = scmp.lt.s32.totalorder %s1469_s11, %s1469_s11 }
  0x20   : > { %p1092_p13 = scmp.ne.s32.totalorder %s1469_s11, %s1091_s13  ;;  %p1100_p5 = scmp.lt.s32.totalorder %s1091_s13, %s1091_s13 }
  0x22   : > { %p1094_p0 = pnand %p1092_p13, %p1492_p8  ;;  %p1101_p7 = por %p1100_p5, %p1099_p4 }
  0x24   : > { %p1095_p2 = pneg %p1094_p0 }
  0x26   : > { %p1102_p9 = pnand %p1101_p7, %p1095_p2 }
  0x28   : > { %1105 = shalt.err (!%p1102_p9)
}
  0x29   : > { %s1805_s15 = smov 64   ;;  %s1806_s17 = smov 4  }
  0x2a   : > { %965 = dma.hbm_to_vmem [thread:$0]  (!%p1476_p6), %s1793_s1, 256, %s1469_s11, [#allocation7], %s1805_s15, %s1805_s15, %s1806_s17  }
  0x2b   : > { %s1106_s23 = scalar_lea.hbm %s1795_s3, 512 }
  0x2c   : > { %p1107_p5 = scmp.ne.s32.totalorder %s1795_s3, %s1106_s23  ;;  %p1113_p12 = scmp.lt.u32.totalorder %s1106_s23, %s1795_s3 }
  0x2e   : > { %p1109_p10 = pnand %p1107_p5, %p1492_p8 }
  0x30   : > { %p1110_p11 = pneg %p1109_p10 }
  0x32   : > { %p1115_p13 = pnand %p1113_p12, %p1110_p11 }
  0x34   : > { %1118 = shalt.err (!%p1115_p13)
}
  0x35   : > { %s1119_s11 = scalar_lea.vmem %s1480_s14, 512  ;;  %p1127_p7 = scmp.lt.s32.totalorder %s1480_s14, %s1480_s14 }
  0x36   : > { %p1120_p0 = scmp.ne.s32.totalorder %s1480_s14, %s1119_s11  ;;  %p1128_p9 = scmp.lt.s32.totalorder %s1119_s11, %s1119_s11 }
  0x38   : > { %p1122_p2 = pnand %p1120_p0, %p1492_p8  ;;  %p1129_p5 = por %p1128_p9, %p1127_p7 }
  0x3a   : > { %p1123_p4 = pneg %p1122_p2 }
  0x3c   : > { %p1130_p10 = pnand %p1129_p5, %p1123_p4 }
  0x3e   : > { %1133 = shalt.err (!%p1130_p10)
}
  0x3f   : > { %971 = dma.hbm_to_vmem [thread:$0]  (!%p1476_p6), %s1795_s3, 512, %s1480_s14, [#allocation10], %s1805_s15, %s1805_s15, %s1806_s17  }
  0x40   : > { %s1134_s20 = scalar_lea.hbm %s1797_s5, 16 }
  0x41   : > { %p1135_p11 = scmp.ne.s32.totalorder %s1797_s5, %s1134_s20  ;;  %p1141_p0 = scmp.lt.u32.totalorder %s1134_s20, %s1797_s5 }
  0x43   : > { %p1137_p12 = pnand %p1135_p11, %p1492_p8 }
  0x45   : > { %p1138_p13 = pneg %p1137_p12 }
  0x47   : > { %p1143_p2 = pnand %p1141_p0, %p1138_p13 }
  0x49   : > { %1146 = shalt.err (!%p1143_p2)
}
  0x4a   : > { %s1147_s11 = scalar_lea.vmem %s316_s16, 16  ;;  %s1154_s14 = scalar_lea.vmem %s316_s16, 32 }
  0x4b   : > { %p1148_p4 = scmp.ne.s32.totalorder %s316_s16, %s1147_s11  ;;  %p1155_p5 = scmp.lt.s32.totalorder %s316_s16, %s316_s16 }
  0x4c   : > { %p1156_p10 = scmp.lt.s32.totalorder %s1154_s14, %s1147_s11 }
  0x4d   : > { %p1150_p7 = pnand %p1148_p4, %p1492_p8 }
  0x4e   : > { %p1157_p3 = por %p1156_p10, %p1155_p5 }
  0x4f   : > { %p1151_p9 = pneg %p1150_p7 }
  0x51   : > { %p1158_p1 = pnand %p1157_p3, %p1151_p9 }
  0x53   : > { %1161 = shalt.err (!%p1158_p1)
}
  0x54   : > { %977 = dma.hbm_to_vmem [thread:$0]  (!%p1476_p6), %s1797_s5, 16, %s316_s16, [#allocation13]  }
  0x55   : > { %s1377_s18 = smov [#allocation8]   ;;  %s1378_s20 = smov [#allocation11]  }
  0x56   : > { %s277_s19 = sshll.u32 %s1377_s18, 4  ;;  %s304_s21 = sshll.u32 %s1378_s20, 4  ;;  %s278_s19 = int_to_ptr.vmem [resolvable:$true] %s277_s19  ;;  %s305_s21 = int_to_ptr.vmem [resolvable:$true] %s304_s21 }
  0x57   : > { %s1162_s13 = scalar_lea.hbm %s1794_s2, 16 }
  0x58   : > { %p1163_p1 = scmp.ne.s32.totalorder %s1794_s2, %s1162_s13  ;;  %p1169_p12 = scmp.lt.u32.totalorder %s1162_s13, %s1794_s2 }
  0x5a   : > { %p1165_p3 = pnand %p1163_p1, %p1492_p8 }
  0x5c   : > { %p1166_p11 = pneg %p1165_p3 }
  0x5e   : > { %p1171_p13 = pnand %p1169_p12, %p1166_p11 }
  0x60   : > { %1174 = shalt.err (!%p1171_p13)
}
  0x61   : > { %s1175_s16 = scalar_lea.vmem %s278_s19, 16  ;;  %s1182_s30 = scalar_lea.vmem %s278_s19, 32 }
  0x62   : > { %p1176_p0 = scmp.ne.s32.totalorder %s278_s19, %s1175_s16  ;;  %p1183_p7 = scmp.lt.s32.totalorder %s278_s19, %s278_s19 }
  0x63   : > { %p1184_p9 = scmp.lt.s32.totalorder %s1182_s30, %s1175_s16 }
  0x64   : > { %p1178_p2 = pnand %p1176_p0, %p1492_p8 }
  0x65   : > { %p1185_p5 = por %p1184_p9, %p1183_p7 }
  0x66   : > { %p1179_p4 = pneg %p1178_p2 }
  0x68   : > { %p1186_p10 = pnand %p1185_p5, %p1179_p4 }
  0x6a   : > { %1189 = shalt.err (!%p1186_p10)
}
  0x6b   : > { %968 = dma.hbm_to_vmem [thread:$0]  (!%p1476_p6), %s1794_s2, 16, %s278_s19, [#allocation7]  }
  0x6c   : > { %s1190_s10 = scalar_lea.hbm %s1796_s4, 16 }
  0x6d   : > { %p1191_p1 = scmp.ne.s32.totalorder %s1796_s4, %s1190_s10  ;;  %p1197_p12 = scmp.lt.u32.totalorder %s1190_s10, %s1796_s4 }
  0x6f   : > { %p1193_p3 = pnand %p1191_p1, %p1492_p8 }
  0x71   : > { %p1194_p11 = pneg %p1193_p3 }
  0x73   : > { %p1199_p13 = pnand %p1197_p12, %p1194_p11 }
  0x75   : > { %1202 = shalt.err (!%p1199_p13)
}
  0x76   : > { %s1203_s16 = scalar_lea.vmem %s305_s21, 16  ;;  %s1210_s19 = scalar_lea.vmem %s305_s21, 32 }
  0x77   : > { %p1204_p0 = scmp.ne.s32.totalorder %s305_s21, %s1203_s16  ;;  %p1211_p7 = scmp.lt.s32.totalorder %s305_s21, %s305_s21 }
  0x78   : > { %p1212_p9 = scmp.lt.s32.totalorder %s1210_s19, %s1203_s16 }
  0x79   : > { %p1206_p2 = pnand %p1204_p0, %p1492_p8 }
  0x7a   : > { %p1213_p5 = por %p1212_p9, %p1211_p7 }
  0x7b   : > { %p1207_p4 = pneg %p1206_p2 }
  0x7d   : > { %p1214_p10 = pnand %p1213_p5, %p1207_p4 }
  0x7f   : > { %1217 = shalt.err (!%p1214_p10)
}
  0x80   : > { %974 = dma.hbm_to_vmem [thread:$0]  (!%p1476_p6), %s1796_s4, 16, %s305_s21, [#allocation10]  }
  0x81   : > { %s1379_s20 = smov [#allocation14]   ;;  %s1218_s13 = scalar_lea.hbm %s1798_s6, 16 }
  0x82   : > { %s326_s15 = sshll.u32 %s1379_s20, 4  ;;  %p1219_p1 = scmp.ne.s32.totalorder %s1798_s6, %s1218_s13  ;;  %s327_s15 = int_to_ptr.vmem [resolvable:$true] %s326_s15 }
  0x83   : > { %p1225_p12 = scmp.lt.u32.totalorder %s1218_s13, %s1798_s6 }
  0x84   : > { %p1221_p3 = pnand %p1219_p1, %p1492_p8 }
  0x86   : > { %p1222_p11 = pneg %p1221_p3 }
  0x88   : > { %p1227_p13 = pnand %p1225_p12, %p1222_p11 }
  0x8a   : > { %1230 = shalt.err (!%p1227_p13)
}
  0x8b   : > { %s1231_s21 = scalar_lea.vmem %s327_s15, 16  ;;  %s1238_s19 = scalar_lea.vmem %s327_s15, 32 }
  0x8c   : > { %p1232_p0 = scmp.ne.s32.totalorder %s327_s15, %s1231_s21  ;;  %p1239_p7 = scmp.lt.s32.totalorder %s327_s15, %s327_s15 }
  0x8d   : > { %p1240_p9 = scmp.lt.s32.totalorder %s1238_s19, %s1231_s21 }
  0x8e   : > { %p1234_p2 = pnand %p1232_p0, %p1492_p8 }
  0x8f   : > { %p1241_p5 = por %p1240_p9, %p1239_p7 }
  0x90   : > { %p1235_p4 = pneg %p1234_p2 }
  0x92   : > { %p1242_p10 = pnand %p1241_p5, %p1235_p4 }
  0x94   : > { %1245 = shalt.err (!%p1242_p10)
}
  0x95   : > { %980 = dma.hbm_to_vmem [thread:$0]  (!%p1476_p6), %s1798_s6, 16, %s327_s15, [#allocation13]  }
  0x96   : > { %s857_s22 = sadd.s32 4294967294, %s1370_s29   ;;  %s45_s20 = sadd.s32 1, %s1366_s28 }
  0x97   : > { %p47_p8 = scmp.ge.s32.totalorder %s45_s20, 2  ;;  %s54_s12 = sadd.s32 1, %s1358_s26 }
  0x98   : > { %p61_p1 = scmp.ne.s32.totalorder %s1358_s26, %s1354_s25  ;;  %p62_p3 = scmp.eq.s32.totalorder %s1370_s29, 0 }
  0x99   : > { %s1834_s20 = smov (%p47_p8, %s45_s20), 0  ;;  %p67_p12 = scmp.ne.s32.totalorder %s1354_s25, %s1350_s24 }
  0x9a   : > { %p1623_p11 = por %p62_p3, %p61_p1  ;;  %s49_s15 = ssub.s32 %s1366_s28, %s1834_s20 }
  0x9b   : > { %s1814_s10 = sadd.s32 4294967295, %s1370_s29   ;;  %p52_p13 = scmp.eq.s32.totalorder %s49_s15, 0 }
  0x9c   : > { %p234_p6 = scmp.eq.s32.totalorder %s1814_s10, 1  ;;  %p1815_p0 = scmp.ne.s32.totalorder %s1809_s8, 0 }
  0x9d   : > { %p240_p7 = scmp.eq.s32.totalorder %s857_s22, 1  ;;  %p995_p5 = scmp.lt.s32.totalorder %s1370_s29, 2 }
  0x9e   : > { %p1635_p2 = por %p1815_p0, %p67_p12  ;;  %p1639_p4 = por %p234_p6, %p61_p1 }
  0x9f   : > { %s1644_s14 = scalar_select %p52_p13, %s1358_s26, %s54_s12  }
  0xa0   : > { %s1817_s11 = scalar_select %p1639_p4, 1, 0 }
  0xa1   : > { %p1646_p9 = por %p240_p7, %p67_p12  ;;  %s337_s16 = sand.u32 1, %s1358_s26  }
  0xa2   : > { %s898_s21 = sshll.u32 %s1366_s28, 7  ;;  %s866_s19 = sshll.u32 %s337_s16, 3 }
  0xa3   : > { %s1818_s7 = scalar_select %p1646_p9, 1, 0 }
  0xa4   : > { %s1656_s15 = scalar_lea.hbm %s1792_s0, %s898_s21  ;;  %s341_s22 = scalar_lea.vmem [#allocation3], %s866_s19 }
  0xa5   : > { %s350_s12 = sshll.u32 %s341_s22, 4  ;;  %p1660_p10 = pnand %p995_p5, %p1623_p11  ;;  %s1664_s12 = int_to_ptr.vmem [resolvable:$true] %s350_s12 }
  0xa6   : > { %s1666_s17 = scalar_lea.sflag [#allocation4], %s337_s16  ;;  %s1246_s30 = scalar_lea.hbm %s1656_s15, 128 }
  0xa7   : > { %p1247_p8 = scmp.ne.s32.totalorder %s1656_s15, %s1246_s30  ;;  %p1248_p1 = pneg %p1660_p10 }
  0xa8   : > { %s1251_s19 = scalar_lea.hbm %s1792_s0, 256  ;;  %p1252_p11 = scmp.lt.u32.totalorder %s1656_s15, %s1792_s0 }
  0xa9   : > { %p1249_p3 = pnand %p1248_p1, %p1247_p8  ;;  %p1253_p6 = scmp.lt.u32.totalorder %s1251_s19, %s1246_s30 }
  0xaa   : > { %p1255_p0 = scmp.lt.u32.totalorder %s1246_s30, %s1656_s15 }
  0xab   : > { %p1250_p12 = pneg %p1249_p3  ;;  %p1254_p13 = por %p1253_p6, %p1252_p11 }
  0xad   : > { %p1256_p7 = por %p1255_p0, %p1254_p13 }
  0xaf   : > { %p1257_p5 = pnand %p1256_p7, %p1250_p12 }
  0xb1   : > { %1260 = shalt.err (!%p1257_p5)
}
  0xb2   : > { %s1261_s16 = scalar_lea.vmem %s1664_s12, 128  ;;  %s1380_s21 = smov [#allocation3]  }
  0xb3   : > { %p1262_p8 = scmp.ne.s32.totalorder %s1664_s12, %s1261_s16  ;;  %s1266_s23 = sshll.u32 %s1380_s21, 4  ;;  %s1267_s23 = int_to_ptr.vmem [resolvable:$false] %s1266_s23 }
  0xb4   : > { %s1268_s18 = scalar_lea.vmem %s1267_s23, 256  ;;  %p1269_p4 = scmp.lt.s32.totalorder %s1664_s12, %s1267_s23 }
  0xb5   : > { %p1264_p3 = pnand %p1262_p8, %p1248_p1  ;;  %p1270_p11 = scmp.lt.s32.totalorder %s1268_s18, %s1261_s16 }
  0xb7   : > { %p1265_p9 = pneg %p1264_p3  ;;  %p1271_p6 = por %p1270_p11, %p1269_p4 }
  0xb9   : > { %p1272_p13 = pnand %p1271_p6, %p1265_p9 }
  0xbb   : > { %1275 = shalt.err (!%p1272_p13)
}
  0xbc   : > { %s1820_s30 = smov 4   ;;  %s1821_s19 = smov 64  }
  0xbd   : > { %984 = dma.hbm_to_vmem [thread:$0]  (!%p1660_p10), %s1656_s15, 128, %s1664_s12, %s1666_s17, %s1821_s19, %s1821_s19, %s1820_s30  }
  0xbe   : > { %p1822_p1 = scmp.ne.s32.totalorder %s1810_s9, 0 }
  0xbf   : > { %s1700_s22 = sand.u32 (!%p1822_p1), 1, %s1354_s25  }
  0xc0   : > { %362 = sbr.rel (%p1822_p1) target bundleno = 1020 (0x3fc), region = 48  ;;  %s870_s16 = sshll.u32 (!%p1822_p1), %s1700_s22, 3 }
  0xc1   : > { %s365_s21 = scalar_lea.sflag (!%p1822_p1), [#allocation4], %s1700_s22  ;;  %s1706_s10 = scalar_lea.vmem (!%p1822_p1), [#allocation3], %s870_s16 }
  0xc7   : > { %1329 = dma.done.wait (%p1635_p2), %s365_s21, 128  }
  0xc8   : > { %1331 = vsyncadd (%p1635_p2), %s365_s21, 4294967168  ;;  %p1823_p4 = scmp.ne.s32.totalorder %s1809_s8, 0 }
  0xca   : > { %1333 = dma.done.wait (%p1823_p4), [#allocation7], 272  }
  0xcb   : > { %1335 = vsyncadd (%p1823_p4), [#allocation7], 4294967024 }
  0xcc   : > { %1337 = dma.done.wait (%p1823_p4), [#allocation10], 528  }
  0xcd   : > { %1339 = vsyncadd (%p1823_p4), [#allocation10], 4294966768 }
  0xce   : > { %1341 = dma.done.wait (%p1823_p4), [#allocation13], 32  }
  0xcf   : > { %1343 = vsyncadd (%p1823_p4), [#allocation13], 4294967264  ;;  %vm431_vm0 = vcmask 261120   ;;  %v1381_v0 = vmov 0.0   ;;  %vm1382_vm1 = vmmov 0   ;;  %v1063_v1 = vld [vmem:[#allocation6] sm:$0xff]  }
  0xd0   : > { %914 = vmatprep.subr.bf16.mxu0 %v1381_v0  ;;  %918 = vmatprep.mubr.msk.bf16.mxu0 %vm1382_vm1, %v1381_v0  ;;  %432 = vst.msk [vmem:[#allocation2] sm:$0xff] %vm431_vm0, %v1381_v0  ;;  %433 = vst.msk [vmem:[#allocation2 + $0x8] sm:$0xff] %vm431_vm0, %v1381_v0  ;;  %v1064_v2 = vld [vmem:[#allocation6 + $0x8] sm:$0xff]   ;;  %v1065_v3 = vld [vmem:[%s1706_s10] sm:$0xff]   ;;  %vm562_vm2 = vcmask 523264   ;;  %vm684_vm3 = vcmask 257024  }
  0xd1   : > { %922 = vmatprep.subr.bf16.mxu1 %v1381_v0  ;;  %930 = vmatprep.mubr.msk.bf16.mxu1 %vm1382_vm1, %v1381_v0  ;;  %v1066_v4 = vld [vmem:[#allocation9] sm:$0xff]   ;;  %v1067_v5 = vld [vmem:[#allocation9 + $0x8] sm:$0xff]   ;;  %v1068_v6 = vld [vmem:[#allocation9 + $0x10] sm:$0xff]   ;;  %s901_s8 = sshll.u32 %s1362_s27, 7  ;;  %s422_s9 = scalar_lea.vmem [#allocation15], %s870_s16 }
  0xd2   : > { %915 = vmatpush3.bf16.msra.mxu0 %v1063_v1  ;;  %923 = vmatpush3.bf16.msra.mxu1 %v1066_v4  ;;  %v1069_v7 = vld [vmem:[#allocation9 + $0x18] sm:$0xff]   ;;  %v888_v43 = vld [vmem:[#allocation11] ss:$0 sm:$0xff]  ;;  %s703_s17 = sshll.u32 %s422_s9, 4  ;;  %s1824_s12 = sld [smem:[#allocation21_spill]]  ;;  %s1743_s17 = int_to_ptr.vmem [resolvable:$true] %s703_s17 }
  0xd3   : > { %916 = vmatprep.subr.bf16.mxu0 %v1381_v0  ;;  %924 = vmatprep.subr.bf16.mxu1 %v1381_v0  ;;  %v878_v8 = vld [vmem:[#allocation8] ss:$0 sm:$0xff]  ;;  %s688_s18 = scalar_lea.sflag [#allocation5], %s1700_s22  ;;  %s1276_s30 = scalar_lea.vmem %s1743_s17, 128 }
  0xd4   : > { %v903_v42 = vld [vmem:[%s1706_s10] sm:$0xff]   ;;  %p1277_p2 = scmp.ne.s32.totalorder %s1743_s17, %s1276_s30  ;;  %p1825_p9 = scmp.ne.s32.totalorder %s1817_s11, 0 }
  0xd5   : > { %v904_v44 = vunpack.c.l.bf16 %v903_v42  ;;  %v905_v47 = vunpack.c.h.bf16 %v903_v42  ;;  %s1383_s27 = smov [#allocation15]  }
  0xd6   : > { %917 = vmatpush3.bf16.msra.mxu0 %v1064_v2  ;;  %925 = vmatpush3.bf16.msra.mxu1 %v1067_v5  ;;  %p1278_p10 = pnand %p1277_p2, %p1825_p9  ;;  %s1280_s19 = sshll.u32 %s1383_s27, 4  ;;  %s1281_s19 = int_to_ptr.vmem [resolvable:$false] %s1280_s19 }
  0xd7   : > { %926 = vmatprep.subr.bf16.mxu1 %v1381_v0  ;;  %v527_v34 = vld [vmem:[#allocation2] sm:$0xff]  ;;  %v528_v36 = vld [vmem:[#allocation2 + $0x8] sm:$0xff]  ;;  %s1282_s16 = scalar_lea.vmem %s1281_s19, 256  ;;  %p1283_p0 = scmp.lt.s32.totalorder %s1743_s17, %s1281_s19 }
  0xd8   : > { %s1741_s23 = scalar_lea.hbm %s1824_s12, %s901_s8  ;;  %p1279_p12 = pneg %p1278_p10 }
  0xd9   : > { %919 = vmatmul.mubr.msk.bf16.vlgmr.msra.gmra.mrb[0].mxu0 %vm431_vm0, %v1065_v3  ;;  %p1284_p7 = scmp.lt.s32.totalorder %s1282_s16, %s1276_s30 }
  0xda   : > { %927 = vmatpush3.bf16.msra.mxu1 %v1068_v6 }
  0xdb   : > { %928 = vmatprep.subr.bf16.mxu1 %v1381_v0  ;;  %p1285_p5 = por %p1284_p7, %p1283_p0 }
  0xdd   : > { %p1286_p8 = pnand %p1285_p5, %p1279_p12 }
  0xde   : > { %929 = vmatpush3.bf16.msra.mxu1 %v1069_v7  ;;  %v889_v7 = vld [vmem:[#allocation12] ss:$0 sm:$0xff] }
 0x1ac   : > { %v502_v9 = vpop.f32.mrb[0].mxu0 }
 0x1ad   : > { %v503_v10 = vadd.f32 %v878_v8, %v502_v9  ;;  %v920_v11 = vpop.f32.mrb[1].mxu0  ;;  %v890_v9 = vld [vmem:[#allocation14] ss:$0 sm:$0xff] }
 0x1ae   : > { %v505_v12 = vpop.f32.mrb[2].mxu0 }
 0x1af   : > { %v511_v13 = vmul.f32 0.044715, %v503_v10  ;;  %v506_v14 = vadd.f32 %v878_v8, %v505_v12  ;;  %v921_v15 = vpop.f32.mrb[3].mxu0  ;;  %v509_v28 = vmul.f32 0.5, %v503_v10 }
 0x1b1   : > { %v513_v16 = vmul.f32 %v511_v13, %v503_v10  ;;  %v512_v17 = vmul.f32 0.044715, %v506_v14  ;;  %v510_v29 = vmul.f32 0.5, %v506_v14 }
 0x1b3   : > { %v515_v18 = vmul.f32 %v513_v16, %v503_v10  ;;  %v514_v19 = vmul.f32 %v512_v17, %v506_v14 }
 0x1b5   : > { %v517_v20 = vadd.f32 %v515_v18, %v503_v10  ;;  %v516_v21 = vmul.f32 %v514_v19, %v506_v14 }
 0x1b7   : > { %v519_v22 = vmul.f32 0.7978846, %v517_v20  ;;  %v518_v23 = vadd.f32 %v516_v21, %v506_v14 }
 0x1b9   : > { %1070 = vtanh.f32 %v519_v22  ;;  %v520_v24 = vmul.f32 0.7978846, %v518_v23 }
 0x1bb   : > { %1072 = vtanh.f32 %v520_v24 }
 0x1c3   : > { %v1071_v25 = vpop.eup %1070 }
 0x1c4   : > { %v523_v26 = vadd.f32 1.0, %v1071_v25 }
 0x1c5   : > { %v1073_v27 = vpop.eup %1072 }
 0x1c6   : > { %v524_v30 = vadd.f32 1.0, %v1073_v27  ;;  %v525_v31 = vmul.f32 %v523_v26, %v509_v28 }
 0x1c8   : > { %v526_v32 = vmul.f32 %v524_v30, %v510_v29 }
 0x1ca   : > { %v529_v33 = vpack.c.bf16 %v526_v32, %v525_v31 }
 0x1cc   : > { %931 = vmatmul.mubr.msk.bf16.vlgmr.msra.gmra.mrb[0].mxu1 %vm562_vm2, %v529_v33 }
 0x29f   : > { %v600_v35 = vpop.f32.mrb[0].mxu1 }
 0x2a0   : > { %v607_v37 = vadd.f32 %v600_v35, %v527_v34  ;;  %v932_v38 = vpop.f32.mrb[1].mxu1 }
 0x2a1   : > { %v603_v39 = vpop.f32.mrb[2].mxu1 }
 0x2a2   : > { %609 = vst.msk [vmem:[#allocation2] sm:$0xff] %vm431_vm0, %v607_v37  ;;  %v608_v40 = vadd.f32 %v603_v39, %v528_v36  ;;  %v933_v41 = vpop.f32.mrb[3].mxu1 }
 0x2a4   : > { %610 = vst.msk [vmem:[#allocation2 + $0x8] sm:$0xff] %vm431_vm0, %v608_v40 }
 0x2a9   : > { %v614_v45 = vld [vmem:[#allocation2] sm:$0xff] }
 0x2aa   : > { %v623_v46 = vadd.f32 %v888_v43, %v614_v45 }
 0x2ab   : > { %v615_v48 = vld [vmem:[#allocation2 + $0x8] sm:$0xff] }
 0x2ac   : > { %v629_v49 = vadd.f32 %v904_v44, %v623_v46  ;;  %v624_v50 = vadd.f32 %v888_v43, %v615_v48 }
 0x2ae   : > { %v631_v51 = vsel %vm431_vm0, %v629_v49, 0.0  ;;  %v630_v52 = vadd.f32 %v905_v47, %v624_v50 }
 0x2af   : > { %632 = vadd.xlane.f32.xlu0 %v631_v51 }
 0x2b0   : > { %v634_v53 = vsel %vm431_vm0, %v630_v52, 0.0 }
 0x2b3   : > { %635 = vadd.xlane.f32.xlu0 %v634_v53 }
 0x33c   : > { %v633_v54 = vpop.xlane.xlu0 %632 }
 0x33d   : > { %v638_v55 = vmul.f32 0.03125, %v633_v54 }
 0x33f   : > { %v640_v56 = vsub.f32 %v629_v49, %v638_v55 }
 0x340   : > { %v636_v57 = vpop.xlane.xlu0 %635 }
 0x341   : > { %v639_v58 = vmul.f32 0.03125, %v636_v57  ;;  %v642_v59 = vmul.f32 %v640_v56, %v640_v56 }
 0x343   : > { %v641_v60 = vsub.f32 %v630_v52, %v639_v58  ;;  %v644_v61 = vsel %vm431_vm0, %v642_v59, 0.0 }
 0x344   : > { %645 = vadd.xlane.f32.xlu1 %v644_v61 }
 0x345   : > { %v643_v62 = vmul.f32 %v641_v60, %v641_v60 }
 0x347   : > { %v647_v63 = vsel %vm431_vm0, %v643_v62, 0.0 }
 0x348   : > { %648 = vadd.xlane.f32.xlu1 %v647_v63 }
 0x3d1   : > { %v646_v0 = vpop.xlane.xlu1 %645 }
 0x3d2   : > { %v650_v1 = vmul.f32 0.03125, %v646_v0 }
 0x3d4   : > { %v652_v2 = vadd.f32 1e-12, %v650_v1 }
 0x3d5   : > { %v649_v3 = vpop.xlane.xlu1 %648 }
 0x3d6   : > { %1074 = vrsqrt.f32 %v652_v2  ;;  %v651_v4 = vmul.f32 0.03125, %v649_v3 }
 0x3d8   : > { %v653_v5 = vadd.f32 1e-12, %v651_v4 }
 0x3da   : > { %1076 = vrsqrt.f32 %v653_v5 }
 0x3e0   : > { %v1075_v6 = vpop.eup %1074 }
 0x3e1   : > { %v656_v8 = vmul.f32 %v1075_v6, %v640_v56 }
 0x3e3   : > { %v665_v10 = vmul.f32 %v889_v7, %v656_v8 }
 0x3e4   : > { %v1077_v11 = vpop.eup %1076 }
 0x3e5   : > { %v674_v12 = vadd.f32 %v890_v9, %v665_v10  ;;  %v657_v13 = vmul.f32 %v1077_v11, %v641_v60 }
 0x3e7   : > { %v899_v14 = vpack.c.bf16 %v674_v12, %v674_v12  ;;  %v666_v15 = vmul.f32 %v889_v7, %v657_v13 }
 0x3e9   : > { %v675_v16 = vadd.f32 %v890_v9, %v666_v15  ;;  %685 = vst.msk [vmem:[%s422_s9] sm:$0xf] %vm684_vm3, %v899_v14 }
 0x3eb   : > { %v900_v17 = vpack.c.bf16 %v675_v16, %v675_v16 }
 0x3ed   : > { %686 = vst.msk [vmem:[%s422_s9 + $0x4] sm:$0xf] %vm684_vm3, %v900_v17 }
 0x3ee   : > { %1289 = shalt.err (!%p1286_p8)
}
 0x3ef   : > { %s1290_s21 = scalar_lea.hbm %s1741_s23, 128  ;;  %s1294_s9 = scalar_lea.hbm %s1824_s12, 256 }
 0x3f0   : > { %p1291_p3 = scmp.ne.s32.totalorder %s1741_s23, %s1290_s21  ;;  %p1295_p13 = scmp.lt.u32.totalorder %s1741_s23, %s1824_s12 }
 0x3f1   : > { %p1296_p1 = scmp.lt.u32.totalorder %s1294_s9, %s1290_s21  ;;  %p1298_p2 = scmp.lt.u32.totalorder %s1290_s21, %s1741_s23 }
 0x3f2   : > { %p1292_p11 = pnand %p1291_p3, %p1825_p9 }
 0x3f3   : > { %p1297_p4 = por %p1296_p1, %p1295_p13 }
 0x3f4   : > { %p1293_p6 = pneg %p1292_p11 }
 0x3f5   : > { %p1299_p10 = por %p1298_p2, %p1297_p4 }
 0x3f7   : > { %p1300_p12 = pnand %p1299_p10, %p1293_p6 }
 0x3f9   : > { %1303 = shalt.err (!%p1300_p12)
}
 0x3fa   : > { %s1384_s30 = smov 64   ;;  %s1385_s27 = smov 4  }
 0x3fb   : > { %960 = dma.vmem_to_hbm [thread:$0]  (%p1825_p9), %s1743_s17, 128, %s1741_s23, %s688_s18, %s1384_s30, %s1384_s30, %s1385_s27  }
 0x3fc PF: > { %s718_s19 = sand.u32 1, %s1350_s24   ;;  %p1826_p0 = scmp.ne.s32.totalorder %s1818_s7, 0 }
 0x3fd   : > { %p1827_p7 = scmp.ge.s32.totalorder %s1370_s29, 2  ;;  %s719_s16 = scalar_lea.sflag [#allocation5], %s718_s19 }
 0x3ff   : > { %p986_p5 = pnand %p1827_p7, %p1826_p0 }
 0x401   : > { %1345 = dma.done.wait (!%p986_p5), %s719_s16, 128  }
 0x402   : > { %1347 = vsyncadd (!%p986_p5), %s719_s16, 4294967168  ;;  %s26_s29 = sadd.s32 1, %s1370_s29   ;;  %s1828_s24 = smov %s1354_s25 }
 0x403   : > { %p23_p8 = scmp.ge.s32.totalorder %s26_s29, 4   ;;  %s1829_s25 = smov %s1358_s26 }
 0x404   : > { %s1830_s26 = smov %s1644_s14  ;;  %s1831_s27 = smov %s1366_s28 }
 0x405   : > { %s1832_s28 = smov %s1834_s20  ;;  %25 = sbr.rel (!%p23_p8) target bundleno = 11 (0xb), region = 128 }
 0x40c   :  { %724 = vsyncpa [#allocation4], 1 }
 0x40d   :  { %726 = vsyncpa [#allocation4 + $0x1], 1 }
 0x40e   :  { %727 = vsyncpa [#allocation7], 1 }
 0x40f   :  { %728 = vsyncpa [#allocation10], 1 }
 0x410   :  { %729 = vsyncpa [#allocation13], 1 }
 0x411   :  { %730 = vsyncpa [#allocation5], 1 }
 0x412   :  { %732 = vsyncpa [#allocation5 + $0x1], 1 }

</bundles_post_ra>
